<compile_context>
chip_gen: v5e
topology: v5e:2x2
jax: 0.10.0
libtpu: 0.0.40
codegen_flags: <defaults>
</compile_context>

<pallas_src>
import functools

import jax
import jax.numpy as jnp
from jax import lax
from jax.experimental import pallas as pl
from jax.experimental.pallas import tpu as pltpu

# ----------------------------------------------------------------------------
# Small dims consistent with the module structure
# (module: bert_hidden=768, lstm_hidden=256, seq=512, final_hidden=128)
# ----------------------------------------------------------------------------
VOCAB = 50
SEQ = 16            # tokens per chunk
EMB = 32            # token embedding dim
BERT_H = 32         # synthetic "BERT" hidden size
LSTM_H = 32         # LSTM hidden; bidirectional output = 2*LSTM_H
CTX_IN = 2
CTX_H = 16
FINAL_H = 32
NUM_LABELS = 2
OUT_PAD = 128       # lane-dense logits row; first NUM_LABELS lanes are real
BATCH_BLOCK = 8     # batch rows per grid step (>=8 -> sublane-dense stores)


def init_params(key):
    ks = jax.random.split(key, 16)
    s = 0.05
    n = jax.random.normal
    f32 = jnp.float32
    return {
        "emb_table": n(ks[0], (VOCAB, EMB), f32) * s,
        # synthetic BERT CLS encoder
        "w_enc": n(ks[1], (EMB, BERT_H), f32) * s,
        "b_enc": jnp.zeros((1, BERT_H), f32),
        # BiLSTM (PyTorch gate order i, f, g, o; b = b_ih + b_hh combined)
        "wih_f": n(ks[2], (BERT_H, 4 * LSTM_H), f32) * s,
        "whh_f": n(ks[3], (LSTM_H, 4 * LSTM_H), f32) * s,
        "b_f":   n(ks[4], (1, 4 * LSTM_H), f32) * s,
        "wih_b": n(ks[5], (BERT_H, 4 * LSTM_H), f32) * s,
        "whh_b": n(ks[6], (LSTM_H, 4 * LSTM_H), f32) * s,
        "b_b":   n(ks[7], (1, 4 * LSTM_H), f32) * s,
        # attention pooling (Linear(2H, 1))
        "w_att": n(ks[8], (2 * LSTM_H, 1), f32) * s,
        "b_att": jnp.zeros((1, 1), f32),
        # context net (Linear(2, 16) + ReLU)
        "w_ctx": n(ks[9], (CTX_IN, CTX_H), f32) * s,
        "b_ctx": n(ks[10], (1, CTX_H), f32) * s,
        # classifier (Linear(fusion, final) + ReLU + Linear(final, num_labels))
        "w1": n(ks[11], (2 * LSTM_H + CTX_H, FINAL_H), f32) * s,
        "b1": n(ks[12], (1, FINAL_H), f32) * s,
        "w2": n(ks[13], (FINAL_H, NUM_LABELS), f32) * s,
        "b2": n(ks[14], (1, NUM_LABELS), f32) * s,
    }


# ----------------------------------------------------------------------------
# Fused Pallas kernel (per batch block): CLS pooling -> fused BiLSTM ->
# attention -> context -> fusion -> classifier.
# ----------------------------------------------------------------------------
def _kernel(tok_emb_ref, mask_ref, ctx_ref,
            w_enc_ref, wih_ref, whh_ref, wcls_ref, wctx_ref, misc_ref,
            out_ref,
            gx_ref, hf_ref, hb_ref,
            *, chunks, bt):
    f32 = jnp.float32
    H, H2, H4, H8 = LSTM_H, 2 * LSTM_H, 4 * LSTM_H, 8 * LSTM_H

    # packed misc slab: biases + attention vector
    b_enc = misc_ref[0:1, 0:BERT_H]          # [1, BERT_H]
    b_gates = misc_ref[1:2, 0:H8]            # [1, 8H]  (b_ih + b_hh, fwd|bwd)
    w_att_f = misc_ref[2:3, 0:H]             # [1, H]
    w_att_b = misc_ref[2:3, H:H2]            # [1, H]
    b_att = misc_ref[3:4, 0:1]               # [1, 1]
    b_ctx = misc_ref[4:5, 0:CTX_H]           # [1, CTX_H]
    b1 = misc_ref[5:6, 0:FINAL_H]            # [1, FINAL_H]
    b2 = misc_ref[6:7, 0:OUT_PAD]            # [1, OUT_PAD] (zero-padded)

    # --- synthetic BERT CLS: masked-mean pool + tanh(Linear), time-major -------
    emb = tok_emb_ref[...]                   # [C, Bt, S, E]
    msk = mask_ref[...]                      # [C, Bt, S, 1]
    pooled = jnp.sum(emb * msk, axis=2)      # [C, Bt, E]   (VPU mul + sublane reduce)
    denom = jnp.maximum(jnp.sum(msk, axis=2), 1.0)          # [C, Bt, 1]
    pooled = (pooled / denom).reshape(chunks * bt, EMB)      # [C*Bt, E]
    cls = jnp.tanh(jnp.dot(pooled, w_enc_ref[...],
                           preferred_element_type=f32) + b_enc)   # [C*Bt, BERT_H]

    # --- hoisted input->gate matmul: both LSTM directions in one N=8H push -----
    gx = jnp.dot(cls, wih_ref[...], preferred_element_type=f32) + b_gates  # [C*Bt, 8H]
    gx_ref[...] = gx.reshape(chunks, bt, H8)

    # --- fused fwd+bwd recurrence: ONE [Bt,2H]@[2H,8H] matmul per timestep ------
    whh = whh_ref[...]                       # block-diag(whh_f, whh_b), [2H, 8H]

    def gate_update(g4, c):                  # g4: [Bt, 4H] (i|f|g|o), one vreg row
        sg = jax.nn.sigmoid(g4)
        tg = jnp.tanh(g4)
        i = sg[:, 0:H]
        f = sg[:, H:2 * H]
        g = tg[:, 2 * H:3 * H]
        o = sg[:, 3 * H:4 * H]
        c_new = f * c + i * g
        return o * jnp.tanh(c_new), c_new

    def step(s, carry):
        h_f, c_f, h_b, c_b = carry
        r = chunks - 1 - s
        h_cat = jnp.concatenate([h_f, h_b], axis=1)                   # [Bt, 2H]
        gh = jnp.dot(h_cat, whh, preferred_element_type=f32)          # [Bt, 8H]
        h_f, c_f = gate_update(gx_ref[s, :, 0:H4] + gh[:, 0:H4], c_f)
        h_b, c_b = gate_update(gx_ref[r, :, H4:H8] + gh[:, H4:H8], c_b)
        hf_ref[s] = h_f
        hb_ref[r] = h_b
        return h_f, c_f, h_b, c_b

    z = jnp.zeros((bt, H), f32)
    lax.fori_loop(0, chunks, step, (z, z, z, z), unroll=True)

    # --- attention pooling over chunks (vectorized over stacked hidden states) --
    hf = hf_ref[...]                          # [C, Bt, H]
    hb = hb_ref[...]                          # [C, Bt, H]
    scores = (jnp.sum(hf * w_att_f, axis=-1, keepdims=True)
              + jnp.sum(hb * w_att_b, axis=-1, keepdims=True)
              + b_att)                        # [C, Bt, 1]
    m = jnp.max(scores, axis=0, keepdims=True)
    e = jnp.exp(scores - m)
    att = e / jnp.sum(e, axis=0, keepdims=True)               # exact softmax
    news_f = jnp.sum(att * hf, axis=0)        # [Bt, H]
    news_b = jnp.sum(att * hb, axis=0)        # [Bt, H]

    # --- context branch (Dropout == identity at inference) ----------------------
    ctx_hid = jnp.maximum(
        jnp.dot(ctx_ref[...], wctx_ref[...], preferred_element_type=f32) + b_ctx,
        0.0)                                  # [Bt, CTX_H]

    # --- fusion + classifier (concat expressed as split weight row-blocks) ------
    hid = jnp.maximum(
        jnp.dot(news_f, wcls_ref[0:H, 0:FINAL_H], preferred_element_type=f32)
        + jnp.dot(news_b, wcls_ref[H:H2, 0:FINAL_H], preferred_element_type=f32)
        + jnp.dot(ctx_hid, wcls_ref[H2:H2 + CTX_H, 0:FINAL_H],
                  preferred_element_type=f32)
        + b1, 0.0)                            # [Bt, FINAL_H]
    logits = jnp.dot(hid, wcls_ref[H2 + CTX_H:H2 + CTX_H + FINAL_H, :],
                     preferred_element_type=f32) + b2          # [Bt, OUT_PAD]
    out_ref[...] = logits.astype(out_ref.dtype)                # sublane+lane-dense store


def dual_input_fake_news_forward(params, input_ids, attention_mask, context_features,
                                 *, batch_block=BATCH_BLOCK):
    """input_ids/attention_mask: [B, num_chunks, seq]; context_features: [B, 2]."""
    B, C, S = input_ids.shape
    H = LSTM_H
    f32 = jnp.float32

    # Pad batch up to a multiple of the batch block (padded rows are sliced off).
    Bt = batch_block
    Bp = ((B + Bt - 1) // Bt) * Bt
    pad = Bp - B
    if pad:
        input_ids = jnp.pad(input_ids, ((0, pad), (0, 0), (0, 0)))
        attention_mask = jnp.pad(attention_mask, ((0, pad), (0, 0), (0, 0)))
        context_features = jnp.pad(context_features, ((0, pad), (0, 0)))

    # Glue: embedding gather emitted time-major [C, B, S, E] (only the tiny int ids are
    # transposed), so the big tensor is written once in the layout the kernel consumes.
    # TODO(synk): at toy dims the table could stay VMEM-resident and be gathered in-kernel
    #   to avoid the HBM round-trip of tok_emb entirely.
    ids_t = jnp.transpose(input_ids, (1, 0, 2))                         # [C, Bp, S]
    tok_emb = params["emb_table"][ids_t]                                # [C, Bp, S, E]
    mask = jnp.transpose(attention_mask, (1, 0, 2)).astype(f32)[..., None]  # [C, Bp, S, 1]
    ctx = context_features.astype(f32)                                  # [Bp, CTX_IN]

    # One-time weight packing: fuse the two LSTM directions, pack classifier weights and
    # all biases into a few lane-dense slabs (fewer BlockSpecs/DMAs, no in-kernel concats).
    wih_cat = jnp.concatenate([params["wih_f"], params["wih_b"]], axis=1)   # [BERT_H, 8H]
    b_gates = jnp.concatenate([params["b_f"], params["b_b"]], axis=1)       # [1, 8H]
    whh_blk = jnp.zeros((2 * H, 8 * H), f32)
    whh_blk = whh_blk.at[:H, :4 * H].set(params["whh_f"])
    whh_blk = whh_blk.at[H:, 4 * H:].set(params["whh_b"])                   # block-diag

    wcls = jnp.zeros((2 * H + CTX_H + FINAL_H, OUT_PAD), f32)
    wcls = wcls.at[0:2 * H, 0:FINAL_H].set(params["w1"][0:2 * H])           # w1 (news part)
    wcls = wcls.at[2 * H:2 * H + CTX_H, 0:FINAL_H].set(params["w1"][2 * H:])  # w1 (ctx part)
    wcls = wcls.at[2 * H + CTX_H:, 0:NUM_LABELS].set(params["w2"])          # w2 (padded)

    misc = jnp.zeros((8, 8 * H), f32)
    misc = misc.at[0, 0:BERT_H].set(params["b_enc"][0])
    misc = misc.at[1, :].set(b_gates[0])
    misc = misc.at[2, 0:2 * H].set(params["w_att"][:, 0])
    misc = misc.at[3, 0].set(params["b_att"][0, 0])
    misc = misc.at[4, 0:CTX_H].set(params["b_ctx"][0])
    misc = misc.at[5, 0:FINAL_H].set(params["b1"][0])
    misc = misc.at[6, 0:NUM_LABELS].set(params["b2"][0])

    weights = (params["w_enc"], wih_cat, whh_blk, wcls, params["w_ctx"], misc)

    def rep_spec(x):
        nd = x.ndim
        return pl.BlockSpec(x.shape, lambda b, _nd=nd: (0,) * _nd)

    in_specs = [
        pl.BlockSpec((C, Bt, S, EMB), lambda b: (0, b, 0, 0)),   # tok_emb (time-major)
        pl.BlockSpec((C, Bt, S, 1), lambda b: (0, b, 0, 0)),     # mask
        pl.BlockSpec((Bt, CTX_IN), lambda b: (b, 0)),            # context features
    ] + [rep_spec(w) for w in weights]

    # TODO(synk): at real module dims use bf16 storage for tok_emb/weights (f32 accumulation)
    #   and tile the chunk axis via an extra grid dimension to fit v7x's 64 MiB VMEM.
    kern = functools.partial(_kernel, chunks=C, bt=Bt)
    out = pl.pallas_call(
        kern,
        out_shape=jax.ShapeDtypeStruct((Bp, OUT_PAD), f32),
        grid=(Bp // Bt,),
        in_specs=in_specs,
        out_specs=pl.BlockSpec((Bt, OUT_PAD), lambda b: (b, 0)),
        scratch_shapes=[
            pltpu.VMEM((C, Bt, 8 * H), f32),   # hoisted input->gate activations
            pltpu.VMEM((C, Bt, H), f32),       # forward hidden states
            pltpu.VMEM((C, Bt, H), f32),       # backward hidden states
        ],
        compiler_params=pltpu.CompilerParams(dimension_semantics=("parallel",)),
    )(tok_emb, mask, ctx, *weights)
    return out[:B, :NUM_LABELS]


# ----------------------------------------------------------------------------
# Pure-JAX reference (same synthetic parameters) for a correctness check
# ----------------------------------------------------------------------------
def reference(params, input_ids, attention_mask, context_features):
    B, C, S = input_ids.shape
    emb = params["emb_table"][input_ids]                              # [B, C, S, E]
    mask = attention_mask.astype(jnp.float32)
    pooled = (emb * mask[..., None]).sum(2) / jnp.maximum(mask.sum(2, keepdims=True), 1.0)
    cls = jnp.tanh(pooled @ params["w_enc"] + params["b_enc"])        # [B, C, BERT_H]

    def cell(x, h, c, wih, whh, b):
        gates = x @ wih + h @ whh + b
        i, f, g, o = jnp.split(gates, 4, axis=1)
        i, f, g, o = jax.nn.sigmoid(i), jax.nn.sigmoid(f), jnp.tanh(g), jax.nn.sigmoid(o)
        c = f * c + i * g
        return o * jnp.tanh(c), c

    H = LSTM_H
    h = jnp.zeros((B, H)); c = jnp.zeros((B, H)); hf = []
    for t in range(C):
        h, c = cell(cls[:, t], h, c, params["wih_f"], params["whh_f"], params["b_f"])
        hf.append(h)
    h = jnp.zeros((B, H)); c = jnp.zeros((B, H)); hb = [None] * C
    for t in reversed(range(C)):
        h, c = cell(cls[:, t], h, c, params["wih_b"], params["whh_b"], params["b_b"])
        hb[t] = h
    lstm_out = jnp.stack([jnp.concatenate([hf[t], hb[t]], -1) for t in range(C)], axis=1)
    scores = (lstm_out @ params["w_att"])[..., 0] + params["b_att"][0, 0]
    w = jax.nn.softmax(scores, axis=1)
    news = jnp.einsum("bc,bch->bh", w, lstm_out)
    ctxh = jax.nn.relu(context_features @ params["w_ctx"] + params["b_ctx"])
    fusion = jnp.concatenate([news, ctxh], 1)
    hid = jax.nn.relu(fusion @ params["w1"] + params["b1"])
    return hid @ params["w2"] + params["b2"]


if __name__ == "__main__":
    key = jax.random.PRNGKey(0)
    k_ids, k_mask, k_ctx, k_params = jax.random.split(key, 4)

    B, C = 16, 4  # batch, num_chunks  (2 grid steps of 8 rows -> both v7x cores busy)
    input_ids = jax.random.randint(k_ids, (B, C, SEQ), 0, VOCAB, dtype=jnp.int32)
    lengths = jax.random.randint(k_mask, (B, C, 1), SEQ // 2, SEQ + 1)
    attention_mask = (jnp.arange(SEQ)[None, None, :] < lengths).astype(jnp.int32)
    context_features = jax.random.normal(k_ctx, (B, CTX_IN), jnp.float32)

    params = init_params(k_params)

    logits = dual_input_fake_news_forward(params, input_ids, attention_mask, context_features)
    logits = jax.block_until_ready(logits)

    ref = reference(params, input_ids, attention_mask, context_features)
    assert logits.shape == (B, NUM_LABELS)
    assert bool(jnp.all(jnp.isfinite(logits)))
    assert bool(jnp.allclose(logits, ref, atol=5e-3, rtol=1e-2)), (logits, ref)

    print("KERNEL_OK")
</pallas_src>

<mosaic_0001>
module attributes {stable_mosaic.version = 11 : i64} {
  func.func @_kernel(%arg0: i32, %arg1: memref<4x8x16x32xf32, #tpu.memory_space<vmem>>, %arg2: memref<4x8x16x1xf32, #tpu.memory_space<vmem>>, %arg3: memref<8x2xf32, #tpu.memory_space<vmem>>, %arg4: memref<32x32xf32, #tpu.memory_space<vmem>>, %arg5: memref<32x256xf32, #tpu.memory_space<vmem>>, %arg6: memref<64x256xf32, #tpu.memory_space<vmem>>, %arg7: memref<112x128xf32, #tpu.memory_space<vmem>>, %arg8: memref<2x16xf32, #tpu.memory_space<vmem>>, %arg9: memref<8x256xf32, #tpu.memory_space<vmem>>, %arg10: memref<8x128xf32, #tpu.memory_space<vmem>>, %arg11: memref<4x8x256xf32, #tpu.memory_space<vmem>>, %arg12: memref<4x8x32xf32, #tpu.memory_space<vmem>>, %arg13: memref<4x8x32xf32, #tpu.memory_space<vmem>>) attributes {dimension_semantics = [#tpu.dimension_semantics<parallel>], iteration_bounds = array<i64: 2>, scalar_prefetch = 0 : i64, scratch_operands = 3 : i64, tpu.core_type = #tpu.core_type<tc>, window_params = [{transform_indices = @transform_0, window_bounds = array<i64: 4, 8, 16, 32>}, {transform_indices = @transform_1, window_bounds = array<i64: 4, 8, 16, 1>}, {transform_indices = @transform_2, window_bounds = array<i64: 8, 2>}, {pipeline_mode = #tpu.pipeline_mode<synchronous>, transform_indices = @transform_3, window_bounds = array<i64: 32, 32>}, {pipeline_mode = #tpu.pipeline_mode<synchronous>, transform_indices = @transform_4, window_bounds = array<i64: 32, 256>}, {pipeline_mode = #tpu.pipeline_mode<synchronous>, transform_indices = @transform_5, window_bounds = array<i64: 64, 256>}, {pipeline_mode = #tpu.pipeline_mode<synchronous>, transform_indices = @transform_6, window_bounds = array<i64: 112, 128>}, {pipeline_mode = #tpu.pipeline_mode<synchronous>, transform_indices = @transform_7, window_bounds = array<i64: 2, 16>}, {pipeline_mode = #tpu.pipeline_mode<synchronous>, transform_indices = @transform_8, window_bounds = array<i64: 8, 256>}, {transform_indices = @transform_9, window_bounds = array<i64: 8, 128>}]} {
    %c0 = arith.constant 0 : index
    %c0_0 = arith.constant 0 : index
    %0 = vector.load %arg9[%c0, %c0_0] : memref<8x256xf32, #tpu.memory_space<vmem>>, vector<1x32xf32>
    %c1 = arith.constant 1 : index
    %c0_1 = arith.constant 0 : index
    %1 = vector.load %arg9[%c1, %c0_1] : memref<8x256xf32, #tpu.memory_space<vmem>>, vector<1x256xf32>
    %c2 = arith.constant 2 : index
    %c0_2 = arith.constant 0 : index
    %2 = vector.load %arg9[%c2, %c0_2] : memref<8x256xf32, #tpu.memory_space<vmem>>, vector<1x32xf32>
    %c2_3 = arith.constant 2 : index
    %c32 = arith.constant 32 : index
    %3 = vector.load %arg9[%c2_3, %c32] : memref<8x256xf32, #tpu.memory_space<vmem>>, vector<1x32xf32>
    %c3 = arith.constant 3 : index
    %c0_4 = arith.constant 0 : index
    %4 = vector.load %arg9[%c3, %c0_4] : memref<8x256xf32, #tpu.memory_space<vmem>>, vector<1x1xf32>
    %c4 = arith.constant 4 : index
    %c0_5 = arith.constant 0 : index
    %5 = vector.load %arg9[%c4, %c0_5] : memref<8x256xf32, #tpu.memory_space<vmem>>, vector<1x16xf32>
    %c5 = arith.constant 5 : index
    %c0_6 = arith.constant 0 : index
    %6 = vector.load %arg9[%c5, %c0_6] : memref<8x256xf32, #tpu.memory_space<vmem>>, vector<1x32xf32>
    %c6 = arith.constant 6 : index
    %c0_7 = arith.constant 0 : index
    %7 = vector.load %arg9[%c6, %c0_7] : memref<8x256xf32, #tpu.memory_space<vmem>>, vector<1x128xf32>
    %c0_8 = arith.constant 0 : index
    %c0_9 = arith.constant 0 : index
    %c0_10 = arith.constant 0 : index
    %c0_11 = arith.constant 0 : index
    %8 = vector.load %arg1[%c0_8, %c0_9, %c0_10, %c0_11] : memref<4x8x16x32xf32, #tpu.memory_space<vmem>>, vector<4x8x16x32xf32>
    %c0_12 = arith.constant 0 : index
    %c0_13 = arith.constant 0 : index
    %c0_14 = arith.constant 0 : index
    %c0_15 = arith.constant 0 : index
    %9 = vector.load %arg2[%c0_12, %c0_13, %c0_14, %c0_15] : memref<4x8x16x1xf32, #tpu.memory_space<vmem>>, vector<4x8x16x1xf32>
    %10 = vector.broadcast %9 : vector<4x8x16x1xf32> to vector<4x8x16x32xf32>
    %11 = arith.mulf %8, %10 : vector<4x8x16x32xf32>
    %cst = arith.constant dense<0.000000e+00> : vector<4x8x32xf32>
    %12 = vector.multi_reduction <add>, %11, %cst [2] : vector<4x8x16x32xf32> to vector<4x8x32xf32>
    %cst_16 = arith.constant dense<0.000000e+00> : vector<4x8x1xf32>
    %13 = vector.multi_reduction <add>, %9, %cst_16 [2] : vector<4x8x16x1xf32> to vector<4x8x1xf32>
    %cst_17 = arith.constant 1.000000e+00 : f32
    %14 = vector.broadcast %cst_17 : f32 to vector<4x8x1xf32>
    %15 = arith.maximumf %13, %14 : vector<4x8x1xf32>
    %16 = vector.broadcast %15 : vector<4x8x1xf32> to vector<4x8x32xf32>
    %17 = arith.divf %12, %16 : vector<4x8x32xf32>
    %18 = vector.shape_cast %17 : vector<4x8x32xf32> to vector<32x32xf32>
    %c0_18 = arith.constant 0 : index
    %c0_19 = arith.constant 0 : index
    %19 = vector.load %arg4[%c0_18, %c0_19] : memref<32x32xf32, #tpu.memory_space<vmem>>, vector<32x32xf32>
    %cst_20 = arith.constant dense<0.000000e+00> : vector<32x32xf32>
    %20 = tpu.matmul %18, %19, %cst_20 {dimension_numbers = #tpu.dot_dimension_numbers<[1], [0], [0], [1], [0, 0, 1, 1], [], []>} : vector<32x32xf32>, vector<32x32xf32>, vector<32x32xf32> -> vector<32x32xf32>
    %21 = vector.broadcast %0 : vector<1x32xf32> to vector<32x32xf32>
    %22 = arith.addf %20, %21 : vector<32x32xf32>
    %23 = math.tanh %22 : vector<32x32xf32>
    %c0_21 = arith.constant 0 : index
    %c0_22 = arith.constant 0 : index
    %24 = vector.load %arg5[%c0_21, %c0_22] : memref<32x256xf32, #tpu.memory_space<vmem>>, vector<32x256xf32>
    %cst_23 = arith.constant dense<0.000000e+00> : vector<32x256xf32>
    %25 = tpu.matmul %23, %24, %cst_23 {dimension_numbers = #tpu.dot_dimension_numbers<[1], [0], [0], [1], [0, 0, 1, 1], [], []>} : vector<32x32xf32>, vector<32x256xf32>, vector<32x256xf32> -> vector<32x256xf32>
    %26 = vector.broadcast %1 : vector<1x256xf32> to vector<32x256xf32>
    %27 = arith.addf %25, %26 : vector<32x256xf32>
    %28 = vector.shape_cast %27 : vector<32x256xf32> to vector<4x8x256xf32>
    %c0_24 = arith.constant 0 : index
    %c0_25 = arith.constant 0 : index
    %c0_26 = arith.constant 0 : index
    %29 = vector.load %arg11[%c0_24, %c0_25, %c0_26] : memref<4x8x256xf32, #tpu.memory_space<vmem>>, vector<4x8x256xf32>
    tpu.vector_store %arg11[%c0_24, %c0_25, %c0_26], %28 {strides = array<i32>} : memref<4x8x256xf32, #tpu.memory_space<vmem>>, vector<4x8x256xf32>,
    %c0_27 = arith.constant 0 : index
    %c0_28 = arith.constant 0 : index
    %30 = vector.load %arg6[%c0_27, %c0_28] : memref<64x256xf32, #tpu.memory_space<vmem>>, vector<64x256xf32>
    %cst_29 = arith.constant 0.000000e+00 : f32
    %31 = vector.broadcast %cst_29 : f32 to vector<8x32xf32>
    %c0_i32 = arith.constant 0 : i32
    %c3_i32 = arith.constant 3 : i32
    %32 = arith.subi %c3_i32, %c0_i32 : i32
    %33 = tpu.concatenate %31, %31 in 1 : vector<8x32xf32>, vector<8x32xf32> -> vector<8x64xf32>
    %cst_30 = arith.constant dense<0.000000e+00> : vector<8x256xf32>
    %34 = tpu.matmul %33, %30, %cst_30 {dimension_numbers = #tpu.dot_dimension_numbers<[1], [0], [0], [1], [0, 0, 1, 1], [], []>} : vector<8x64xf32>, vector<64x256xf32>, vector<8x256xf32> -> vector<8x256xf32>
    %35 = arith.index_cast %c0_i32 : i32 to index
    %c0_31 = arith.constant 0 : index
    %c0_32 = arith.constant 0 : index
    %36 = vector.load %arg11[%35, %c0_31, %c0_32] : memref<4x8x256xf32, #tpu.memory_space<vmem>>, vector<1x8x128xf32>
    %37 = vector.shape_cast %36 : vector<1x8x128xf32> to vector<8x128xf32>
    %38 = vector.extract_strided_slice %34 {offsets = [0, 0], sizes = [8, 128], strides = [1, 1]} : vector<8x256xf32> to vector<8x128xf32>
    %39 = arith.addf %37, %38 : vector<8x128xf32>
    %40 = arith.negf %39 : vector<8x128xf32>
    %41 = math.exp %40 : vector<8x128xf32>
    %cst_33 = arith.constant 1.000000e+00 : f32
    %42 = vector.broadcast %cst_33 : f32 to vector<8x128xf32>
    %43 = arith.addf %42, %41 : vector<8x128xf32>
    %44 = arith.divf %42, %43 : vector<8x128xf32>
    %45 = math.tanh %39 : vector<8x128xf32>
    %46 = vector.extract_strided_slice %44 {offsets = [0, 0], sizes = [8, 32], strides = [1, 1]} : vector<8x128xf32> to vector<8x32xf32>
    %47 = vector.extract_strided_slice %44 {offsets = [0, 32], sizes = [8, 32], strides = [1, 1]} : vector<8x128xf32> to vector<8x32xf32>
    %48 = vector.extract_strided_slice %45 {offsets = [0, 64], sizes = [8, 32], strides = [1, 1]} : vector<8x128xf32> to vector<8x32xf32>
    %49 = vector.extract_strided_slice %44 {offsets = [0, 96], sizes = [8, 32], strides = [1, 1]} : vector<8x128xf32> to vector<8x32xf32>
    %50 = arith.mulf %47, %31 : vector<8x32xf32>
    %51 = arith.mulf %46, %48 : vector<8x32xf32>
    %52 = arith.addf %50, %51 : vector<8x32xf32>
    %53 = math.tanh %52 : vector<8x32xf32>
    %54 = arith.mulf %49, %53 : vector<8x32xf32>
    %55 = arith.index_cast %32 : i32 to index
    %c0_34 = arith.constant 0 : index
    %c128 = arith.constant 128 : index
    %56 = vector.load %arg11[%55, %c0_34, %c128] : memref<4x8x256xf32, #tpu.memory_space<vmem>>, vector<1x8x128xf32>
    %57 = vector.shape_cast %56 : vector<1x8x128xf32> to vector<8x128xf32>
    %58 = vector.extract_strided_slice %34 {offsets = [0, 128], sizes = [8, 128], strides = [1, 1]} : vector<8x256xf32> to vector<8x128xf32>
    %59 = arith.addf %57, %58 : vector<8x128xf32>
    %60 = arith.negf %59 : vector<8x128xf32>
    %61 = math.exp %60 : vector<8x128xf32>
    %cst_35 = arith.constant 1.000000e+00 : f32
    %62 = vector.broadcast %cst_35 : f32 to vector<8x128xf32>
    %63 = arith.addf %62, %61 : vector<8x128xf32>
    %64 = arith.divf %62, %63 : vector<8x128xf32>
    %65 = math.tanh %59 : vector<8x128xf32>
    %66 = vector.extract_strided_slice %64 {offsets = [0, 0], sizes = [8, 32], strides = [1, 1]} : vector<8x128xf32> to vector<8x32xf32>
    %67 = vector.extract_strided_slice %64 {offsets = [0, 32], sizes = [8, 32], strides = [1, 1]} : vector<8x128xf32> to vector<8x32xf32>
    %68 = vector.extract_strided_slice %65 {offsets = [0, 64], sizes = [8, 32], strides = [1, 1]} : vector<8x128xf32> to vector<8x32xf32>
    %69 = vector.extract_strided_slice %64 {offsets = [0, 96], sizes = [8, 32], strides = [1, 1]} : vector<8x128xf32> to vector<8x32xf32>
    %70 = arith.mulf %67, %31 : vector<8x32xf32>
    %71 = arith.mulf %66, %68 : vector<8x32xf32>
    %72 = arith.addf %70, %71 : vector<8x32xf32>
    %73 = math.tanh %72 : vector<8x32xf32>
    %74 = arith.mulf %69, %73 : vector<8x32xf32>
    %75 = arith.index_cast %c0_i32 : i32 to index
    %c0_36 = arith.constant 0 : index
    %c0_37 = arith.constant 0 : index
    %76 = vector.load %arg12[%75, %c0_36, %c0_37] : memref<4x8x32xf32, #tpu.memory_space<vmem>>, vector<1x8x32xf32>
    %77 = vector.shape_cast %76 : vector<1x8x32xf32> to vector<8x32xf32>
    %78 = vector.shape_cast %54 : vector<8x32xf32> to vector<1x8x32xf32>
    tpu.vector_store %arg12[%75, %c0_36, %c0_37], %78 {strides = array<i32>} : memref<4x8x32xf32, #tpu.memory_space<vmem>>, vector<1x8x32xf32>,
    %79 = arith.index_cast %32 : i32 to index
    %c0_38 = arith.constant 0 : index
    %c0_39 = arith.constant 0 : index
    %80 = vector.load %arg13[%79, %c0_38, %c0_39] : memref<4x8x32xf32, #tpu.memory_space<vmem>>, vector<1x8x32xf32>
    %81 = vector.shape_cast %80 : vector<1x8x32xf32> to vector<8x32xf32>
    %82 = vector.shape_cast %74 : vector<8x32xf32> to vector<1x8x32xf32>
    tpu.vector_store %arg13[%79, %c0_38, %c0_39], %82 {strides = array<i32>} : memref<4x8x32xf32, #tpu.memory_space<vmem>>, vector<1x8x32xf32>,
    %c1_i32 = arith.constant 1 : i32
    %c3_i32_40 = arith.constant 3 : i32
    %83 = arith.subi %c3_i32_40, %c1_i32 : i32
    %84 = tpu.concatenate %54, %74 in 1 : vector<8x32xf32>, vector<8x32xf32> -> vector<8x64xf32>
    %cst_41 = arith.constant dense<0.000000e+00> : vector<8x256xf32>
    %85 = tpu.matmul %84, %30, %cst_41 {dimension_numbers = #tpu.dot_dimension_numbers<[1], [0], [0], [1], [0, 0, 1, 1], [], []>} : vector<8x64xf32>, vector<64x256xf32>, vector<8x256xf32> -> vector<8x256xf32>
    %86 = arith.index_cast %c1_i32 : i32 to index
    %c0_42 = arith.constant 0 : index
    %c0_43 = arith.constant 0 : index
    %87 = vector.load %arg11[%86, %c0_42, %c0_43] : memref<4x8x256xf32, #tpu.memory_space<vmem>>, vector<1x8x128xf32>
    %88 = vector.shape_cast %87 : vector<1x8x128xf32> to vector<8x128xf32>
    %89 = vector.extract_strided_slice %85 {offsets = [0, 0], sizes = [8, 128], strides = [1, 1]} : vector<8x256xf32> to vector<8x128xf32>
    %90 = arith.addf %88, %89 : vector<8x128xf32>
    %91 = arith.negf %90 : vector<8x128xf32>
    %92 = math.exp %91 : vector<8x128xf32>
    %cst_44 = arith.constant 1.000000e+00 : f32
    %93 = vector.broadcast %cst_44 : f32 to vector<8x128xf32>
    %94 = arith.addf %93, %92 : vector<8x128xf32>
    %95 = arith.divf %93, %94 : vector<8x128xf32>
    %96 = math.tanh %90 : vector<8x128xf32>
    %97 = vector.extract_strided_slice %95 {offsets = [0, 0], sizes = [8, 32], strides = [1, 1]} : vector<8x128xf32> to vector<8x32xf32>
    %98 = vector.extract_strided_slice %95 {offsets = [0, 32], sizes = [8, 32], strides = [1, 1]} : vector<8x128xf32> to vector<8x32xf32>
    %99 = vector.extract_strided_slice %96 {offsets = [0, 64], sizes = [8, 32], strides = [1, 1]} : vector<8x128xf32> to vector<8x32xf32>
    %100 = vector.extract_strided_slice %95 {offsets = [0, 96], sizes = [8, 32], strides = [1, 1]} : vector<8x128xf32> to vector<8x32xf32>
    %101 = arith.mulf %98, %52 : vector<8x32xf32>
    %102 = arith.mulf %97, %99 : vector<8x32xf32>
    %103 = arith.addf %101, %102 : vector<8x32xf32>
    %104 = math.tanh %103 : vector<8x32xf32>
    %105 = arith.mulf %100, %104 : vector<8x32xf32>
    %106 = arith.index_cast %83 : i32 to index
    %c0_45 = arith.constant 0 : index
    %c128_46 = arith.constant 128 : index
    %107 = vector.load %arg11[%106, %c0_45, %c128_46] : memref<4x8x256xf32, #tpu.memory_space<vmem>>, vector<1x8x128xf32>
    %108 = vector.shape_cast %107 : vector<1x8x128xf32> to vector<8x128xf32>
    %109 = vector.extract_strided_slice %85 {offsets = [0, 128], sizes = [8, 128], strides = [1, 1]} : vector<8x256xf32> to vector<8x128xf32>
    %110 = arith.addf %108, %109 : vector<8x128xf32>
    %111 = arith.negf %110 : vector<8x128xf32>
    %112 = math.exp %111 : vector<8x128xf32>
    %cst_47 = arith.constant 1.000000e+00 : f32
    %113 = vector.broadcast %cst_47 : f32 to vector<8x128xf32>
    %114 = arith.addf %113, %112 : vector<8x128xf32>
    %115 = arith.divf %113, %114 : vector<8x128xf32>
    %116 = math.tanh %110 : vector<8x128xf32>
    %117 = vector.extract_strided_slice %115 {offsets = [0, 0], sizes = [8, 32], strides = [1, 1]} : vector<8x128xf32> to vector<8x32xf32>
    %118 = vector.extract_strided_slice %115 {offsets = [0, 32], sizes = [8, 32], strides = [1, 1]} : vector<8x128xf32> to vector<8x32xf32>
    %119 = vector.extract_strided_slice %116 {offsets = [0, 64], sizes = [8, 32], strides = [1, 1]} : vector<8x128xf32> to vector<8x32xf32>
    %120 = vector.extract_strided_slice %115 {offsets = [0, 96], sizes = [8, 32], strides = [1, 1]} : vector<8x128xf32> to vector<8x32xf32>
    %121 = arith.mulf %118, %72 : vector<8x32xf32>
    %122 = arith.mulf %117, %119 : vector<8x32xf32>
    %123 = arith.addf %121, %122 : vector<8x32xf32>
    %124 = math.tanh %123 : vector<8x32xf32>
    %125 = arith.mulf %120, %124 : vector<8x32xf32>
    %126 = arith.index_cast %c1_i32 : i32 to index
    %c0_48 = arith.constant 0 : index
    %c0_49 = arith.constant 0 : index
    %127 = vector.load %arg12[%126, %c0_48, %c0_49] : memref<4x8x32xf32, #tpu.memory_space<vmem>>, vector<1x8x32xf32>
    %128 = vector.shape_cast %127 : vector<1x8x32xf32> to vector<8x32xf32>
    %129 = vector.shape_cast %105 : vector<8x32xf32> to vector<1x8x32xf32>
    tpu.vector_store %arg12[%126, %c0_48, %c0_49], %129 {strides = array<i32>} : memref<4x8x32xf32, #tpu.memory_space<vmem>>, vector<1x8x32xf32>,
    %130 = arith.index_cast %83 : i32 to index
    %c0_50 = arith.constant 0 : index
    %c0_51 = arith.constant 0 : index
    %131 = vector.load %arg13[%130, %c0_50, %c0_51] : memref<4x8x32xf32, #tpu.memory_space<vmem>>, vector<1x8x32xf32>
    %132 = vector.shape_cast %131 : vector<1x8x32xf32> to vector<8x32xf32>
    %133 = vector.shape_cast %125 : vector<8x32xf32> to vector<1x8x32xf32>
    tpu.vector_store %arg13[%130, %c0_50, %c0_51], %133 {strides = array<i32>} : memref<4x8x32xf32, #tpu.memory_space<vmem>>, vector<1x8x32xf32>,
    %c2_i32 = arith.constant 2 : i32
    %c3_i32_52 = arith.constant 3 : i32
    %134 = arith.subi %c3_i32_52, %c2_i32 : i32
    %135 = tpu.concatenate %105, %125 in 1 : vector<8x32xf32>, vector<8x32xf32> -> vector<8x64xf32>
    %cst_53 = arith.constant dense<0.000000e+00> : vector<8x256xf32>
    %136 = tpu.matmul %135, %30, %cst_53 {dimension_numbers = #tpu.dot_dimension_numbers<[1], [0], [0], [1], [0, 0, 1, 1], [], []>} : vector<8x64xf32>, vector<64x256xf32>, vector<8x256xf32> -> vector<8x256xf32>
    %137 = arith.index_cast %c2_i32 : i32 to index
    %c0_54 = arith.constant 0 : index
    %c0_55 = arith.constant 0 : index
    %138 = vector.load %arg11[%137, %c0_54, %c0_55] : memref<4x8x256xf32, #tpu.memory_space<vmem>>, vector<1x8x128xf32>
    %139 = vector.shape_cast %138 : vector<1x8x128xf32> to vector<8x128xf32>
    %140 = vector.extract_strided_slice %136 {offsets = [0, 0], sizes = [8, 128], strides = [1, 1]} : vector<8x256xf32> to vector<8x128xf32>
    %141 = arith.addf %139, %140 : vector<8x128xf32>
    %142 = arith.negf %141 : vector<8x128xf32>
    %143 = math.exp %142 : vector<8x128xf32>
    %cst_56 = arith.constant 1.000000e+00 : f32
    %144 = vector.broadcast %cst_56 : f32 to vector<8x128xf32>
    %145 = arith.addf %144, %143 : vector<8x128xf32>
    %146 = arith.divf %144, %145 : vector<8x128xf32>
    %147 = math.tanh %141 : vector<8x128xf32>
    %148 = vector.extract_strided_slice %146 {offsets = [0, 0], sizes = [8, 32], strides = [1, 1]} : vector<8x128xf32> to vector<8x32xf32>
    %149 = vector.extract_strided_slice %146 {offsets = [0, 32], sizes = [8, 32], strides = [1, 1]} : vector<8x128xf32> to vector<8x32xf32>
    %150 = vector.extract_strided_slice %147 {offsets = [0, 64], sizes = [8, 32], strides = [1, 1]} : vector<8x128xf32> to vector<8x32xf32>
    %151 = vector.extract_strided_slice %146 {offsets = [0, 96], sizes = [8, 32], strides = [1, 1]} : vector<8x128xf32> to vector<8x32xf32>
    %152 = arith.mulf %149, %103 : vector<8x32xf32>
    %153 = arith.mulf %148, %150 : vector<8x32xf32>
    %154 = arith.addf %152, %153 : vector<8x32xf32>
    %155 = math.tanh %154 : vector<8x32xf32>
    %156 = arith.mulf %151, %155 : vector<8x32xf32>
    %157 = arith.index_cast %134 : i32 to index
    %c0_57 = arith.constant 0 : index
    %c128_58 = arith.constant 128 : index
    %158 = vector.load %arg11[%157, %c0_57, %c128_58] : memref<4x8x256xf32, #tpu.memory_space<vmem>>, vector<1x8x128xf32>
    %159 = vector.shape_cast %158 : vector<1x8x128xf32> to vector<8x128xf32>
    %160 = vector.extract_strided_slice %136 {offsets = [0, 128], sizes = [8, 128], strides = [1, 1]} : vector<8x256xf32> to vector<8x128xf32>
    %161 = arith.addf %159, %160 : vector<8x128xf32>
    %162 = arith.negf %161 : vector<8x128xf32>
    %163 = math.exp %162 : vector<8x128xf32>
    %cst_59 = arith.constant 1.000000e+00 : f32
    %164 = vector.broadcast %cst_59 : f32 to vector<8x128xf32>
    %165 = arith.addf %164, %163 : vector<8x128xf32>
    %166 = arith.divf %164, %165 : vector<8x128xf32>
    %167 = math.tanh %161 : vector<8x128xf32>
    %168 = vector.extract_strided_slice %166 {offsets = [0, 0], sizes = [8, 32], strides = [1, 1]} : vector<8x128xf32> to vector<8x32xf32>
    %169 = vector.extract_strided_slice %166 {offsets = [0, 32], sizes = [8, 32], strides = [1, 1]} : vector<8x128xf32> to vector<8x32xf32>
    %170 = vector.extract_strided_slice %167 {offsets = [0, 64], sizes = [8, 32], strides = [1, 1]} : vector<8x128xf32> to vector<8x32xf32>
    %171 = vector.extract_strided_slice %166 {offsets = [0, 96], sizes = [8, 32], strides = [1, 1]} : vector<8x128xf32> to vector<8x32xf32>
    %172 = arith.mulf %169, %123 : vector<8x32xf32>
    %173 = arith.mulf %168, %170 : vector<8x32xf32>
    %174 = arith.addf %172, %173 : vector<8x32xf32>
    %175 = math.tanh %174 : vector<8x32xf32>
    %176 = arith.mulf %171, %175 : vector<8x32xf32>
    %177 = arith.index_cast %c2_i32 : i32 to index
    %c0_60 = arith.constant 0 : index
    %c0_61 = arith.constant 0 : index
    %178 = vector.load %arg12[%177, %c0_60, %c0_61] : memref<4x8x32xf32, #tpu.memory_space<vmem>>, vector<1x8x32xf32>
    %179 = vector.shape_cast %178 : vector<1x8x32xf32> to vector<8x32xf32>
    %180 = vector.shape_cast %156 : vector<8x32xf32> to vector<1x8x32xf32>
    tpu.vector_store %arg12[%177, %c0_60, %c0_61], %180 {strides = array<i32>} : memref<4x8x32xf32, #tpu.memory_space<vmem>>, vector<1x8x32xf32>,
    %181 = arith.index_cast %134 : i32 to index
    %c0_62 = arith.constant 0 : index
    %c0_63 = arith.constant 0 : index
    %182 = vector.load %arg13[%181, %c0_62, %c0_63] : memref<4x8x32xf32, #tpu.memory_space<vmem>>, vector<1x8x32xf32>
    %183 = vector.shape_cast %182 : vector<1x8x32xf32> to vector<8x32xf32>
    %184 = vector.shape_cast %176 : vector<8x32xf32> to vector<1x8x32xf32>
    tpu.vector_store %arg13[%181, %c0_62, %c0_63], %184 {strides = array<i32>} : memref<4x8x32xf32, #tpu.memory_space<vmem>>, vector<1x8x32xf32>,
    %c3_i32_64 = arith.constant 3 : i32
    %c3_i32_65 = arith.constant 3 : i32
    %185 = arith.subi %c3_i32_65, %c3_i32_64 : i32
    %186 = tpu.concatenate %156, %176 in 1 : vector<8x32xf32>, vector<8x32xf32> -> vector<8x64xf32>
    %cst_66 = arith.constant dense<0.000000e+00> : vector<8x256xf32>
    %187 = tpu.matmul %186, %30, %cst_66 {dimension_numbers = #tpu.dot_dimension_numbers<[1], [0], [0], [1], [0, 0, 1, 1], [], []>} : vector<8x64xf32>, vector<64x256xf32>, vector<8x256xf32> -> vector<8x256xf32>
    %188 = arith.index_cast %c3_i32_64 : i32 to index
    %c0_67 = arith.constant 0 : index
    %c0_68 = arith.constant 0 : index
    %189 = vector.load %arg11[%188, %c0_67, %c0_68] : memref<4x8x256xf32, #tpu.memory_space<vmem>>, vector<1x8x128xf32>
    %190 = vector.shape_cast %189 : vector<1x8x128xf32> to vector<8x128xf32>
    %191 = vector.extract_strided_slice %187 {offsets = [0, 0], sizes = [8, 128], strides = [1, 1]} : vector<8x256xf32> to vector<8x128xf32>
    %192 = arith.addf %190, %191 : vector<8x128xf32>
    %193 = arith.negf %192 : vector<8x128xf32>
    %194 = math.exp %193 : vector<8x128xf32>
    %cst_69 = arith.constant 1.000000e+00 : f32
    %195 = vector.broadcast %cst_69 : f32 to vector<8x128xf32>
    %196 = arith.addf %195, %194 : vector<8x128xf32>
    %197 = arith.divf %195, %196 : vector<8x128xf32>
    %198 = math.tanh %192 : vector<8x128xf32>
    %199 = vector.extract_strided_slice %197 {offsets = [0, 0], sizes = [8, 32], strides = [1, 1]} : vector<8x128xf32> to vector<8x32xf32>
    %200 = vector.extract_strided_slice %197 {offsets = [0, 32], sizes = [8, 32], strides = [1, 1]} : vector<8x128xf32> to vector<8x32xf32>
    %201 = vector.extract_strided_slice %198 {offsets = [0, 64], sizes = [8, 32], strides = [1, 1]} : vector<8x128xf32> to vector<8x32xf32>
    %202 = vector.extract_strided_slice %197 {offsets = [0, 96], sizes = [8, 32], strides = [1, 1]} : vector<8x128xf32> to vector<8x32xf32>
    %203 = arith.mulf %200, %154 : vector<8x32xf32>
    %204 = arith.mulf %199, %201 : vector<8x32xf32>
    %205 = arith.addf %203, %204 : vector<8x32xf32>
    %206 = math.tanh %205 : vector<8x32xf32>
    %207 = arith.mulf %202, %206 : vector<8x32xf32>
    %208 = arith.index_cast %185 : i32 to index
    %c0_70 = arith.constant 0 : index
    %c128_71 = arith.constant 128 : index
    %209 = vector.load %arg11[%208, %c0_70, %c128_71] : memref<4x8x256xf32, #tpu.memory_space<vmem>>, vector<1x8x128xf32>
    %210 = vector.shape_cast %209 : vector<1x8x128xf32> to vector<8x128xf32>
    %211 = vector.extract_strided_slice %187 {offsets = [0, 128], sizes = [8, 128], strides = [1, 1]} : vector<8x256xf32> to vector<8x128xf32>
    %212 = arith.addf %210, %211 : vector<8x128xf32>
    %213 = arith.negf %212 : vector<8x128xf32>
    %214 = math.exp %213 : vector<8x128xf32>
    %cst_72 = arith.constant 1.000000e+00 : f32
    %215 = vector.broadcast %cst_72 : f32 to vector<8x128xf32>
    %216 = arith.addf %215, %214 : vector<8x128xf32>
    %217 = arith.divf %215, %216 : vector<8x128xf32>
    %218 = math.tanh %212 : vector<8x128xf32>
    %219 = vector.extract_strided_slice %217 {offsets = [0, 0], sizes = [8, 32], strides = [1, 1]} : vector<8x128xf32> to vector<8x32xf32>
    %220 = vector.extract_strided_slice %217 {offsets = [0, 32], sizes = [8, 32], strides = [1, 1]} : vector<8x128xf32> to vector<8x32xf32>
    %221 = vector.extract_strided_slice %218 {offsets = [0, 64], sizes = [8, 32], strides = [1, 1]} : vector<8x128xf32> to vector<8x32xf32>
    %222 = vector.extract_strided_slice %217 {offsets = [0, 96], sizes = [8, 32], strides = [1, 1]} : vector<8x128xf32> to vector<8x32xf32>
    %223 = arith.mulf %220, %174 : vector<8x32xf32>
    %224 = arith.mulf %219, %221 : vector<8x32xf32>
    %225 = arith.addf %223, %224 : vector<8x32xf32>
    %226 = math.tanh %225 : vector<8x32xf32>
    %227 = arith.mulf %222, %226 : vector<8x32xf32>
    %228 = arith.index_cast %c3_i32_64 : i32 to index
    %c0_73 = arith.constant 0 : index
    %c0_74 = arith.constant 0 : index
    %229 = vector.load %arg12[%228, %c0_73, %c0_74] : memref<4x8x32xf32, #tpu.memory_space<vmem>>, vector<1x8x32xf32>
    %230 = vector.shape_cast %229 : vector<1x8x32xf32> to vector<8x32xf32>
    %231 = vector.shape_cast %207 : vector<8x32xf32> to vector<1x8x32xf32>
    tpu.vector_store %arg12[%228, %c0_73, %c0_74], %231 {strides = array<i32>} : memref<4x8x32xf32, #tpu.memory_space<vmem>>, vector<1x8x32xf32>,
    %232 = arith.index_cast %185 : i32 to index
    %c0_75 = arith.constant 0 : index
    %c0_76 = arith.constant 0 : index
    %233 = vector.load %arg13[%232, %c0_75, %c0_76] : memref<4x8x32xf32, #tpu.memory_space<vmem>>, vector<1x8x32xf32>
    %234 = vector.shape_cast %233 : vector<1x8x32xf32> to vector<8x32xf32>
    %235 = vector.shape_cast %227 : vector<8x32xf32> to vector<1x8x32xf32>
    tpu.vector_store %arg13[%232, %c0_75, %c0_76], %235 {strides = array<i32>} : memref<4x8x32xf32, #tpu.memory_space<vmem>>, vector<1x8x32xf32>,
    %c4_i32 = arith.constant 4 : i32
    %c0_77 = arith.constant 0 : index
    %c0_78 = arith.constant 0 : index
    %c0_79 = arith.constant 0 : index
    %236 = vector.load %arg12[%c0_77, %c0_78, %c0_79] : memref<4x8x32xf32, #tpu.memory_space<vmem>>, vector<4x8x32xf32>
    %c0_80 = arith.constant 0 : index
    %c0_81 = arith.constant 0 : index
    %c0_82 = arith.constant 0 : index
    %237 = vector.load %arg13[%c0_80, %c0_81, %c0_82] : memref<4x8x32xf32, #tpu.memory_space<vmem>>, vector<4x8x32xf32>
    %238 = vector.shape_cast %2 : vector<1x32xf32> to vector<1x1x32xf32>
    %239 = vector.broadcast %238 : vector<1x1x32xf32> to vector<4x8x32xf32>
    %240 = arith.mulf %236, %239 : vector<4x8x32xf32>
    %cst_83 = arith.constant dense<0.000000e+00> : vector<4x8xf32>
    %241 = vector.multi_reduction <add>, %240, %cst_83 [2] : vector<4x8x32xf32> to vector<4x8xf32>
    %242 = vector.shape_cast %241 : vector<4x8xf32> to vector<4x8x1xf32>
    %243 = vector.shape_cast %3 : vector<1x32xf32> to vector<1x1x32xf32>
    %244 = vector.broadcast %243 : vector<1x1x32xf32> to vector<4x8x32xf32>
    %245 = arith.mulf %237, %244 : vector<4x8x32xf32>
    %cst_84 = arith.constant dense<0.000000e+00> : vector<4x8xf32>
    %246 = vector.multi_reduction <add>, %245, %cst_84 [2] : vector<4x8x32xf32> to vector<4x8xf32>
    %247 = vector.shape_cast %246 : vector<4x8xf32> to vector<4x8x1xf32>
    %248 = arith.addf %242, %247 : vector<4x8x1xf32>
    %249 = vector.shape_cast %4 : vector<1x1xf32> to vector<1x1x1xf32>
    %250 = vector.broadcast %249 : vector<1x1x1xf32> to vector<4x8x1xf32>
    %251 = arith.addf %248, %250 : vector<4x8x1xf32>
    %cst_85 = arith.constant dense<0xFF800000> : vector<8x1xf32>
    %252 = vector.multi_reduction <maximumf>, %251, %cst_85 [0] : vector<4x8x1xf32> to vector<8x1xf32>
    %253 = vector.shape_cast %252 : vector<8x1xf32> to vector<1x8x1xf32>
    %254 = vector.broadcast %253 : vector<1x8x1xf32> to vector<4x8x1xf32>
    %255 = arith.subf %251, %254 : vector<4x8x1xf32>
    %256 = math.exp %255 : vector<4x8x1xf32>
    %cst_86 = arith.constant dense<0.000000e+00> : vector<8x1xf32>
    %257 = vector.multi_reduction <add>, %256, %cst_86 [0] : vector<4x8x1xf32> to vector<8x1xf32>
    %258 = vector.shape_cast %257 : vector<8x1xf32> to vector<1x8x1xf32>
    %259 = vector.broadcast %258 : vector<1x8x1xf32> to vector<4x8x1xf32>
    %260 = arith.divf %256, %259 : vector<4x8x1xf32>
    %261 = vector.broadcast %260 : vector<4x8x1xf32> to vector<4x8x32xf32>
    %262 = arith.mulf %261, %236 : vector<4x8x32xf32>
    %cst_87 = arith.constant dense<0.000000e+00> : vector<8x32xf32>
    %263 = vector.multi_reduction <add>, %262, %cst_87 [0] : vector<4x8x32xf32> to vector<8x32xf32>
    %264 = vector.broadcast %260 : vector<4x8x1xf32> to vector<4x8x32xf32>
    %265 = arith.mulf %264, %237 : vector<4x8x32xf32>
    %cst_88 = arith.constant dense<0.000000e+00> : vector<8x32xf32>
    %266 = vector.multi_reduction <add>, %265, %cst_88 [0] : vector<4x8x32xf32> to vector<8x32xf32>
    %c0_89 = arith.constant 0 : index
    %c0_90 = arith.constant 0 : index
    %267 = vector.load %arg3[%c0_89, %c0_90] : memref<8x2xf32, #tpu.memory_space<vmem>>, vector<8x2xf32>
    %c0_91 = arith.constant 0 : index
    %c0_92 = arith.constant 0 : index
    %268 = vector.load %arg8[%c0_91, %c0_92] : memref<2x16xf32, #tpu.memory_space<vmem>>, vector<2x16xf32>
    %cst_93 = arith.constant dense<0.000000e+00> : vector<8x16xf32>
    %269 = tpu.matmul %267, %268, %cst_93 {dimension_numbers = #tpu.dot_dimension_numbers<[1], [0], [0], [1], [0, 0, 1, 1], [], []>} : vector<8x2xf32>, vector<2x16xf32>, vector<8x16xf32> -> vector<8x16xf32>
    %270 = vector.broadcast %5 : vector<1x16xf32> to vector<8x16xf32>
    %271 = arith.addf %269, %270 : vector<8x16xf32>
    %cst_94 = arith.constant 0.000000e+00 : f32
    %272 = vector.broadcast %cst_94 : f32 to vector<8x16xf32>
    %273 = arith.maximumf %271, %272 : vector<8x16xf32>
    %c0_95 = arith.constant 0 : index
    %c0_96 = arith.constant 0 : index
    %274 = vector.load %arg7[%c0_95, %c0_96] : memref<112x128xf32, #tpu.memory_space<vmem>>, vector<32x32xf32>
    %cst_97 = arith.constant dense<0.000000e+00> : vector<8x32xf32>
    %275 = tpu.matmul %263, %274, %cst_97 {dimension_numbers = #tpu.dot_dimension_numbers<[1], [0], [0], [1], [0, 0, 1, 1], [], []>} : vector<8x32xf32>, vector<32x32xf32>, vector<8x32xf32> -> vector<8x32xf32>
    %c32_98 = arith.constant 32 : index
    %c0_99 = arith.constant 0 : index
    %276 = vector.load %arg7[%c32_98, %c0_99] : memref<112x128xf32, #tpu.memory_space<vmem>>, vector<32x32xf32>
    %cst_100 = arith.constant dense<0.000000e+00> : vector<8x32xf32>
    %277 = tpu.matmul %266, %276, %cst_100 {dimension_numbers = #tpu.dot_dimension_numbers<[1], [0], [0], [1], [0, 0, 1, 1], [], []>} : vector<8x32xf32>, vector<32x32xf32>, vector<8x32xf32> -> vector<8x32xf32>
    %278 = arith.addf %275, %277 : vector<8x32xf32>
    %c64 = arith.constant 64 : index
    %c0_101 = arith.constant 0 : index
    %279 = vector.load %arg7[%c64, %c0_101] : memref<112x128xf32, #tpu.memory_space<vmem>>, vector<16x32xf32>
    %cst_102 = arith.constant dense<0.000000e+00> : vector<8x32xf32>
    %280 = tpu.matmul %273, %279, %cst_102 {dimension_numbers = #tpu.dot_dimension_numbers<[1], [0], [0], [1], [0, 0, 1, 1], [], []>} : vector<8x16xf32>, vector<16x32xf32>, vector<8x32xf32> -> vector<8x32xf32>
    %281 = arith.addf %278, %280 : vector<8x32xf32>
    %282 = vector.broadcast %6 : vector<1x32xf32> to vector<8x32xf32>
    %283 = arith.addf %281, %282 : vector<8x32xf32>
    %cst_103 = arith.constant 0.000000e+00 : f32
    %284 = vector.broadcast %cst_103 : f32 to vector<8x32xf32>
    %285 = arith.maximumf %283, %284 : vector<8x32xf32>
    %c80 = arith.constant 80 : index
    %c0_104 = arith.constant 0 : index
    %286 = vector.load %arg7[%c80, %c0_104] : memref<112x128xf32, #tpu.memory_space<vmem>>, vector<32x128xf32>
    %cst_105 = arith.constant dense<0.000000e+00> : vector<8x128xf32>
    %287 = tpu.matmul %285, %286, %cst_105 {dimension_numbers = #tpu.dot_dimension_numbers<[1], [0], [0], [1], [0, 0, 1, 1], [], []>} : vector<8x32xf32>, vector<32x128xf32>, vector<8x128xf32> -> vector<8x128xf32>
    %288 = vector.broadcast %7 : vector<1x128xf32> to vector<8x128xf32>
    %289 = arith.addf %287, %288 : vector<8x128xf32>
    %c0_106 = arith.constant 0 : index
    %c0_107 = arith.constant 0 : index
    %290 = vector.load %arg10[%c0_106, %c0_107] : memref<8x128xf32, #tpu.memory_space<vmem>>, vector<8x128xf32>
    tpu.vector_store %arg10[%c0_106, %c0_107], %289 {strides = array<i32>} : memref<8x128xf32, #tpu.memory_space<vmem>>, vector<8x128xf32>,
    return
  }
  func.func @transform_0(%arg0: i32) -> (i32, i32, i32, i32) {
    %c0_i32 = arith.constant 0 : i32
    %c0_i32_0 = arith.constant 0 : i32
    %c0_i32_1 = arith.constant 0 : i32
    %c0_i32_2 = arith.constant 0 : i32
    return %c0_i32, %arg0, %c0_i32_0, %c0_i32_1 : i32, i32, i32, i32
  }
  func.func @transform_1(%arg0: i32) -> (i32, i32, i32, i32) {
    %c0_i32 = arith.constant 0 : i32
    %c0_i32_0 = arith.constant 0 : i32
    %c0_i32_1 = arith.constant 0 : i32
    %c0_i32_2 = arith.constant 0 : i32
    return %c0_i32, %arg0, %c0_i32_0, %c0_i32_1 : i32, i32, i32, i32
  }
  func.func @transform_2(%arg0: i32) -> (i32, i32) {
    %c0_i32 = arith.constant 0 : i32
    %c0_i32_0 = arith.constant 0 : i32
    return %arg0, %c0_i32 : i32, i32
  }
  func.func @transform_3(%arg0: i32) -> (i32, i32) {
    %c0_i32 = arith.constant 0 : i32
    %c0_i32_0 = arith.constant 0 : i32
    %c0_i32_1 = arith.constant 0 : i32
    return %c0_i32, %c0_i32_0 : i32, i32
  }
  func.func @transform_4(%arg0: i32) -> (i32, i32) {
    %c0_i32 = arith.constant 0 : i32
    %c0_i32_0 = arith.constant 0 : i32
    %c0_i32_1 = arith.constant 0 : i32
    return %c0_i32, %c0_i32_0 : i32, i32
  }
  func.func @transform_5(%arg0: i32) -> (i32, i32) {
    %c0_i32 = arith.constant 0 : i32
    %c0_i32_0 = arith.constant 0 : i32
    %c0_i32_1 = arith.constant 0 : i32
    return %c0_i32, %c0_i32_0 : i32, i32
  }
  func.func @transform_6(%arg0: i32) -> (i32, i32) {
    %c0_i32 = arith.constant 0 : i32
    %c0_i32_0 = arith.constant 0 : i32
    %c0_i32_1 = arith.constant 0 : i32
    return %c0_i32, %c0_i32_0 : i32, i32
  }
  func.func @transform_7(%arg0: i32) -> (i32, i32) {
    %c0_i32 = arith.constant 0 : i32
    %c0_i32_0 = arith.constant 0 : i32
    %c0_i32_1 = arith.constant 0 : i32
    return %c0_i32, %c0_i32_0 : i32, i32
  }
  func.func @transform_8(%arg0: i32) -> (i32, i32) {
    %c0_i32 = arith.constant 0 : i32
    %c0_i32_0 = arith.constant 0 : i32
    %c0_i32_1 = arith.constant 0 : i32
    return %c0_i32, %c0_i32_0 : i32, i32
  }
  func.func @transform_9(%arg0: i32) -> (i32, i32) {
    %c0_i32 = arith.constant 0 : i32
    %c0_i32_0 = arith.constant 0 : i32
    return %arg0, %c0_i32 : i32, i32
  }
}

</mosaic_0001>

<bundles_post_ra>
// kernel: tpu_custom_call.1
= control target key start
LH: loop header
LB: loop body
LE: loop exit
PB: predicated region body
PF: predicated region fallthrough
CT: control target
= control target key end

     0   :  { %s6549_s0 = inlined_call_operand.vmem [shape: f32[4,16,16,32], index: 0, kind: input, shape index: {}]   ;;  %s6550_s1 = inlined_call_operand.vmem [shape: f32[4,16,16,1], index: 1, kind: input, shape index: {}]   ;;  %s6551_s2 = inlined_call_operand.vmem [shape: f32[16,2], index: 2, kind: input, shape index: {}]   ;;  %s6552_s3 = inlined_call_operand.hbm [shape: f32[32,32], index: 3, kind: input, shape index: {}]   ;;  %s6553_s4 = inlined_call_operand.vmem [shape: f32[32,256], index: 4, kind: input, shape index: {}]   ;;  %s6554_s5 = inlined_call_operand.hbm [shape: f32[64,256], index: 5, kind: input, shape index: {}]   ;;  %s6555_s6 = inlined_call_operand.hbm [shape: f32[112,128], index: 6, kind: input, shape index: {}]   ;;  %s6556_s7 = inlined_call_operand.vmem [shape: f32[2,16], index: 7, kind: input, shape index: {}]   ;;  %s6557_s8 = inlined_call_operand.vmem [shape: f32[8,256], index: 8, kind: input, shape index: {}]   ;;  %s6558_s9 = inlined_call_operand.hbm [shape: f32[16,128], index: 9, kind: output, shape index: {}]  }
   0x1   :  { %6564 = sst [smem:[#allocation20_spill]] %s6552_s3 }
   0x2   :  { %6565 = sst [smem:[#allocation21_spill]] %s6554_s5 }
   0x3   :  { %14 = vsyncpa [#allocation8], 0 }
   0x4   :  { %15 = vsyncpa [#allocation11], 0 }
   0x5   :  { %16 = vsyncpa [#allocation9], 0 }
   0x6   :  { %18 = vsyncpa [#allocation9 + $0x1], 0  ;;  %s4470_s30 = smov 0   ;;  %s4472_s10 = smov 0  }
   0x7   :  { %s4474_s11 = smov 0   ;;  %s4476_s12 = smov 0  }
   0x8 LB: > { %s4491_s13 = sadd.s32 4294967295, %s4406_s12   ;;  %s3955_s14 = sadd.s32 4294967294, %s4406_s12   ;;  %s4406_s12 = sphi %s4476_s12, %s6701_s12   ;;  %s4402_s11 = sphi %s4474_s11, %s6705_s11   ;;  %s4398_s10 = sphi %s4472_s10, %s6704_s10   ;;  %s4394_s30 = sphi %s4470_s30, %s6703_s30  }
   0x9   : > { %s4495_s15 = sadd.s32 1, %s4406_s12   ;;  %s31_s16 = sadd.s32 1, %s4402_s11 }
   0xa   : > { %6566 = sst [smem:[#allocation17_spill]] %s4495_s15  ;;  %s28_s17 = ssub.s32 %s4406_s12, %s4495_s15 }
   0xb   : > { %p38_p0 = scmp.ne.s32.totalorder %s4402_s11, %s4398_s10  ;;  %p29_p1 = scmp.eq.s32.totalorder %s28_s17, 0 }
   0xc   : > { %p39_p2 = scmp.eq.s32.totalorder %s4406_s12, 0  ;;  %p246_p3 = scmp.eq.s32.totalorder %s4491_s13, 1 }
   0xd   : > { %p251_p4 = scmp.ne.s32.totalorder %s4398_s10, %s4394_s30  ;;  %p252_p7 = scmp.eq.s32.totalorder %s3955_s14, 1 }
   0xe   : > { %s4507_s18 = scalar_select %p29_p1, %s4402_s11, %s31_s16  }
   0xf   : > { %p4509_p5 = por %p39_p2, %p38_p0  ;;  %p4513_p6 = por %p246_p3, %p38_p0 }
  0x10   : > { %6567 = sst [smem:[#allocation18_spill]] %s4507_s18  ;;  %p3956_p8 = scmp.ge.s32.totalorder %s4406_s12, 1 }
  0x11   : > { %p259_p9 = scmp.lt.s32.totalorder %s4406_s12, 3  ;;  %p4519_p10 = por %p252_p7, %p251_p4 }
  0x12   : > { %p4046_p11 = scmp.eq.s32.totalorder %s4491_s13, 0  ;;  %s6573_s5 = sld [smem:[#allocation21_spill]] }
  0x13   : > { %s6570_s21 = scalar_select %p4519_p10, 1, 0 }
  0x14   : > { %p4524_p12 = pnand %p3956_p8, %p259_p9  ;;  %s4408_s26 = smov [#allocation10]  }
  0x15   : > { %6571 = sst [smem:[#allocation19_spill]] %s6570_s21  ;;  %s289_s27 = sshll.u32 %s4408_s26, 4  ;;  %s290_s27 = int_to_ptr.vmem [resolvable:$true] %s289_s27 }
  0x16   : > { %p4032_p13 = pneg %p4524_p12  ;;  %s6575_s3 = sld [smem:[#allocation20_spill]] }
  0x17   : > { %s4409_s17 = smov 256   ;;  %s4410_s23 = smov 16  }
  0x18   : > { %s287_s25 = sshll.u32 %s6573_s5, 4  ;;  %p4535_p0 = pnand %p4046_p11, %p4032_p13  ;;  %s288_s25 = int_to_ptr.hbm [resolvable:$true] %s287_s25 }
  0x19   : > { %s4411_s24 = smov [#allocation7]   ;;  %s4412_s5 = smov 128  }
  0x1a   : > { %4038 = dma.hbm_to_vmem [thread:$0]  (!%p4535_p0), %s288_s25, 2048, %s290_s27, [#allocation11], %s4409_s17, %s4409_s17, %s4410_s23  }
  0x1b   : > { %s272_s26 = sshll.u32 %s4411_s24, 4  ;;  %s4413_s18 = smov 8   ;;  %s273_s26 = int_to_ptr.vmem [resolvable:$true] %s272_s26 }
  0x1c   : > { %s270_s16 = sshll.u32 %s6575_s3, 4  ;;  %s301_s29 = sshll.u32 %s6555_s6, 4  ;;  %s271_s16 = int_to_ptr.hbm [resolvable:$true] %s270_s16  ;;  %s302_s29 = int_to_ptr.hbm [resolvable:$true] %s301_s29 }
  0x1d   : > { %4035 = dma.hbm_to_vmem [thread:$0]  (!%p4535_p0), %s271_s16, 512, %s273_s26, [#allocation8], %s4412_s5, %s4412_s5, %s4413_s18  }
  0x1e   : > { %s4414_s14 = smov [#allocation12]   ;;  %p3960_p1 = scmp.ge.s32.totalorder %s4406_s12, 2 }
  0x1f   : > { %s303_s3 = sshll.u32 %s4414_s14, 4  ;;  %s304_s3 = int_to_ptr.vmem [resolvable:$true] %s303_s3 }
  0x20   : > { %4041 = dma.hbm_to_vmem [thread:$0]  (!%p4535_p0), %s302_s29, 1792, %s304_s3, [#allocation11], %s4412_s5, %s4412_s5, %s4413_s18  }
  0x21   : > { %319 = sbr.rel (%p3960_p1) target bundleno = 174 (0xae), region = 40 }
  0x26   : > { %322 = sbr.rel (!%p4509_p5) target bundleno = 106 (0x6a), region = 44  ;;  %s324_s25 = sand.u32 (%p4509_p5), 1, %s4402_s11  }
  0x27   : > { %s4015_s27 = sshll.u32 (%p4509_p5), %s4406_s12, 7  ;;  %s3961_s15 = sshll.u32 (%p4509_p5), %s324_s25, 9 }
  0x28   : > { %s4561_s17 = scalar_lea.vmem (%p4509_p5), %s6549_s0, %s4015_s27  ;;  %s4566_s3 = scalar_lea.vmem (%p4509_p5), [#allocation5], %s3961_s15 }
  0x29   : > { %v485_v0 = vld [vmem:[%s4561_s17] sm:$0xff] (%p4509_p5)  ;;  %v487_v1 = vld [vmem:[%s4561_s17 + $0x8] sm:$0xff] (%p4509_p5)  ;;  %v489_v2 = vld [vmem:[%s4561_s17 + $0x10] sm:$0xff] (%p4509_p5) }
  0x2a   : > { %486 = vst [vmem:[%s4566_s3] sm:$0xff] (%p4509_p5), %v485_v0  ;;  %v491_v3 = vld [vmem:[%s4561_s17 + $0x18] sm:$0xff] (%p4509_p5)  ;;  %v493_v4 = vld [vmem:[%s4561_s17 + $0x20] sm:$0xff] (%p4509_p5)  ;;  %v495_v5 = vld [vmem:[%s4561_s17 + $0x28] sm:$0xff] (%p4509_p5) }
  0x2b   : > { %488 = vst [vmem:[%s4566_s3 + $0x8] sm:$0xff] %v487_v1  ;;  %v497_v6 = vld [vmem:[%s4561_s17 + $0x30] sm:$0xff]  ;;  %v499_v7 = vld [vmem:[%s4561_s17 + $0x38] sm:$0xff]  ;;  %v501_v8 = vld [vmem:[%s4561_s17 + $0x40] sm:$0xff] }
  0x2c   : > { %490 = vst [vmem:[%s4566_s3 + $0x10] sm:$0xff] %v489_v2  ;;  %v503_v9 = vld [vmem:[%s4561_s17 + $0x48] sm:$0xff]  ;;  %v505_v10 = vld [vmem:[%s4561_s17 + $0x50] sm:$0xff]  ;;  %v507_v11 = vld [vmem:[%s4561_s17 + $0x58] sm:$0xff] }
  0x2d   : > { %492 = vst [vmem:[%s4566_s3 + $0x18] sm:$0xff] %v491_v3  ;;  %v509_v12 = vld [vmem:[%s4561_s17 + $0x60] sm:$0xff]  ;;  %v511_v13 = vld [vmem:[%s4561_s17 + $0x68] sm:$0xff]  ;;  %v513_v14 = vld [vmem:[%s4561_s17 + $0x70] sm:$0xff] }
  0x2e   : > { %494 = vst [vmem:[%s4566_s3 + $0x20] sm:$0xff] %v493_v4  ;;  %v515_v15 = vld [vmem:[%s4561_s17 + $0x78] sm:$0xff]  ;;  %v517_v16 = vld [vmem:[%s4561_s17 + $0x100] sm:$0xff]  ;;  %v519_v17 = vld [vmem:[%s4561_s17 + $0x108] sm:$0xff] }
  0x2f   : > { %496 = vst [vmem:[%s4566_s3 + $0x28] sm:$0xff] %v495_v5  ;;  %v521_v18 = vld [vmem:[%s4561_s17 + $0x110] sm:$0xff]  ;;  %v523_v19 = vld [vmem:[%s4561_s17 + $0x118] sm:$0xff]  ;;  %v525_v20 = vld [vmem:[%s4561_s17 + $0x120] sm:$0xff] }
  0x30   : > { %498 = vst [vmem:[%s4566_s3 + $0x30] sm:$0xff] %v497_v6  ;;  %v527_v21 = vld [vmem:[%s4561_s17 + $0x128] sm:$0xff]  ;;  %v529_v22 = vld [vmem:[%s4561_s17 + $0x130] sm:$0xff]  ;;  %v531_v23 = vld [vmem:[%s4561_s17 + $0x138] sm:$0xff] }
  0x31   : > { %500 = vst [vmem:[%s4566_s3 + $0x38] sm:$0xff] %v499_v7  ;;  %v533_v24 = vld [vmem:[%s4561_s17 + $0x140] sm:$0xff]  ;;  %v535_v25 = vld [vmem:[%s4561_s17 + $0x148] sm:$0xff]  ;;  %v537_v26 = vld [vmem:[%s4561_s17 + $0x150] sm:$0xff] }
  0x32   : > { %502 = vst [vmem:[%s4566_s3 + $0x40] sm:$0xff] %v501_v8  ;;  %v539_v27 = vld [vmem:[%s4561_s17 + $0x158] sm:$0xff]  ;;  %v541_v28 = vld [vmem:[%s4561_s17 + $0x160] sm:$0xff]  ;;  %v543_v29 = vld [vmem:[%s4561_s17 + $0x168] sm:$0xff] }
  0x33   : > { %504 = vst [vmem:[%s4566_s3 + $0x48] sm:$0xff] %v503_v9  ;;  %v545_v30 = vld [vmem:[%s4561_s17 + $0x170] sm:$0xff]  ;;  %v547_v31 = vld [vmem:[%s4561_s17 + $0x178] sm:$0xff]  ;;  %v549_v32 = vld [vmem:[%s4561_s17 + $0x200] sm:$0xff] }
  0x34   : > { %506 = vst [vmem:[%s4566_s3 + $0x50] sm:$0xff] %v505_v10  ;;  %v551_v33 = vld [vmem:[%s4561_s17 + $0x208] sm:$0xff]  ;;  %v553_v34 = vld [vmem:[%s4561_s17 + $0x210] sm:$0xff]  ;;  %v555_v35 = vld [vmem:[%s4561_s17 + $0x218] sm:$0xff] }
  0x35   : > { %508 = vst [vmem:[%s4566_s3 + $0x58] sm:$0xff] %v507_v11  ;;  %v557_v36 = vld [vmem:[%s4561_s17 + $0x220] sm:$0xff]  ;;  %v559_v37 = vld [vmem:[%s4561_s17 + $0x228] sm:$0xff]  ;;  %v561_v38 = vld [vmem:[%s4561_s17 + $0x230] sm:$0xff] }
  0x36   : > { %510 = vst [vmem:[%s4566_s3 + $0x60] sm:$0xff] %v509_v12  ;;  %v563_v39 = vld [vmem:[%s4561_s17 + $0x238] sm:$0xff]  ;;  %v565_v40 = vld [vmem:[%s4561_s17 + $0x240] sm:$0xff]  ;;  %v567_v41 = vld [vmem:[%s4561_s17 + $0x248] sm:$0xff] }
  0x37   : > { %512 = vst [vmem:[%s4566_s3 + $0x68] sm:$0xff] %v511_v13  ;;  %v569_v42 = vld [vmem:[%s4561_s17 + $0x250] sm:$0xff]  ;;  %v571_v43 = vld [vmem:[%s4561_s17 + $0x258] sm:$0xff]  ;;  %v573_v44 = vld [vmem:[%s4561_s17 + $0x260] sm:$0xff] }
  0x38   : > { %514 = vst [vmem:[%s4566_s3 + $0x70] sm:$0xff] %v513_v14  ;;  %v575_v45 = vld [vmem:[%s4561_s17 + $0x268] sm:$0xff]  ;;  %v577_v46 = vld [vmem:[%s4561_s17 + $0x270] sm:$0xff]  ;;  %v579_v47 = vld [vmem:[%s4561_s17 + $0x278] sm:$0xff] }
  0x39   : > { %516 = vst [vmem:[%s4566_s3 + $0x78] sm:$0xff] %v515_v15  ;;  %v581_v48 = vld [vmem:[%s4561_s17 + $0x300] sm:$0xff]  ;;  %v583_v49 = vld [vmem:[%s4561_s17 + $0x308] sm:$0xff]  ;;  %v585_v50 = vld [vmem:[%s4561_s17 + $0x310] sm:$0xff] }
  0x3a   : > { %518 = vst [vmem:[%s4566_s3 + $0x80] sm:$0xff] %v517_v16  ;;  %v587_v51 = vld [vmem:[%s4561_s17 + $0x318] sm:$0xff]  ;;  %v589_v52 = vld [vmem:[%s4561_s17 + $0x320] sm:$0xff]  ;;  %v591_v53 = vld [vmem:[%s4561_s17 + $0x328] sm:$0xff] }
  0x3b   : > { %520 = vst [vmem:[%s4566_s3 + $0x88] sm:$0xff] %v519_v17  ;;  %v593_v54 = vld [vmem:[%s4561_s17 + $0x330] sm:$0xff]  ;;  %v595_v55 = vld [vmem:[%s4561_s17 + $0x338] sm:$0xff]  ;;  %v597_v56 = vld [vmem:[%s4561_s17 + $0x340] sm:$0xff] }
  0x3c   : > { %522 = vst [vmem:[%s4566_s3 + $0x90] sm:$0xff] %v521_v18  ;;  %v599_v57 = vld [vmem:[%s4561_s17 + $0x348] sm:$0xff]  ;;  %v601_v58 = vld [vmem:[%s4561_s17 + $0x350] sm:$0xff]  ;;  %v603_v59 = vld [vmem:[%s4561_s17 + $0x358] sm:$0xff] }
  0x3d   : > { %524 = vst [vmem:[%s4566_s3 + $0x98] sm:$0xff] %v523_v19  ;;  %v605_v60 = vld [vmem:[%s4561_s17 + $0x360] sm:$0xff]  ;;  %v607_v61 = vld [vmem:[%s4561_s17 + $0x368] sm:$0xff]  ;;  %v609_v62 = vld [vmem:[%s4561_s17 + $0x370] sm:$0xff] }
  0x3e   : > { %526 = vst [vmem:[%s4566_s3 + $0xa0] sm:$0xff] %v525_v20  ;;  %v611_v63 = vld [vmem:[%s4561_s17 + $0x378] sm:$0xff] }
  0x3f   : > { %528 = vst [vmem:[%s4566_s3 + $0xa8] sm:$0xff] %v527_v21 }
  0x40   : > { %530 = vst [vmem:[%s4566_s3 + $0xb0] sm:$0xff] %v529_v22 }
  0x41   : > { %532 = vst [vmem:[%s4566_s3 + $0xb8] sm:$0xff] %v531_v23 }
  0x42   : > { %534 = vst [vmem:[%s4566_s3 + $0xc0] sm:$0xff] %v533_v24 }
  0x43   : > { %536 = vst [vmem:[%s4566_s3 + $0xc8] sm:$0xff] %v535_v25 }
  0x44   : > { %538 = vst [vmem:[%s4566_s3 + $0xd0] sm:$0xff] %v537_v26 }
  0x45   : > { %540 = vst [vmem:[%s4566_s3 + $0xd8] sm:$0xff] %v539_v27 }
  0x46   : > { %542 = vst [vmem:[%s4566_s3 + $0xe0] sm:$0xff] %v541_v28 }
  0x47   : > { %544 = vst [vmem:[%s4566_s3 + $0xe8] sm:$0xff] %v543_v29 }
  0x48   : > { %546 = vst [vmem:[%s4566_s3 + $0xf0] sm:$0xff] %v545_v30 }
  0x49   : > { %548 = vst [vmem:[%s4566_s3 + $0xf8] sm:$0xff] %v547_v31 }
  0x4a   : > { %550 = vst [vmem:[%s4566_s3 + $0x100] sm:$0xff] %v549_v32 }
  0x4b   : > { %552 = vst [vmem:[%s4566_s3 + $0x108] sm:$0xff] %v551_v33 }
  0x4c   : > { %554 = vst [vmem:[%s4566_s3 + $0x110] sm:$0xff] %v553_v34 }
  0x4d   : > { %556 = vst [vmem:[%s4566_s3 + $0x118] sm:$0xff] %v555_v35 }
  0x4e   : > { %558 = vst [vmem:[%s4566_s3 + $0x120] sm:$0xff] %v557_v36 }
  0x4f   : > { %560 = vst [vmem:[%s4566_s3 + $0x128] sm:$0xff] %v559_v37 }
  0x50   : > { %562 = vst [vmem:[%s4566_s3 + $0x130] sm:$0xff] %v561_v38 }
  0x51   : > { %564 = vst [vmem:[%s4566_s3 + $0x138] sm:$0xff] %v563_v39 }
  0x52   : > { %566 = vst [vmem:[%s4566_s3 + $0x140] sm:$0xff] %v565_v40 }
  0x53   : > { %568 = vst [vmem:[%s4566_s3 + $0x148] sm:$0xff] %v567_v41 }
  0x54   : > { %570 = vst [vmem:[%s4566_s3 + $0x150] sm:$0xff] %v569_v42 }
  0x55   : > { %572 = vst [vmem:[%s4566_s3 + $0x158] sm:$0xff] %v571_v43 }
  0x56   : > { %574 = vst [vmem:[%s4566_s3 + $0x160] sm:$0xff] %v573_v44 }
  0x57   : > { %576 = vst [vmem:[%s4566_s3 + $0x168] sm:$0xff] %v575_v45 }
  0x58   : > { %578 = vst [vmem:[%s4566_s3 + $0x170] sm:$0xff] %v577_v46 }
  0x59   : > { %580 = vst [vmem:[%s4566_s3 + $0x178] sm:$0xff] %v579_v47 }
  0x5a   : > { %582 = vst [vmem:[%s4566_s3 + $0x180] sm:$0xff] %v581_v48 }
  0x5b   : > { %584 = vst [vmem:[%s4566_s3 + $0x188] sm:$0xff] %v583_v49 }
  0x5c   : > { %586 = vst [vmem:[%s4566_s3 + $0x190] sm:$0xff] %v585_v50 }
  0x5d   : > { %588 = vst [vmem:[%s4566_s3 + $0x198] sm:$0xff] %v587_v51 }
  0x5e   : > { %590 = vst [vmem:[%s4566_s3 + $0x1a0] sm:$0xff] %v589_v52 }
  0x5f   : > { %592 = vst [vmem:[%s4566_s3 + $0x1a8] sm:$0xff] %v591_v53 }
  0x60   : > { %594 = vst [vmem:[%s4566_s3 + $0x1b0] sm:$0xff] %v593_v54 }
  0x61   : > { %596 = vst [vmem:[%s4566_s3 + $0x1b8] sm:$0xff] %v595_v55 }
  0x62   : > { %598 = vst [vmem:[%s4566_s3 + $0x1c0] sm:$0xff] %v597_v56 }
  0x63   : > { %600 = vst [vmem:[%s4566_s3 + $0x1c8] sm:$0xff] %v599_v57 }
  0x64   : > { %602 = vst [vmem:[%s4566_s3 + $0x1d0] sm:$0xff] %v601_v58 }
  0x65   : > { %604 = vst [vmem:[%s4566_s3 + $0x1d8] sm:$0xff] %v603_v59 }
  0x66   : > { %606 = vst [vmem:[%s4566_s3 + $0x1e0] sm:$0xff] %v605_v60 }
  0x67   : > { %608 = vst [vmem:[%s4566_s3 + $0x1e8] sm:$0xff] %v607_v61 }
  0x68   : > { %610 = vst [vmem:[%s4566_s3 + $0x1f0] sm:$0xff] %v609_v62 }
  0x69   : > { %612 = vst [vmem:[%s4566_s3 + $0x1f8] sm:$0xff] %v611_v63 }
  0x6a PF: > { %618 = sbr.rel (!%p4509_p5) target bundleno = 174 (0xae), region = 82  ;;  %s620_s5 = sand.u32 (%p4509_p5), 1, %s4402_s11  }
  0x6b   : > { %s4017_s18 = sshll.u32 (%p4509_p5), %s4406_s12, 7  ;;  %s3965_s28 = sshll.u32 (%p4509_p5), %s620_s5, 9 }
  0x6c   : > { %s4700_s26 = scalar_lea.vmem (%p4509_p5), %s6550_s1, %s4017_s18  ;;  %s4705_s19 = scalar_lea.vmem (%p4509_p5), [#allocation6], %s3965_s28 }
  0x6d   : > { %v781_v0 = vld [vmem:[%s4700_s26] sm:$0xff] (%p4509_p5)  ;;  %v783_v1 = vld [vmem:[%s4700_s26 + $0x8] sm:$0xff] (%p4509_p5)  ;;  %v785_v2 = vld [vmem:[%s4700_s26 + $0x10] sm:$0xff] (%p4509_p5) }
  0x6e   : > { %782 = vst [vmem:[%s4705_s19] sm:$0xff] (%p4509_p5), %v781_v0  ;;  %v787_v3 = vld [vmem:[%s4700_s26 + $0x18] sm:$0xff] (%p4509_p5)  ;;  %v789_v4 = vld [vmem:[%s4700_s26 + $0x20] sm:$0xff] (%p4509_p5)  ;;  %v791_v5 = vld [vmem:[%s4700_s26 + $0x28] sm:$0xff] (%p4509_p5) }
  0x6f   : > { %784 = vst [vmem:[%s4705_s19 + $0x8] sm:$0xff] %v783_v1  ;;  %v793_v6 = vld [vmem:[%s4700_s26 + $0x30] sm:$0xff]  ;;  %v795_v7 = vld [vmem:[%s4700_s26 + $0x38] sm:$0xff]  ;;  %v797_v8 = vld [vmem:[%s4700_s26 + $0x40] sm:$0xff] }
  0x70   : > { %786 = vst [vmem:[%s4705_s19 + $0x10] sm:$0xff] %v785_v2  ;;  %v799_v9 = vld [vmem:[%s4700_s26 + $0x48] sm:$0xff]  ;;  %v801_v10 = vld [vmem:[%s4700_s26 + $0x50] sm:$0xff]  ;;  %v803_v11 = vld [vmem:[%s4700_s26 + $0x58] sm:$0xff] }
  0x71   : > { %788 = vst [vmem:[%s4705_s19 + $0x18] sm:$0xff] %v787_v3  ;;  %v805_v12 = vld [vmem:[%s4700_s26 + $0x60] sm:$0xff]  ;;  %v807_v13 = vld [vmem:[%s4700_s26 + $0x68] sm:$0xff]  ;;  %v809_v14 = vld [vmem:[%s4700_s26 + $0x70] sm:$0xff] }
  0x72   : > { %790 = vst [vmem:[%s4705_s19 + $0x20] sm:$0xff] %v789_v4  ;;  %v811_v15 = vld [vmem:[%s4700_s26 + $0x78] sm:$0xff]  ;;  %v813_v16 = vld [vmem:[%s4700_s26 + $0x100] sm:$0xff]  ;;  %v815_v17 = vld [vmem:[%s4700_s26 + $0x108] sm:$0xff] }
  0x73   : > { %792 = vst [vmem:[%s4705_s19 + $0x28] sm:$0xff] %v791_v5  ;;  %v817_v18 = vld [vmem:[%s4700_s26 + $0x110] sm:$0xff]  ;;  %v819_v19 = vld [vmem:[%s4700_s26 + $0x118] sm:$0xff]  ;;  %v821_v20 = vld [vmem:[%s4700_s26 + $0x120] sm:$0xff] }
  0x74   : > { %794 = vst [vmem:[%s4705_s19 + $0x30] sm:$0xff] %v793_v6  ;;  %v823_v21 = vld [vmem:[%s4700_s26 + $0x128] sm:$0xff]  ;;  %v825_v22 = vld [vmem:[%s4700_s26 + $0x130] sm:$0xff]  ;;  %v827_v23 = vld [vmem:[%s4700_s26 + $0x138] sm:$0xff] }
  0x75   : > { %796 = vst [vmem:[%s4705_s19 + $0x38] sm:$0xff] %v795_v7  ;;  %v829_v24 = vld [vmem:[%s4700_s26 + $0x140] sm:$0xff]  ;;  %v831_v25 = vld [vmem:[%s4700_s26 + $0x148] sm:$0xff]  ;;  %v833_v26 = vld [vmem:[%s4700_s26 + $0x150] sm:$0xff] }
  0x76   : > { %798 = vst [vmem:[%s4705_s19 + $0x40] sm:$0xff] %v797_v8  ;;  %v835_v27 = vld [vmem:[%s4700_s26 + $0x158] sm:$0xff]  ;;  %v837_v28 = vld [vmem:[%s4700_s26 + $0x160] sm:$0xff]  ;;  %v839_v29 = vld [vmem:[%s4700_s26 + $0x168] sm:$0xff] }
  0x77   : > { %800 = vst [vmem:[%s4705_s19 + $0x48] sm:$0xff] %v799_v9  ;;  %v841_v30 = vld [vmem:[%s4700_s26 + $0x170] sm:$0xff]  ;;  %v843_v31 = vld [vmem:[%s4700_s26 + $0x178] sm:$0xff]  ;;  %v845_v32 = vld [vmem:[%s4700_s26 + $0x200] sm:$0xff] }
  0x78   : > { %802 = vst [vmem:[%s4705_s19 + $0x50] sm:$0xff] %v801_v10  ;;  %v847_v33 = vld [vmem:[%s4700_s26 + $0x208] sm:$0xff]  ;;  %v849_v34 = vld [vmem:[%s4700_s26 + $0x210] sm:$0xff]  ;;  %v851_v35 = vld [vmem:[%s4700_s26 + $0x218] sm:$0xff] }
  0x79   : > { %804 = vst [vmem:[%s4705_s19 + $0x58] sm:$0xff] %v803_v11  ;;  %v853_v36 = vld [vmem:[%s4700_s26 + $0x220] sm:$0xff]  ;;  %v855_v37 = vld [vmem:[%s4700_s26 + $0x228] sm:$0xff]  ;;  %v857_v38 = vld [vmem:[%s4700_s26 + $0x230] sm:$0xff] }
  0x7a   : > { %806 = vst [vmem:[%s4705_s19 + $0x60] sm:$0xff] %v805_v12  ;;  %v859_v39 = vld [vmem:[%s4700_s26 + $0x238] sm:$0xff]  ;;  %v861_v40 = vld [vmem:[%s4700_s26 + $0x240] sm:$0xff]  ;;  %v863_v41 = vld [vmem:[%s4700_s26 + $0x248] sm:$0xff] }
  0x7b   : > { %808 = vst [vmem:[%s4705_s19 + $0x68] sm:$0xff] %v807_v13  ;;  %v865_v42 = vld [vmem:[%s4700_s26 + $0x250] sm:$0xff]  ;;  %v867_v43 = vld [vmem:[%s4700_s26 + $0x258] sm:$0xff]  ;;  %v869_v44 = vld [vmem:[%s4700_s26 + $0x260] sm:$0xff] }
  0x7c   : > { %810 = vst [vmem:[%s4705_s19 + $0x70] sm:$0xff] %v809_v14  ;;  %v871_v45 = vld [vmem:[%s4700_s26 + $0x268] sm:$0xff]  ;;  %v873_v46 = vld [vmem:[%s4700_s26 + $0x270] sm:$0xff]  ;;  %v875_v47 = vld [vmem:[%s4700_s26 + $0x278] sm:$0xff] }
  0x7d   : > { %812 = vst [vmem:[%s4705_s19 + $0x78] sm:$0xff] %v811_v15  ;;  %v877_v48 = vld [vmem:[%s4700_s26 + $0x300] sm:$0xff]  ;;  %v879_v49 = vld [vmem:[%s4700_s26 + $0x308] sm:$0xff]  ;;  %v881_v50 = vld [vmem:[%s4700_s26 + $0x310] sm:$0xff] }
  0x7e   : > { %814 = vst [vmem:[%s4705_s19 + $0x80] sm:$0xff] %v813_v16  ;;  %v883_v51 = vld [vmem:[%s4700_s26 + $0x318] sm:$0xff]  ;;  %v885_v52 = vld [vmem:[%s4700_s26 + $0x320] sm:$0xff]  ;;  %v887_v53 = vld [vmem:[%s4700_s26 + $0x328] sm:$0xff] }
  0x7f   : > { %816 = vst [vmem:[%s4705_s19 + $0x88] sm:$0xff] %v815_v17  ;;  %v889_v54 = vld [vmem:[%s4700_s26 + $0x330] sm:$0xff]  ;;  %v891_v55 = vld [vmem:[%s4700_s26 + $0x338] sm:$0xff]  ;;  %v893_v56 = vld [vmem:[%s4700_s26 + $0x340] sm:$0xff] }
  0x80   : > { %818 = vst [vmem:[%s4705_s19 + $0x90] sm:$0xff] %v817_v18  ;;  %v895_v57 = vld [vmem:[%s4700_s26 + $0x348] sm:$0xff]  ;;  %v897_v58 = vld [vmem:[%s4700_s26 + $0x350] sm:$0xff]  ;;  %v899_v59 = vld [vmem:[%s4700_s26 + $0x358] sm:$0xff] }
  0x81   : > { %820 = vst [vmem:[%s4705_s19 + $0x98] sm:$0xff] %v819_v19  ;;  %v901_v60 = vld [vmem:[%s4700_s26 + $0x360] sm:$0xff]  ;;  %v903_v61 = vld [vmem:[%s4700_s26 + $0x368] sm:$0xff]  ;;  %v905_v62 = vld [vmem:[%s4700_s26 + $0x370] sm:$0xff] }
  0x82   : > { %822 = vst [vmem:[%s4705_s19 + $0xa0] sm:$0xff] %v821_v20  ;;  %v907_v63 = vld [vmem:[%s4700_s26 + $0x378] sm:$0xff] }
  0x83   : > { %824 = vst [vmem:[%s4705_s19 + $0xa8] sm:$0xff] %v823_v21 }
  0x84   : > { %826 = vst [vmem:[%s4705_s19 + $0xb0] sm:$0xff] %v825_v22 }
  0x85   : > { %828 = vst [vmem:[%s4705_s19 + $0xb8] sm:$0xff] %v827_v23 }
  0x86   : > { %830 = vst [vmem:[%s4705_s19 + $0xc0] sm:$0xff] %v829_v24 }
  0x87   : > { %832 = vst [vmem:[%s4705_s19 + $0xc8] sm:$0xff] %v831_v25 }
  0x88   : > { %834 = vst [vmem:[%s4705_s19 + $0xd0] sm:$0xff] %v833_v26 }
  0x89   : > { %836 = vst [vmem:[%s4705_s19 + $0xd8] sm:$0xff] %v835_v27 }
  0x8a   : > { %838 = vst [vmem:[%s4705_s19 + $0xe0] sm:$0xff] %v837_v28 }
  0x8b   : > { %840 = vst [vmem:[%s4705_s19 + $0xe8] sm:$0xff] %v839_v29 }
  0x8c   : > { %842 = vst [vmem:[%s4705_s19 + $0xf0] sm:$0xff] %v841_v30 }
  0x8d   : > { %844 = vst [vmem:[%s4705_s19 + $0xf8] sm:$0xff] %v843_v31 }
  0x8e   : > { %846 = vst [vmem:[%s4705_s19 + $0x100] sm:$0xff] %v845_v32 }
  0x8f   : > { %848 = vst [vmem:[%s4705_s19 + $0x108] sm:$0xff] %v847_v33 }
  0x90   : > { %850 = vst [vmem:[%s4705_s19 + $0x110] sm:$0xff] %v849_v34 }
  0x91   : > { %852 = vst [vmem:[%s4705_s19 + $0x118] sm:$0xff] %v851_v35 }
  0x92   : > { %854 = vst [vmem:[%s4705_s19 + $0x120] sm:$0xff] %v853_v36 }
  0x93   : > { %856 = vst [vmem:[%s4705_s19 + $0x128] sm:$0xff] %v855_v37 }
  0x94   : > { %858 = vst [vmem:[%s4705_s19 + $0x130] sm:$0xff] %v857_v38 }
  0x95   : > { %860 = vst [vmem:[%s4705_s19 + $0x138] sm:$0xff] %v859_v39 }
  0x96   : > { %862 = vst [vmem:[%s4705_s19 + $0x140] sm:$0xff] %v861_v40 }
  0x97   : > { %864 = vst [vmem:[%s4705_s19 + $0x148] sm:$0xff] %v863_v41 }
  0x98   : > { %866 = vst [vmem:[%s4705_s19 + $0x150] sm:$0xff] %v865_v42 }
  0x99   : > { %868 = vst [vmem:[%s4705_s19 + $0x158] sm:$0xff] %v867_v43 }
  0x9a   : > { %870 = vst [vmem:[%s4705_s19 + $0x160] sm:$0xff] %v869_v44 }
  0x9b   : > { %872 = vst [vmem:[%s4705_s19 + $0x168] sm:$0xff] %v871_v45 }
  0x9c   : > { %874 = vst [vmem:[%s4705_s19 + $0x170] sm:$0xff] %v873_v46 }
  0x9d   : > { %876 = vst [vmem:[%s4705_s19 + $0x178] sm:$0xff] %v875_v47 }
  0x9e   : > { %878 = vst [vmem:[%s4705_s19 + $0x180] sm:$0xff] %v877_v48 }
  0x9f   : > { %880 = vst [vmem:[%s4705_s19 + $0x188] sm:$0xff] %v879_v49 }
  0xa0   : > { %882 = vst [vmem:[%s4705_s19 + $0x190] sm:$0xff] %v881_v50 }
  0xa1   : > { %884 = vst [vmem:[%s4705_s19 + $0x198] sm:$0xff] %v883_v51 }
  0xa2   : > { %886 = vst [vmem:[%s4705_s19 + $0x1a0] sm:$0xff] %v885_v52 }
  0xa3   : > { %888 = vst [vmem:[%s4705_s19 + $0x1a8] sm:$0xff] %v887_v53 }
  0xa4   : > { %890 = vst [vmem:[%s4705_s19 + $0x1b0] sm:$0xff] %v889_v54 }
  0xa5   : > { %892 = vst [vmem:[%s4705_s19 + $0x1b8] sm:$0xff] %v891_v55 }
  0xa6   : > { %894 = vst [vmem:[%s4705_s19 + $0x1c0] sm:$0xff] %v893_v56 }
  0xa7   : > { %896 = vst [vmem:[%s4705_s19 + $0x1c8] sm:$0xff] %v895_v57 }
  0xa8   : > { %898 = vst [vmem:[%s4705_s19 + $0x1d0] sm:$0xff] %v897_v58 }
  0xa9   : > { %900 = vst [vmem:[%s4705_s19 + $0x1d8] sm:$0xff] %v899_v59 }
  0xaa   : > { %902 = vst [vmem:[%s4705_s19 + $0x1e0] sm:$0xff] %v901_v60 }
  0xab   : > { %904 = vst [vmem:[%s4705_s19 + $0x1e8] sm:$0xff] %v903_v61 }
  0xac   : > { %906 = vst [vmem:[%s4705_s19 + $0x1f0] sm:$0xff] %v905_v62 }
  0xad   : > { %908 = vst [vmem:[%s4705_s19 + $0x1f8] sm:$0xff] %v907_v63 }
  0xae PF: > { %924 = sbr.rel (%p4524_p12) target bundleno = 3645 (0xe3d), region = 124  ;;  %s4835_s29 = sand.u32 (!%p4524_p12), 1, %s4398_s10  }
  0xaf   : > { %s3970_s14 = sshll.u32 (!%p4524_p12), %s4835_s29, 9 }
  0xb0   : > { %s4838_s25 = scalar_lea.vmem (!%p4524_p12), [#allocation5], %s3970_s14  ;;  %s4840_s27 = scalar_lea.vmem (!%p4524_p12), [#allocation6], %s3970_s14 }
  0xb3   : > { %4381 = dma.done.wait (%p4046_p11), [#allocation8], 512  }
  0xb4   : > { %4383 = vsyncadd (%p4046_p11), [#allocation8], 4294966784 }
  0xb5   : > { %4385 = dma.done.wait (%p4046_p11), [#allocation11], 3840  }
  0xb6   : > { %4387 = vsyncadd (%p4046_p11), [#allocation11], 4294963456  ;;  %v4415_v0 = vmov 0   ;;  %vm6562_vm0 = vcmask 7168   ;;  %v1072_v1 = vld [vmem:[%s4840_s27 + $0x10] sm:$0xff]  ;;  %v1070_v2 = vld [vmem:[%s4840_s27] sm:$0xff] }
  0xb7   : > { %4098 = vset.pattern.permute.xlu1 %v4415_v0  ;;  %4097 = vset.pattern.permute.xlu0 %v4415_v0  ;;  %v1073_v3 = vld [vmem:[%s4840_s27 + $0x18] sm:$0xff]  ;;  %v1817_v4 = vsel %vm6562_vm0, %v1072_v1, 0.0  ;;  %v1808_v5 = vsel %vm6562_vm0, %v1070_v2, 0.0  ;;  %v1071_v7 = vld [vmem:[%s4840_s27 + $0x8] sm:$0xff]  ;;  %v1074_v9 = vld [vmem:[%s4840_s27 + $0x20] sm:$0xff]  ;;  %vm1518_vm1 = vcmask 261120  }
  0xb8   : > { %4099 = vset.pattern.permute.xlu2 %v4415_v0  ;;  %1146 = vperm.xlu1 %4098, %v1072_v1   ;;  %v1818_v6 = vsel %vm6562_vm0, %v1073_v3, 0.0  ;;  %v1075_v8 = vld [vmem:[%s4840_s27 + $0x28] sm:$0xff]  ;;  %v1809_v11 = vsel %vm6562_vm0, %v1071_v7, 0.0  ;;  %v1826_v13 = vsel %vm6562_vm0, %v1074_v9, 0.0  ;;  %v1077_v18 = vld [vmem:[%s4840_s27 + $0x38] sm:$0xff]  ;;  %v1076_v19 = vld [vmem:[%s4840_s27 + $0x30] sm:$0xff] }
  0xb9   : > { %1136 = vperm.xlu0 %4097, %v1070_v2   ;;  %v1819_v10 = vadd.f32 %v1818_v6, %v1817_v4  ;;  %v1827_v12 = vsel %vm6562_vm0, %v1075_v8, 0.0  ;;  %v1810_v14 = vadd.f32 %v1809_v11, %v1808_v5  ;;  %v1836_v24 = vsel %vm6562_vm0, %v1077_v18, 0.0  ;;  %v1079_v31 = vld [vmem:[%s4840_s27 + $0x48] sm:$0xff]  ;;  %v1078_v32 = vld [vmem:[%s4840_s27 + $0x40] sm:$0xff]  ;;  %v1081_v45 = vld [vmem:[%s4840_s27 + $0x58] sm:$0xff]  ;;  %s4417_s17 = smov 64  }
  0xba   : > { %v1828_v15 = vadd.f32 %v1827_v12, %v1826_v13  ;;  %v1835_v25 = vsel %vm6562_vm0, %v1076_v19, 0.0  ;;  %v1845_v34 = vsel %vm6562_vm0, %v1079_v31, 0.0  ;;  %v1844_v35 = vsel %vm6562_vm0, %v1078_v32, 0.0  ;;  %v1080_v46 = vld [vmem:[%s4840_s27 + $0x50] sm:$0xff]  ;;  %v1083_v57 = vld [vmem:[%s4840_s27 + $0x68] sm:$0xff]  ;;  %v1082_v58 = vld [vmem:[%s4840_s27 + $0x60] sm:$0xff] }
  0xbb   : > { %v1820_v16 = vrot.slane %v1819_v10, 4  ;;  %v1811_v17 = vrot.slane %v1810_v14, 4  ;;  %v1837_v29 = vadd.f32 %v1836_v24, %v1835_v25  ;;  %v1846_v41 = vadd.f32 %v1845_v34, %v1844_v35  ;;  %v1087_v5 = vld [vmem:[%s4840_s27 + $0x88] sm:$0xff]  ;;  %v1086_v6 = vld [vmem:[%s4840_s27 + $0x80] sm:$0xff]  ;;  %s4418_s3 = smov 32   ;;  %s4419_s28 = smov 96  }
  0xbc   : > { %v1829_v22 = vrot.slane %v1828_v15, 4  ;;  %v1854_v48 = vsel %vm6562_vm0, %v1081_v45, 0.0  ;;  %v1853_v52 = vsel %vm6562_vm0, %v1080_v46, 0.0  ;;  %v1863_v63 = vsel %vm6562_vm0, %v1083_v57, 0.0  ;;  %p994_p2 = scmp.lt.s32.totalorder %s4491_s13, 1  ;;  %s3975_s5 = sshll.u32 %s4835_s29, 3 }
  0xbd   : > { %v1821_v20 = vadd.f32 %v1820_v16, %v1819_v10  ;;  %v1812_v21 = vadd.f32 %v1811_v17, %v1810_v14  ;;  %v1838_v38 = vrot.slane %v1837_v29, 4  ;;  %v1847_v47 = vrot.slane %v1846_v41, 4  ;;  %s4011_s18 = sshll.u32 %s4491_s13, 3  ;;  %s3814_s15 = scalar_lea.sflag [#allocation9], %s4835_s29 }
  0xbe   : > { %v1830_v27 = vadd.f32 %v1829_v22, %v1828_v15  ;;  %v1855_v53 = vadd.f32 %v1854_v48, %v1853_v52  ;;  %v1862_v0 = vsel %vm6562_vm0, %v1082_v58, 0.0  ;;  %v1881_v10 = vsel %vm6562_vm0, %v1087_v5, 0.0  ;;  %s995_s23 = scalar_select %p994_p2, %s4491_s13, 1 }
  0xbf   : > { %v1822_v23 = vrot.slane %v1821_v20, 2  ;;  %v1813_v26 = vrot.slane %v1812_v21, 2  ;;  %v1839_v42 = vadd.f32 %v1838_v38, %v1837_v29  ;;  %v1848_v54 = vadd.f32 %v1847_v47, %v1846_v41 }
  0xc0   : > { %1151 = vperm.xlu1 %4098, %v1073_v3   ;;  %v1831_v36 = vrot.slane %v1830_v27, 2  ;;  %v1856_v59 = vrot.slane %v1855_v53, 4  ;;  %v1864_v3 = vadd.f32 %v1863_v63, %v1862_v0  ;;  %v1880_v11 = vsel %vm6562_vm0, %v1086_v6, 0.0  ;;  %s3976_s24 = sshll.u32 %s995_s23, 3 }
  0xc1   : > { %1141 = vperm.xlu0 %4097, %v1071_v7   ;;  %v1814_v28 = vadd.f32 %v1813_v26, %v1812_v21  ;;  %v1823_v30 = vadd.f32 %v1822_v23, %v1821_v20  ;;  %v1840_v49 = vrot.slane %v1839_v42, 2  ;;  %v1849_v60 = vrot.slane %v1848_v54, 2  ;;  %v1085_v7 = vld [vmem:[%s4840_s27 + $0x78] sm:$0xff]  ;;  %s997_s14 = scalar_lea.vmem %s6551_s2, %s3976_s24  ;;  %s3824_s24 = scalar_lea.hbm %s6558_s9, %s4011_s18 }
  0xc2   : > { %v1832_v44 = vadd.f32 %v1831_v36, %v1830_v27  ;;  %v1857_v1 = vadd.f32 %v1856_v59, %v1855_v53  ;;  %v1865_v13 = vrot.slane %v1864_v3, 4  ;;  %v1872_v15 = vsel %vm6562_vm0, %v1085_v7, 0.0  ;;  %s3828_s22 = sshll.u32 %s3824_s24, 4  ;;  %s3829_s22 = int_to_ptr.hbm [resolvable:$true] %s3828_s22 }
  0xc3   : > { %v1815_v33 = vrot.slane %v1814_v28, 1  ;;  %v1824_v39 = vrot.slane %v1823_v30, 1  ;;  %v1841_v56 = vadd.f32 %v1840_v49, %v1839_v42  ;;  %v1850_v4 = vadd.f32 %v1849_v60, %v1848_v54  ;;  %s4350_s21 = sshra.s32 %s3829_s22, 4  ;;  %s4351_s21 = int_to_ptr.hbm [resolvable:$true] %s4350_s21 }
  0xc4   : > { %v1833_v51 = vrot.slane %v1832_v44, 1  ;;  %v1882_v17 = vadd.f32 %v1881_v10, %v1880_v11  ;;  %s4352_s13 = scalar_lea.hbm %s4351_s21, 8  ;;  %p4357_p7 = scmp.lt.s32.totalorder %s4351_s21, %s6558_s9 }
  0xc5   : > { %v1816_v37 = vadd.f32 %v1815_v33, %v1814_v28  ;;  %v1825_v43 = vadd.f32 %v1824_v39, %v1823_v30  ;;  %v1842_v62 = vrot.slane %v1841_v56, 1  ;;  %v1851_v14 = vrot.slane %v1850_v4, 1  ;;  %p4353_p3 = scmp.ne.s32.totalorder %s4351_s21, %s4352_s13 }
  0xc6   : > { %v1834_v55 = vadd.f32 %v1833_v51, %v1832_v44  ;;  %v1883_v22 = vrot.slane %v1882_v17, 4  ;;  %v1091_v44 = vld [vmem:[%s4840_s27 + $0xa8] sm:$0xff] }
  0xc7   : > { %v2096_v40 = vmax.f32 %v1816_v37, 1.0  ;;  %v2097_v50 = vmax.f32 %v1825_v43, 1.0  ;;  %v1843_v2 = vadd.f32 %v1842_v62, %v1841_v56  ;;  %v1852_v20 = vadd.f32 %v1851_v14, %v1850_v4  ;;  %v1093_v56 = vld [vmem:[%s4840_s27 + $0xb8] sm:$0xff]  ;;  %v1096_v14 = vld [vmem:[%s4840_s27 + $0xd0] sm:$0xff]  ;;  %p4354_p4 = pnand %p4353_p3, %p4513_p6 }
  0xc8   : > { %1161 = vperm.xlu1 %4098, %v1075_v8   ;;  %v2098_v61 = vmax.f32 %v1834_v55, 1.0  ;;  %v1084_v8 = vld [vmem:[%s4840_s27 + $0x70] sm:$0xff]  ;;  %v1884_v27 = vadd.f32 %v1883_v22, %v1882_v17  ;;  %v1899_v49 = vsel %vm6562_vm0, %v1091_v44, 0.0 }
  0xc9   : > { %1156 = vperm.xlu0 %4097, %v1074_v9   ;;  %2130 = vperm.xlu2 %4099, %v2096_v40   ;;  %v1858_v9 = vrot.slane %v1857_v1, 2  ;;  %v2099_v12 = vmax.f32 %v1843_v2, 1.0  ;;  %v1871_v16 = vsel %vm6562_vm0, %v1084_v8, 0.0  ;;  %v2100_v25 = vmax.f32 %v1852_v20, 1.0  ;;  %v1095_v2 = vld [vmem:[%s4840_s27 + $0xc8] sm:$0xff]  ;;  %p4355_p5 = pneg %p4354_p4 }
  0xca   : > { %v1873_v21 = vadd.f32 %v1872_v15, %v1871_v16  ;;  %v1885_v33 = vrot.slane %v1884_v27, 2  ;;  %v1925_v20 = vsel %vm6562_vm0, %v1096_v14, 0.0 }
  0xcc   : > { %v1874_v26 = vrot.slane %v1873_v21, 4  ;;  %v1886_v39 = vadd.f32 %v1885_v33, %v1884_v27  ;;  %v4909_v27 = vld [vmem:[%s4840_s27 + $0x108] sm:$0xff] }
  0xce   : > { %v1875_v29 = vadd.f32 %v1874_v26, %v1873_v21  ;;  %v1887_v43 = vrot.slane %v1886_v39, 1  ;;  %v1098_v26 = vld [vmem:[%s4840_s27 + $0xe0] sm:$0xff] }
  0xd0   : > { %1171 = vperm.xlu1 %4098, %v1077_v18   ;;  %v1859_v18 = vadd.f32 %v1858_v9, %v1857_v1  ;;  %v1876_v35 = vrot.slane %v1875_v29, 2  ;;  %v1888_v51 = vadd.f32 %v1887_v43, %v1886_v39 }
  0xd1   : > { %1166 = vperm.xlu0 %4097, %v1076_v19   ;;  %2135 = vperm.xlu2 %4099, %v2097_v50   ;;  %v1866_v19 = vadd.f32 %v1865_v13, %v1864_v3  ;;  %v1094_v3 = vld [vmem:[%s4840_s27 + $0xc0] sm:$0xff]  ;;  %v1097_v13 = vld [vmem:[%s4840_s27 + $0xd8] sm:$0xff] }
  0xd2   : > { %v1860_v23 = vrot.slane %v1859_v18, 1  ;;  %v1877_v42 = vadd.f32 %v1876_v35, %v1875_v29  ;;  %v2104_v55 = vmax.f32 %v1888_v51, 1.0 }
  0xd3   : > { %v1867_v24 = vrot.slane %v1866_v19, 2 }
  0xd4   : > { %v1861_v28 = vadd.f32 %v1860_v23, %v1859_v18  ;;  %v1878_v48 = vrot.slane %v1877_v42, 1 }
  0xd5   : > { %v1868_v30 = vadd.f32 %v1867_v24, %v1866_v19  ;;  %v1926_v19 = vsel %vm6562_vm0, %v1097_v13, 0.0 }
  0xd6   : > { %v2101_v34 = vmax.f32 %v1861_v28, 1.0  ;;  %v1879_v53 = vadd.f32 %v1878_v48, %v1877_v42  ;;  %v1927_v23 = vadd.f32 %v1926_v19, %v1925_v20  ;;  %v4912_v28 = vld [vmem:[%s4840_s27 + $0x100] sm:$0xff] }
  0xd7   : > { %v1869_v36 = vrot.slane %v1868_v30, 1 }
  0xd8   : > { %1181 = vperm.xlu1 %4098, %v1079_v31   ;;  %v1089_v31 = vld [vmem:[%s4840_s27 + $0x98] sm:$0xff]  ;;  %v2103_v59 = vmax.f32 %v1879_v53, 1.0  ;;  %v1928_v33 = vrot.slane %v1927_v23, 4 }
  0xd9   : > { %1176 = vperm.xlu0 %4097, %v1078_v32   ;;  %2140 = vperm.xlu2 %4099, %v2098_v61   ;;  %v1088_v32 = vld [vmem:[%s4840_s27 + $0x90] sm:$0xff]  ;;  %v1890_v37 = vsel %vm6562_vm0, %v1089_v31, 0.0  ;;  %v1870_v41 = vadd.f32 %v1869_v36, %v1868_v30  ;;  %v1908_v61 = vsel %vm6562_vm0, %v1093_v56, 0.0  ;;  %v4915_v30 = vld [vmem:[%s4840_s27 + $0xf8] sm:$0xff]  ;;  %v1934_v36 = vsel %vm6562_vm0, %v1098_v26, 0.0 }
  0xda   : > { %v1889_v38 = vsel %vm6562_vm0, %v1088_v32, 0.0  ;;  %v1944_v39 = vsel %vm6562_vm0, %v4915_v30, 0.0  ;;  %v1929_v42 = vadd.f32 %v1928_v33, %v1927_v23 }
  0xdb   : > { %v1891_v40 = vadd.f32 %v1890_v37, %v1889_v38  ;;  %v2102_v47 = vmax.f32 %v1870_v41, 1.0  ;;  %v1953_v37 = vsel %vm6562_vm0, %v4909_v27, 0.0  ;;  %v1952_v38 = vsel %vm6562_vm0, %v4912_v28, 0.0 }
  0xdc   : > { %v1930_v48 = vrot.slane %v1929_v42, 2 }
  0xe0   : > { %1191 = vperm.xlu1 %4098, %v1081_v45   ;;  %v1090_v45 = vld [vmem:[%s4840_s27 + $0xa0] sm:$0xff] }
  0xe1   : > { %1186 = vperm.xlu0 %4097, %v1080_v46   ;;  %2145 = vperm.xlu2 %4099, %v2099_v12   ;;  %v1892_v46 = vrot.slane %v1891_v40, 4  ;;  %v1898_v50 = vsel %vm6562_vm0, %v1090_v45, 0.0 }
  0xe2   : > { %v1900_v54 = vadd.f32 %v1899_v49, %v1898_v50 }
  0xe3   : > { %v1893_v52 = vadd.f32 %v1892_v46, %v1891_v40 }
  0xe4   : > { %v1901_v60 = vrot.slane %v1900_v54, 4 }
  0xe6   : > { %v1902_v0 = vadd.f32 %v1901_v60, %v1900_v54  ;;  %v4936_v60 = vld [vmem:[%s4840_s27 + $0x110] sm:$0xff] }
  0xe8   : > { %1201 = vperm.xlu1 %4098, %v1083_v57   ;;  %v1092_v57 = vld [vmem:[%s4840_s27 + $0xb0] sm:$0xff] }
  0xe9   : > { %1196 = vperm.xlu0 %4097, %v1082_v58   ;;  %2150 = vperm.xlu2 %4099, %v2100_v25   ;;  %v1894_v58 = vrot.slane %v1893_v52, 2  ;;  %v1907_v62 = vsel %vm6562_vm0, %v1092_v57, 0.0  ;;  %v1099_v25 = vld [vmem:[%s4840_s27 + $0xe8] sm:$0xff] }
  0xea   : > { %v1909_v1 = vadd.f32 %v1908_v61, %v1907_v62  ;;  %v1935_v35 = vsel %vm6562_vm0, %v1099_v25, 0.0 }
  0xeb   : > { %v1895_v63 = vadd.f32 %v1894_v58, %v1893_v52 }
  0xed   : > { %v1896_v4 = vrot.slane %v1895_v63, 1 }
  0xef   : > { %v1897_v11 = vadd.f32 %v1896_v4, %v1895_v63 }
  0xf0   : > { %1211 = vperm.xlu1 %4098, %v1085_v7   ;;  %v1917_v7 = vsel %vm6562_vm0, %v1095_v2, 0.0 }
  0xf1   : > { %1206 = vperm.xlu0 %4097, %v1084_v8   ;;  %2155 = vperm.xlu2 %4099, %v2101_v34   ;;  %v1916_v8 = vsel %vm6562_vm0, %v1094_v3, 0.0  ;;  %v2105_v17 = vmax.f32 %v1897_v11, 1.0 }
  0xf2   : > { %v1918_v9 = vadd.f32 %v1917_v7, %v1916_v8 }
  0xf4   : > { %v1919_v15 = vrot.slane %v1918_v9, 4 }
  0xf6   : > { %v1920_v21 = vadd.f32 %v1919_v15, %v1918_v9  ;;  %v4944_v9 = vld [vmem:[%s4840_s27 + $0x128] sm:$0xff]  ;;  %v1008_v15 = vld [vmem:[%s4838_s25 + $0x10] sm:$0xff] }
  0xf8   : > { %1221 = vperm.xlu1 %4098, %v1087_v5   ;;  %v1903_v5 = vrot.slane %v1902_v0, 2  ;;  %v1921_v29 = vrot.slane %v1920_v21, 2 }
  0xf9   : > { %1216 = vperm.xlu0 %4097, %v1086_v6   ;;  %2160 = vperm.xlu2 %4099, %v2102_v47   ;;  %v1910_v6 = vrot.slane %v1909_v1, 4 }
  0xfa   : > { %v1904_v12 = vadd.f32 %v1903_v5, %v1902_v0  ;;  %v1922_v41 = vadd.f32 %v1921_v29, %v1920_v21  ;;  %v1007_v29 = vld [vmem:[%s4838_s25 + $0x8] sm:$0xff] }
  0xfb   : > { %v1911_v10 = vadd.f32 %v1910_v6, %v1909_v1 }
  0xfc   : > { %v1905_v18 = vrot.slane %v1904_v12, 1  ;;  %v1923_v47 = vrot.slane %v1922_v41, 1 }
  0xfd   : > { %v1912_v16 = vrot.slane %v1911_v10, 2 }
  0xfe   : > { %v1906_v22 = vadd.f32 %v1905_v18, %v1904_v12  ;;  %v1924_v53 = vadd.f32 %v1923_v47, %v1922_v41  ;;  %v1006_v18 = vld [vmem:[%s4838_s25] sm:$0xff] }
  0xff   : > { %v1913_v24 = vadd.f32 %v1912_v16, %v1911_v10  ;;  %v4947_v10 = vld [vmem:[%s4840_s27 + $0x120] sm:$0xff]  ;;  %v1971_v16 = vsel %vm6562_vm0, %v4944_v9, 0.0 }
 0x100   : > { %2170 = vperm.xlu1 %4098, %v2104_v55   ;;  %v1931_v55 = vadd.f32 %v1930_v48, %v1929_v42  ;;  %v2108_v61 = vmax.f32 %v1924_v53, 1.0  ;;  %v4981_v53 = vld [vmem:[%s4840_s27 + $0x138] sm:$0xff] }
 0x101   : > { %1231 = vperm.xlu0 %4097, %v1089_v31   ;;  %2165 = vperm.xlu2 %4099, %v2103_v59   ;;  %v4918_v31 = vld [vmem:[%s4840_s27 + $0xf0] sm:$0xff]  ;;  %v1914_v34 = vrot.slane %v1913_v24, 1  ;;  %v4933_v59 = vld [vmem:[%s4840_s27 + $0x118] sm:$0xff] }
 0x102   : > { %v1943_v40 = vsel %vm6562_vm0, %v4918_v31, 0.0  ;;  %v1932_v63 = vrot.slane %v1931_v55, 1 }
 0x103   : > { %v1915_v43 = vadd.f32 %v1914_v34, %v1913_v24  ;;  %v1945_v46 = vadd.f32 %v1944_v39, %v1943_v40 }
 0x104   : > { %v1933_v6 = vadd.f32 %v1932_v63, %v1931_v55  ;;  %v1011_v63 = vld [vmem:[%s4838_s25 + $0x28] sm:$0xff] }
 0x105   : > { %v2107_v49 = vmax.f32 %v1915_v43, 1.0  ;;  %v1946_v52 = vrot.slane %v1945_v46, 4 }
 0x106   : > { %v2109_v19 = vmax.f32 %v1933_v6, 1.0 }
 0x108   : > { %1241 = vperm.xlu1 %4098, %v1091_v44   ;;  %v1936_v44 = vadd.f32 %v1935_v35, %v1934_v36 }
 0x109   : > { %1236 = vperm.xlu0 %4097, %v1090_v45   ;;  %1226 = vperm.xlu2 %4099, %v1088_v32   ;;  %v2106_v32 = vmax.f32 %v1906_v22, 1.0  ;;  %v1954_v45 = vadd.f32 %v1953_v37, %v1952_v38 }
 0x10a   : > { %v1937_v50 = vrot.slane %v1936_v44, 4 }
 0x10b   : > { %v1955_v51 = vrot.slane %v1954_v45, 4 }
 0x10c   : > { %v1938_v54 = vadd.f32 %v1937_v50, %v1936_v44 }
 0x10e   : > { %v1939_v62 = vrot.slane %v1938_v54, 2 }
 0x110   : > { %1251 = vperm.xlu1 %4098, %v1093_v56   ;;  %v1956_v56 = vadd.f32 %v1955_v51, %v1954_v45  ;;  %v1940_v7 = vadd.f32 %v1939_v62, %v1938_v54  ;;  %v4984_v54 = vld [vmem:[%s4840_s27 + $0x130] sm:$0xff] }
 0x111   : > { %1246 = vperm.xlu0 %4097, %v1092_v57   ;;  %2175 = vperm.xlu2 %4099, %v2105_v17   ;;  %v1947_v57 = vadd.f32 %v1946_v52, %v1945_v46  ;;  %v1970_v17 = vsel %vm6562_vm0, %v4947_v10, 0.0 }
 0x112   : > { %v1957_v0 = vrot.slane %v1956_v56, 2  ;;  %v1941_v20 = vrot.slane %v1940_v7, 1 }
 0x113   : > { %v1948_v1 = vrot.slane %v1947_v57, 2 }
 0x114   : > { %v1958_v8 = vadd.f32 %v1957_v0, %v1956_v56  ;;  %v1942_v36 = vadd.f32 %v1941_v20, %v1940_v7  ;;  %v1010_v0 = vld [vmem:[%s4838_s25 + $0x20] sm:$0xff] }
 0x115   : > { %v1949_v12 = vadd.f32 %v1948_v1, %v1947_v57 }
 0x116   : > { %v1959_v21 = vrot.slane %v1958_v8, 1  ;;  %v2110_v51 = vmax.f32 %v1942_v36, 1.0 }
 0x117   : > { %v1950_v24 = vrot.slane %v1949_v12, 1 }
 0x118   : > { %1261 = vperm.xlu1 %4098, %v1095_v2   ;;  %v1962_v2 = vsel %vm6562_vm0, %v4933_v59, 0.0  ;;  %v4966_v37 = vadd.f32 %v1959_v21, %v1958_v8 }
 0x119   : > { %1256 = vperm.xlu0 %4097, %v1094_v3   ;;  %2180 = vperm.xlu2 %4099, %v2106_v32   ;;  %v1961_v3 = vsel %vm6562_vm0, %v4936_v60, 0.0  ;;  %v1972_v32 = vadd.f32 %v1971_v16, %v1970_v17 }
 0x11a   : > { %v1963_v11 = vadd.f32 %v1962_v2, %v1961_v3  ;;  %v2112_v56 = vmax.f32 %v4966_v37, 1.0  ;;  %v1980_v3 = vsel %vm6562_vm0, %v4981_v53, 0.0 }
 0x11b   : > { %v1973_v44 = vrot.slane %v1972_v32, 4 }
 0x11c   : > { %v1964_v22 = vrot.slane %v1963_v11, 4 }
 0x11d   : > { %v1974_v1 = vadd.f32 %v1973_v44, %v1972_v32  ;;  %v5039_v44 = vld [vmem:[%s4840_s27 + $0x148] sm:$0xff] }
 0x11e   : > { %v1965_v38 = vadd.f32 %v1964_v22, %v1963_v11 }
 0x120   : > { %1271 = vperm.xlu1 %4098, %v1097_v13   ;;  %v1966_v52 = vrot.slane %v1965_v38, 2 }
 0x121   : > { %1266 = vperm.xlu0 %4097, %v1096_v14   ;;  %2185 = vperm.xlu2 %4099, %v2107_v49  }
 0x122   : > { %v1967_v7 = vadd.f32 %v1966_v52, %v1965_v38  ;;  %v1013_v38 = vld [vmem:[%s4838_s25 + $0x38] sm:$0xff] }
 0x123   : > { %v4930_v58 = vpop.permute.xlu2 %2130 }
 0x124   : > { %4100 = vrcp.f32 %v4930_v58  ;;  %vm2293_vm2 = vweird.f32 %v4930_v58 }
 0x128   : > { %1281 = vperm.xlu1 %4098, %v1099_v25  }
 0x129   : > { %1276 = vperm.xlu0 %4097, %v1098_v26   ;;  %2190 = vperm.xlu2 %4099, %v2108_v61   ;;  %v1009_v26 = vld [vmem:[%s4838_s25 + $0x18] sm:$0xff] }
 0x12a   : > { %v1147_v4 = vpop.permute.xlu1 %1146  ;;  %v4949_v13 = vpop.eup %4100 }
 0x12b   : > { %v1137_v5 = vpop.permute.xlu0 %1136  ;;  %v4951_v14 = vpop.permute.xlu2 %2135  ;;  %v2289_v23 = vmul.f32 %v4949_v13, %v4930_v58  ;;  %v1456_v25 = vmul.f32 %v1147_v4, %v1008_v15  ;;  %v1979_v4 = vsel %vm6562_vm0, %v4984_v54, 0.0  ;;  %vm2294_vm3 = vweird.f32 %v4949_v13 }
 0x12c   : > { %4102 = vrcp.f32 %v4951_v14  ;;  %v1454_v33 = vmul.f32 %v1137_v5, %v1006_v18  ;;  %v2297_v5 = vand.u32 2147483647, %v4930_v58  ;;  %v2312_v16 = vand.u32 2147483647, %v4951_v14  ;;  %vm5014_vm4 = vmor %vm2293_vm2, %vm2294_vm3 }
 0x12d   : > { %v2290_v40 = vsub.f32 1.0, %v2289_v23  ;;  %v1528_v42 = vsel %vm1518_vm1, %v1456_v25, 0.0  ;;  %v1981_v20 = vadd.f32 %v1980_v3, %v1979_v4  ;;  %v2314_v22 = vand.u32 2147483648, %v4951_v14 }
 0x12e   : > { %v1519_v45 = vsel %vm1518_vm1, %v1454_v33, 0.0  ;;  %vm5018_vm5 = vcmp.eq.f32.partialorder %v2297_v5, 8.507059e+37  ;;  %v1968_v33 = vrot.slane %v1967_v7, 1  ;;  %vm2308_vm6 = vweird.f32 %v4951_v14 }
 0x12f   : > { %v2291_v55 = vmul.f32 %v4949_v13, %v2290_v40  ;;  %v1012_v40 = vld [vmem:[%s4838_s25 + $0x30] sm:$0xff]  ;;  %vm5034_vm8 = vcmp.eq.f32.partialorder %v2312_v16, 8.507059e+37 }
 0x130   : > { %1291 = vperm.xlu1 %4098, %v4915_v30  }
 0x131   : > { %1286 = vperm.xlu0 %4097, %v4918_v31   ;;  %2195 = vperm.xlu2 %4099, %v2109_v19   ;;  %v4970_v31 = vadd.f32 %v1950_v24, %v1949_v12  ;;  %v2292_v8 = vadd.f32 %v4949_v13, %v2291_v55  ;;  %v1975_v19 = vrot.slane %v1974_v1, 2 }
 0x132   : > { %v1152_v34 = vpop.permute.xlu1 %1151  ;;  %v4968_v39 = vpop.eup %4102 }
 0x133   : > { %v1142_v35 = vpop.permute.xlu0 %1141  ;;  %v1457_v30 = vmul.f32 %v1152_v34, %v1009_v26  ;;  %v4973_v43 = vpop.permute.xlu2 %2140  ;;  %v2304_v46 = vmul.f32 %v4968_v39, %v4951_v14  ;;  %v2111_v57 = vmax.f32 %v4970_v31, 1.0  ;;  %vm2309_vm7 = vweird.f32 %v4968_v39 }
 0x134   : > { %v1455_v41 = vmul.f32 %v1142_v35, %v1007_v29  ;;  %4104 = vrcp.f32 %v4973_v43  ;;  %v2296_v35 = vsel %vm5014_vm4, %v4949_v13, %v2292_v8  ;;  %vm5057_vm9 = vmor %vm2308_vm6, %vm2309_vm7  ;;  %v2327_v8 = vand.u32 2147483647, %v4973_v43 }
 0x135   : > { %v1529_v47 = vsel %vm1518_vm1, %v1457_v30, 0.0  ;;  %v2305_v2 = vsub.f32 1.0, %v2304_v46  ;;  %v1982_v30 = vrot.slane %v1981_v20, 4  ;;  %v2329_v46 = vand.u32 2147483648, %v4973_v43 }
 0x136   : > { %v1520_v48 = vsel %vm1518_vm1, %v1455_v41, 0.0  ;;  %v1530_v49 = vadd.f32 %v1529_v47, %v1528_v42  ;;  %v1976_v41 = vadd.f32 %v1975_v19, %v1974_v1  ;;  %v2315_v42 = vor.u32 1.1754944e-38, %v2314_v22  ;;  %v1014_v19 = vld [vmem:[%s4838_s25 + $0x40] sm:$0xff] }
 0x137   : > { %v1521_v50 = vadd.f32 %v1520_v48, %v1519_v45  ;;  %v2306_v21 = vmul.f32 %v4968_v39, %v2305_v2  ;;  %vm2323_vm10 = vweird.f32 %v4973_v43  ;;  %v5089_v22 = vor.u32 1.1754944e-38, %v2329_v46 }
 0x138   : > { %v1531_v61 = vrot.slane %v1530_v49, 4  ;;  %1301 = vperm.xlu1 %4098, %v4909_v27   ;;  %v2299_v27 = vand.u32 2147483648, %v4930_v58  ;;  %v1977_v1 = vrot.slane %v1976_v41, 1  ;;  %vm5107_vm12 = vcmp.eq.f32.partialorder %v2327_v8, 8.507059e+37 }
 0x139   : > { %v1522_v62 = vrot.slane %v1521_v50, 4  ;;  %1296 = vperm.xlu0 %4097, %v4912_v28   ;;  %2200 = vperm.xlu2 %4099, %v2110_v51   ;;  %v2307_v31 = vadd.f32 %v4968_v39, %v2306_v21 }
 0x13a   : > { %v1162_v28 = vpop.permute.xlu1 %1161  ;;  %v1532_v11 = vadd.f32 %v1531_v61, %v1530_v49  ;;  %v2300_v29 = vor.u32 1.1754944e-38, %v2299_v27  ;;  %v5022_v34 = vpop.eup %4104  ;;  %v5048_v49 = vadd.f32 %v1968_v33, %v1967_v7 }
 0x13b   : > { %v1157_v6 = vpop.permute.xlu0 %1156  ;;  %v1459_v12 = vmul.f32 %v1162_v28, %v1011_v63  ;;  %v1523_v17 = vadd.f32 %v1522_v62, %v1521_v50  ;;  %v5004_v18 = vpop.permute.xlu2 %2145  ;;  %v5051_v50 = vld [vmem:[%s4840_s27 + $0x140] sm:$0xff]  ;;  %v5063_v63 = vadd.f32 %v1982_v30, %v1981_v20  ;;  %v2311_v3 = vsel %vm5057_vm9, %v4968_v39, %v2307_v31 }
 0x13c   : > { %v1458_v15 = vmul.f32 %v1157_v6, %v1010_v0  ;;  %v1533_v58 = vrot.slane %v1532_v11, 2  ;;  %4106 = vrcp.f32 %v5004_v18  ;;  %v5043_v45 = vsel %vm5018_vm5, %v2300_v29, %v2296_v35 }
 0x13d   : > { %v1538_v23 = vsel %vm1518_vm1, %v1459_v12, 0.0  ;;  %v1524_v36 = vrot.slane %v1523_v17, 2  ;;  %v1989_v0 = vsel %vm6562_vm0, %v5039_v44, 0.0  ;;  %v1988_v5 = vsel %vm6562_vm0, %v5051_v50, 0.0 }
 0x13e   : > { %v1537_v24 = vsel %vm1518_vm1, %v1458_v15, 0.0  ;;  %v1534_v51 = vadd.f32 %v1533_v58, %v1532_v11  ;;  %v2113_v11 = vmax.f32 %v5048_v49, 1.0  ;;  %v1990_v20 = vadd.f32 %v1989_v0, %v1988_v5  ;;  %v5118_v49 = vld [vmem:[%s4840_s27 + $0x150] sm:$0xff] }
 0x13f   : > { %v1539_v32 = vadd.f32 %v1538_v23, %v1537_v24  ;;  %v1525_v62 = vadd.f32 %v1524_v36, %v1523_v17  ;;  %v1015_v17 = vld [vmem:[%s4838_s25 + $0x48] sm:$0xff]  ;;  %v2316_v21 = vsel %vm5034_vm8, %v2315_v42, %v2311_v3  ;;  %vm2324_vm11 = vweird.f32 %v5022_v34  ;;  %v1016_v3 = vld [vmem:[%s4838_s25 + $0x50] sm:$0xff] }
 0x140   : > { %2210 = vperm.xlu1 %4098, %v2112_v56   ;;  %v1535_v7 = vrot.slane %v1534_v51, 1  ;;  %v1984_v23 = vrot.slane %v5063_v63, 2  ;;  %v2344_v25 = vand.u32 2147483648, %v5004_v18  ;;  %v5095_v29 = vadd.f32 %v1977_v1, %v1976_v41  ;;  %v1017_v1 = vld [vmem:[%s4838_s25 + $0x58] sm:$0xff]  ;;  %vm5143_vm2 = vmor %vm2323_vm10, %vm2324_vm11 }
 0x141   : > { %v1540_v37 = vrot.slane %v1539_v32, 4  ;;  %1311 = vperm.xlu0 %4097, %v4933_v59   ;;  %v2319_v59 = vmul.f32 %v5022_v34, %v4973_v43  ;;  %2205 = vperm.xlu2 %4099, %v2111_v57   ;;  %v1526_v12 = vrot.slane %v1525_v62, 1  ;;  %vm2338_vm13 = vweird.f32 %v5004_v18 }
 0x142   : > { %v1172_v47 = vpop.permute.xlu1 %1171  ;;  %v5067_v2 = vpop.eup %4106  ;;  %v5112_v46 = vor.u32 1.1754944e-38, %v2344_v25  ;;  %v1985_v8 = vadd.f32 %v1984_v23, %v5063_v63 }
 0x143   : > { %v1167_v48 = vpop.permute.xlu0 %1166  ;;  %v1541_v52 = vadd.f32 %v1540_v37, %v1539_v32  ;;  %v1461_v55 = vmul.f32 %v1172_v47, %v1013_v38  ;;  %v5061_v57 = vpop.permute.xlu2 %2150  ;;  %v2320_v27 = vsub.f32 1.0, %v2319_v59  ;;  %v2334_v28 = vmul.f32 %v5067_v2, %v5004_v18 }
 0x144   : > { %v1460_v56 = vmul.f32 %v1167_v48, %v1012_v40  ;;  %4108 = vrcp.f32 %v5061_v57  ;;  %v1536_v32 = vadd.f32 %v1535_v7, %v1534_v51  ;;  %v1527_v37 = vadd.f32 %v1526_v12, %v1525_v62  ;;  %v5115_v48 = vld [vmem:[%s4840_s27 + $0x158] sm:$0xff] }
 0x145   : > { %v1547_v14 = vsel %vm1518_vm1, %v1461_v55, 0.0  ;;  %v1542_v39 = vrot.slane %v1541_v52, 2  ;;  %v2335_v15 = vsub.f32 1.0, %v2334_v28  ;;  %v2321_v24 = vmul.f32 %v5022_v34, %v2320_v27 }
 0x146   : > { %v1546_v4 = vsel %vm1518_vm1, %v1460_v56, 0.0  ;;  %v2342_v40 = vand.u32 2147483647, %v5004_v18  ;;  %v5120_v51 = vmul.f32 %v2316_v21, %v1536_v32  ;;  %v2114_v56 = vmax.f32 %v5095_v29, 1.0 }
 0x147   : > { %v1548_v6 = vadd.f32 %v1547_v14, %v1546_v4  ;;  %v1543_v33 = vadd.f32 %v1542_v39, %v1541_v52  ;;  %v2336_v38 = vmul.f32 %v5067_v2, %v2335_v15  ;;  %v2322_v42 = vadd.f32 %v5022_v34, %v2321_v24  ;;  %v2771_v39 = vld [vmem:[#allocation7 + $0x18] sm:$0xff]  ;;  %v2770_v24 = vld [vmem:[#allocation7 + $0x10] sm:$0xff] }
 0x148   : > { %1321 = vperm.xlu1 %4098, %v4944_v9   ;;  %v5126_v61 = vmul.f32 %v5043_v45, %v1527_v37  ;;  %vm2339_vm14 = vweird.f32 %v5067_v2  ;;  %vm5129_vm15 = vcmp.eq.f32.partialorder %v2342_v40, 8.507059e+37  ;;  %v2357_v28 = vand.u32 2147483647, %v5061_v57  ;;  %2859 = vmatpush.msra.mxu0 %v2771_v39 }
 0x149   : > { %v1549_v16 = vrot.slane %v1548_v6, 4  ;;  %1316 = vperm.xlu0 %4097, %v4947_v10   ;;  %1306 = vperm.xlu2 %4099, %v4936_v60   ;;  %v1991_v60 = vrot.slane %v1990_v20, 4  ;;  %v1544_v52 = vrot.slane %v1543_v33, 1  ;;  %v2337_v4 = vadd.f32 %v5067_v2, %v2336_v38  ;;  %vm5164_vm3 = vmor %vm2338_vm13, %vm2339_vm14  ;;  %v1019_v38 = vld [vmem:[%s4838_s25 + $0x68] sm:$0xff] }
 0x14a   : > { %v1182_v9 = vpop.permute.xlu1 %1181  ;;  %v5097_v36 = vpop.eup %4108  ;;  %v2326_v27 = vsel %vm5143_vm2, %v5022_v34, %v2322_v42  ;;  %v2359_v43 = vand.u32 2147483648, %v5061_v57  ;;  %2860 = vmatpush.msra.mxu0 %v2770_v24  ;;  %vm2353_vm4 = vweird.f32 %v5061_v57  ;;  %vm5197_vm6 = vcmp.eq.f32.partialorder %v2357_v28, 8.507059e+37  ;;  %v5243_v34 = vld [vmem:[%s4840_s27 + $0x170] sm:$0xff] }
 0x14b   : > { %v1550_v26 = vadd.f32 %v1549_v16, %v1548_v6  ;;  %v1177_v10 = vpop.permute.xlu0 %1176  ;;  %v1463_v35 = vmul.f32 %v1182_v9, %v1015_v17  ;;  %v5101_v30 = vpop.permute.xlu2 %2155  ;;  %v2349_v55 = vmul.f32 %v5097_v36, %v5061_v57  ;;  %v5137_v14 = vadd.f32 %v1991_v60, %v1990_v20 }
 0x14c   : > { %v1462_v58 = vmul.f32 %v1177_v10, %v1014_v19  ;;  %4110 = vrcp.f32 %v5101_v30  ;;  %v1545_v15 = vadd.f32 %v1544_v52, %v1543_v33  ;;  %v2341_v25 = vsel %vm5164_vm3, %v5067_v2, %v2337_v4 }
 0x14d   : > { %v1551_v31 = vrot.slane %v1550_v26, 2  ;;  %v1556_v41 = vsel %vm1518_vm1, %v1463_v35, 0.0  ;;  %v2350_v16 = vsub.f32 1.0, %v2349_v55  ;;  %v1993_v21 = vrot.slane %v5137_v14, 2  ;;  %v2769_v35 = vld [vmem:[#allocation7 + $0x8] sm:$0xff] }
 0x14e   : > { %v1555_v13 = vsel %vm1518_vm1, %v1462_v58, 0.0  ;;  %v2374_v10 = vand.u32 2147483648, %v5101_v30  ;;  %v1986_v33 = vrot.slane %v1985_v8, 1  ;;  %v2331_v58 = vsel %vm5107_vm12, %v5089_v22, %v2326_v27  ;;  %2861 = vmatpush.msra.mxu0 %v2769_v35  ;;  %v2768_v22 = vld [vmem:[#allocation7] sm:$0xff] }
 0x14f   : > { %v1557_v47 = vadd.f32 %v1556_v41, %v1555_v13  ;;  %v1552_v5 = vadd.f32 %v1551_v31, %v1550_v26  ;;  %v2351_v2 = vmul.f32 %v5097_v36, %v2350_v16  ;;  %v5185_v37 = vor.u32 1.1754944e-38, %v2359_v43  ;;  %v1018_v41 = vld [vmem:[%s4838_s25 + $0x60] sm:$0xff] }
 0x150   : > { %1331 = vperm.xlu1 %4098, %v4981_v53   ;;  %v1998_v53 = vsel %vm6562_vm0, %v5115_v48, 0.0  ;;  %v5191_v42 = vmul.f32 %v2331_v58, %v1545_v15  ;;  %v2346_v59 = vsel %vm5129_vm15, %v5112_v46, %v2341_v25  ;;  %vm2354_vm5 = vweird.f32 %v5097_v36  ;;  %2862 = vmatpush.msra.mxu0 %v2768_v22 }
 0x151   : > { %v1558_v0 = vrot.slane %v1557_v47, 4  ;;  %1326 = vperm.xlu0 %4097, %v4984_v54   ;;  %v1997_v54 = vsel %vm6562_vm0, %v5118_v49, 0.0  ;;  %2215 = vperm.xlu2 %4099, %v2113_v11   ;;  %v1553_v18 = vrot.slane %v1552_v5, 1  ;;  %v5205_v55 = vor.u32 1.1754944e-38, %v2374_v10  ;;  %vm5233_vm8 = vmor %vm2353_vm4, %vm2354_vm5 }
 0x152   : > { %v1192_v6 = vpop.permute.xlu1 %1191  ;;  %v5158_v12 = vpop.eup %4110  ;;  %v1999_v23 = vadd.f32 %v1998_v53, %v1997_v54  ;;  %v1987_v46 = vadd.f32 %v1986_v33, %v1985_v8  ;;  %v2352_v45 = vadd.f32 %v5097_v36, %v2351_v2  ;;  %vm2368_vm7 = vweird.f32 %v5101_v30 }
 0x153   : > { %v1187_v7 = vpop.permute.xlu0 %1186  ;;  %v1465_v17 = vmul.f32 %v1192_v6, %v1017_v1  ;;  %v1559_v11 = vadd.f32 %v1558_v0, %v1557_v47  ;;  %v2364_v63 = vmul.f32 %v5158_v12, %v5101_v30  ;;  %v5170_v20 = vpop.permute.xlu2 %2160  ;;  %v1554_v47 = vadd.f32 %v1553_v18, %v1552_v5  ;;  %v5210_v1 = vld [vmem:[%s4840_s27 + $0x160] sm:$0xff]  ;;  %v1021_v18 = vld [vmem:[%s4838_s25 + $0x78] sm:$0xff] }
 0x154   : > { %v1464_v19 = vmul.f32 %v1187_v7, %v1016_v3  ;;  %4112 = vrcp.f32 %v5170_v20  ;;  %v2000_v13 = vrot.slane %v1999_v23, 4  ;;  %v1994_v3 = vadd.f32 %v1993_v21, %v5137_v14 }
 0x155   : > { %v1565_v26 = vsel %vm1518_vm1, %v1465_v17, 0.0  ;;  %v1560_v40 = vrot.slane %v1559_v11, 2  ;;  %v2365_v60 = vsub.f32 1.0, %v2364_v63  ;;  %v5222_v43 = vmul.f32 %v2346_v59, %v1554_v47 }
 0x156   : > { %v1564_v9 = vsel %vm1518_vm1, %v1464_v19, 0.0  ;;  %v2001_v28 = vadd.f32 %v2000_v13, %v1999_v23  ;;  %v2006_v8 = vsel %vm6562_vm0, %v5210_v1, 0.0  ;;  %v2115_v16 = vmax.f32 %v1987_v46, 1.0  ;;  %v5240_v19 = vld [vmem:[%s4840_s27 + $0x178] sm:$0xff] }
 0x157   : > { %v1566_v32 = vadd.f32 %v1565_v26, %v1564_v9  ;;  %v1561_v29 = vadd.f32 %v1560_v40, %v1559_v11  ;;  %v1995_v17 = vrot.slane %v1994_v3, 1  ;;  %v2356_v57 = vsel %vm5233_vm8, %v5097_v36, %v2352_v45  ;;  %v1020_v26 = vld [vmem:[%s4838_s25 + $0x70] sm:$0xff] }
 0x158   : > { %1341 = vperm.xlu1 %4098, %v5039_v44   ;;  %v5202_v44 = vld [vmem:[%s4840_s27 + $0x168] sm:$0xff]  ;;  %vm2369_vm9 = vweird.f32 %v5158_v12  ;;  %v2002_v25 = vrot.slane %v2001_v28, 2  ;;  %v2015_v33 = vsel %vm6562_vm0, %v5243_v34, 0.0  ;;  %v2361_v35 = vsel %vm5197_vm6, %v5185_v37, %v2356_v57  ;;  %v1022_v57 = vld [vmem:[%s4838_s25 + $0x80] sm:$0xff] }
 0x159   : > { %v1567_v31 = vrot.slane %v1566_v32, 4  ;;  %1336 = vperm.xlu0 %4097, %v5051_v50   ;;  %v2372_v50 = vand.u32 2147483647, %v5101_v30  ;;  %2220 = vperm.xlu2 %4099, %v2114_v56   ;;  %v2366_v56 = vmul.f32 %v5158_v12, %v2365_v60  ;;  %v2007_v14 = vsel %vm6562_vm0, %v5202_v44, 0.0  ;;  %vm5273_vm11 = vmor %vm2368_vm7, %vm2369_vm9 }
 0x15a   : > { %v1202_v0 = vpop.permute.xlu1 %1201  ;;  %v5215_v54 = vpop.eup %4112  ;;  %v1562_v21 = vrot.slane %v1561_v29, 1  ;;  %v2008_v9 = vadd.f32 %v2007_v14, %v2006_v8  ;;  %v2389_v58 = vand.u32 2147483648, %v5170_v20  ;;  %vm2804_vm12 = vcmask 1041409  }
 0x15b   : > { %v1197_v62 = vpop.permute.xlu0 %1196  ;;  %v1568_v4 = vadd.f32 %v1567_v31, %v1566_v32  ;;  %v1467_v5 = vmul.f32 %v1202_v0, %v1019_v38  ;;  %v5218_v27 = vpop.permute.xlu2 %2165  ;;  %v2379_v6 = vmul.f32 %v5215_v54, %v5170_v20  ;;  %v2367_v23 = vadd.f32 %v5158_v12, %v2366_v56 }
 0x15c   : > { %v1466_v53 = vmul.f32 %v1197_v62, %v1018_v41  ;;  %4114 = vrcp.f32 %v5218_v27  ;;  %vm5250_vm10 = vcmp.eq.f32.partialorder %v2372_v50, 8.507059e+37  ;;  %v2016_v32 = vsel %vm6562_vm0, %v5240_v19, 0.0 }
 0x15d   : > { %v1574_v7 = vsel %vm1518_vm1, %v1467_v5, 0.0  ;;  %v1569_v11 = vrot.slane %v1568_v4, 2  ;;  %v2380_v36 = vsub.f32 1.0, %v2379_v6  ;;  %v1996_v38 = vadd.f32 %v1995_v17, %v1994_v3  ;;  %v1024_v17 = vld [vmem:[%s4838_s25 + $0x90] sm:$0xff] }
 0x15e   : > { %v1573_v15 = vsel %vm1518_vm1, %v1466_v53, 0.0  ;;  %v1563_v22 = vadd.f32 %v1562_v21, %v1561_v29  ;;  %v2009_v47 = vrot.slane %v2008_v9, 4  ;;  %v2017_v52 = vadd.f32 %v2016_v32, %v2015_v33 }
 0x15f   : > { %v1575_v63 = vadd.f32 %v1574_v7, %v1573_v15  ;;  %v1570_v40 = vadd.f32 %v1569_v11, %v1568_v4  ;;  %v2003_v50 = vadd.f32 %v2002_v25, %v2001_v28  ;;  %v2371_v0 = vsel %vm5273_vm11, %v5158_v12, %v2367_v23  ;;  %v1023_v7 = vld [vmem:[%s4838_s25 + $0x88] sm:$0xff] }
 0x160   : > { %1351 = vperm.xlu1 %4098, %v5115_v48   ;;  %v2387_v48 = vand.u32 2147483647, %v5170_v20  ;;  %v2381_v62 = vmul.f32 %v5215_v54, %v2380_v36  ;;  %v2116_v4 = vmax.f32 %v1996_v38, 1.0  ;;  %vm2383_vm13 = vweird.f32 %v5170_v20 }
 0x161   : > { %1346 = vperm.xlu0 %4097, %v5118_v49   ;;  %v1576_v10 = vrot.slane %v1575_v63, 4  ;;  %2225 = vperm.xlu2 %4099, %v2115_v16   ;;  %v2004_v5 = vrot.slane %v2003_v50, 1  ;;  %v1571_v53 = vrot.slane %v1570_v40, 1  ;;  %v2404_v12 = vand.u32 2147483648, %v5218_v27 }
 0x162   : > { %v1212_v49 = vpop.permute.xlu1 %1211  ;;  %v5267_v13 = vpop.eup %4114  ;;  %v5287_v56 = vmul.f32 %v2361_v35, %v1563_v22  ;;  %vm5289_vm14 = vcmp.eq.f32.partialorder %v2387_v48, 8.507059e+37  ;;  %v2390_v14 = vor.u32 1.1754944e-38, %v2389_v58  ;;  %v5294_v6 = vadd.f32 %v2009_v47, %v2008_v9 }
 0x163   : > { %v1207_v2 = vpop.permute.xlu0 %1206  ;;  %v1577_v60 = vadd.f32 %v1576_v10, %v1575_v63  ;;  %v1469_v31 = vmul.f32 %v1212_v49, %v1021_v18  ;;  %v1227_v59 = vpop.permute.xlu2 %1226  ;;  %v2394_v46 = vmul.f32 %v5267_v13, %v5218_v27  ;;  %v2018_v8 = vrot.slane %v2017_v52, 4 }
 0x164   : > { %v1468_v41 = vmul.f32 %v1207_v2, %v1020_v26  ;;  %v2376_v39 = vsel %vm5250_vm10, %v5205_v55, %v2371_v0  ;;  %vm2384_vm15 = vweird.f32 %v5215_v54  ;;  %v2382_v11 = vadd.f32 %v5215_v54, %v2381_v62 }
 0x165   : > { %v1583_v3 = vsel %vm1518_vm1, %v1469_v31, 0.0  ;;  %v1578_v30 = vrot.slane %v1577_v60, 2  ;;  %v2395_v15 = vsub.f32 1.0, %v2394_v46  ;;  %v2005_v23 = vadd.f32 %v2004_v5, %v2003_v50  ;;  %vm5318_vm3 = vmor %vm2383_vm13, %vm2384_vm15 }
 0x166   : > { %v1582_v45 = vsel %vm1518_vm1, %v1468_v41, 0.0  ;;  %v1572_v25 = vadd.f32 %v1571_v53, %v1570_v40  ;;  %vm2398_vm2 = vweird.f32 %v5218_v27  ;;  %v5307_v24 = vor.u32 1.1754944e-38, %v2404_v12 }
 0x167   : > { %v1584_v29 = vadd.f32 %v1583_v3, %v1582_v45  ;;  %v1579_v63 = vadd.f32 %v1578_v30, %v1577_v60  ;;  %v1472_v26 = vmul.f32 %v1227_v59, %v1024_v17  ;;  %v2011_v9 = vrot.slane %v5294_v6, 2 }
 0x168   : > { %1361 = vperm.xlu1 %4098, %v5202_v44   ;;  %v2402_v44 = vand.u32 2147483647, %v5218_v27  ;;  %v5312_v32 = vadd.f32 %v2018_v8, %v2017_v52  ;;  %v2396_v35 = vmul.f32 %v5267_v13, %v2395_v15  ;;  %v2117_v38 = vmax.f32 %v2005_v23, 1.0  ;;  %v1025_v52 = vld [vmem:[%s4838_s25 + $0x98] sm:$0xff] }
 0x169   : > { %1356 = vperm.xlu0 %4097, %v5210_v1   ;;  %v1585_v16 = vrot.slane %v1584_v29, 4  ;;  %2230 = vperm.xlu2 %4099, %v2116_v4   ;;  %v1580_v49 = vrot.slane %v1579_v63, 1  ;;  %v2386_v20 = vsel %vm5318_vm3, %v5215_v54, %v2382_v11  ;;  %v2377_v41 = vmul.f32 %v2376_v39, %v1572_v25 }
 0x16a   : > { %v1222_v21 = vpop.permute.xlu1 %1221  ;;  %vm5329_vm4 = vcmp.eq.f32.partialorder %v2402_v44, 8.507059e+37  ;;  %vm2806_vm5 = vcmask 1042434   ;;  %vm2399_vm6 = vweird.f32 %v5267_v13  ;;  %v2020_v22 = vrot.slane %v5312_v32, 2 }
 0x16b   : > { %v1217_v1 = vpop.permute.xlu0 %1216  ;;  %v1586_v55 = vadd.f32 %v1585_v16, %v1584_v29  ;;  %v1471_v18 = vmul.f32 %v1222_v21, %v1023_v7  ;;  %v5310_v10 = vpop.permute.xlu2 %2175  ;;  %v2805_v54 = vsel %vm2804_vm12, %v5120_v51, %v5126_v61  ;;  %vm2808_vm7 = vcmask 1043459   ;;  %v1119_v51 = vld [vmem:[%s4840_s27 + $0x188] sm:$0xff]  ;;  %v1118_v61 = vld [vmem:[%s4840_s27 + $0x180] sm:$0xff]  ;;  %vm5360_vm10 = vmor %vm2398_vm2, %vm2399_vm6 }
 0x16c   : > { %v1470_v36 = vmul.f32 %v1217_v1, %v1022_v57  ;;  %4116 = vrcp.f32 %v5310_v10  ;;  %v2397_v37 = vadd.f32 %v5267_v13, %v2396_v35  ;;  %v1600_v59 = vsel %vm1518_vm1, %v1472_v26, 0.0 }
 0x16d   : > { %v1587_v48 = vrot.slane %v1586_v55, 2  ;;  %v1592_v58 = vsel %vm1518_vm1, %v1471_v18, 0.0  ;;  %v1581_v50 = vadd.f32 %v1580_v49, %v1579_v63  ;;  %v2807_v62 = vsel %vm2806_vm5, %v5191_v42, %v2805_v54 }
 0x16e   : > { %v1591_v2 = vsel %vm1518_vm1, %v1470_v36, 0.0  ;;  %vm2810_vm8 = vcmask 1044484   ;;  %vm2812_vm9 = vcmask 1045509   ;;  %v2809_v45 = vsel %vm2808_vm7, %v5222_v43, %v2807_v62 }
 0x16f   : > { %v1588_v60 = vadd.f32 %v1587_v48, %v1586_v55  ;;  %v1593_v31 = vadd.f32 %v1592_v58, %v1591_v2  ;;  %vm2814_vm11 = vcmask 1046534   ;;  %v2012_v12 = vadd.f32 %v2011_v9, %v5294_v6 }
 0x170   : > { %1371 = vperm.xlu1 %4098, %v5240_v19   ;;  %v2391_v19 = vsel %vm5289_vm14, %v2390_v14, %v2386_v20  ;;  %v2401_v43 = vsel %vm5360_vm10, %v5267_v13, %v2397_v37  ;;  %vm6563_vm13 = vcmask 1047559   ;;  %v2025_v27 = vsel %vm6562_vm0, %v1119_v51, 0.0 }
 0x171   : > { %1366 = vperm.xlu0 %4097, %v5243_v34   ;;  %v1594_v47 = vrot.slane %v1593_v31, 4  ;;  %2235 = vperm.xlu2 %4099, %v2117_v38   ;;  %v1589_v3 = vrot.slane %v1588_v60, 1  ;;  %v2024_v29 = vsel %vm6562_vm0, %v1118_v61, 0.0  ;;  %v2392_v8 = vmul.f32 %v2391_v19, %v1581_v50 }
 0x172   : > { %v5345_v0 = vpop.permute.xlu1 %2170  ;;  %v5351_v46 = vpop.eup %4116  ;;  %vm2428_vm14 = vweird.f32 %v5310_v10  ;;  %v2434_v39 = vand.u32 2147483648, %v5310_v10  ;;  %v2406_v13 = vsel %vm5329_vm4, %v5307_v24, %v2401_v43  ;;  %v2811_v16 = vsel %vm2810_vm8, %v5287_v56, %v2809_v45 }
 0x173   : > { %v1232_v34 = vpop.permute.xlu0 %1231  ;;  %v1595_v30 = vadd.f32 %v1594_v47, %v1593_v31  ;;  %4118 = vrcp.f32 %v5345_v0  ;;  %v2424_v42 = vmul.f32 %v5351_v46, %v5310_v10  ;;  %v5366_v53 = vpop.permute.xlu2 %2180  ;;  %v1590_v6 = vadd.f32 %v1589_v3, %v1588_v60  ;;  %v1121_v60 = vld [vmem:[%s4840_s27 + $0x198] sm:$0xff] }
 0x174   : > { %v1473_v5 = vmul.f32 %v1232_v34, %v1025_v52  ;;  %v2026_v17 = vadd.f32 %v2025_v27, %v2024_v29  ;;  %v2013_v57 = vrot.slane %v2012_v12, 1  ;;  %v2813_v1 = vsel %vm2812_vm9, %v2377_v41, %v2811_v16  ;;  %v1027_v41 = vld [vmem:[%s4838_s25 + $0xa8] sm:$0xff]  ;;  %v1125_v52 = vld [vmem:[%s4840_s27 + $0x1b8] sm:$0xff] }
 0x175   : > { %v1596_v28 = vrot.slane %v1595_v30, 2  ;;  %v2425_v14 = vsub.f32 1.0, %v2424_v42  ;;  %v2407_v21 = vmul.f32 %v2406_v13, %v1590_v6  ;;  %v2815_v55 = vsel %vm2814_vm11, %v2392_v8, %v2813_v1  ;;  %v1029_v6 = vld [vmem:[%s4838_s25 + $0xb8] sm:$0xff]  ;;  %v1028_v13 = vld [vmem:[%s4838_s25 + $0xb0] sm:$0xff] }
 0x176   : > { %v1601_v7 = vsel %vm1518_vm1, %v1473_v5, 0.0  ;;  %v2027_v24 = vrot.slane %v2026_v17, 4  ;;  %v2014_v36 = vadd.f32 %v2013_v57, %v2012_v12  ;;  %v2021_v33 = vadd.f32 %v2020_v22, %v5312_v32  ;;  %v1026_v22 = vld [vmem:[%s4838_s25 + $0xa0] sm:$0xff]  ;;  %v1123_v57 = vld [vmem:[%s4840_s27 + $0x1a8] sm:$0xff]  ;;  %v1120_v1 = vld [vmem:[%s4840_s27 + $0x190] sm:$0xff] }
 0x177   : > { %v1602_v15 = vadd.f32 %v1601_v7, %v1600_v59  ;;  %v2426_v63 = vmul.f32 %v5351_v46, %v2425_v14  ;;  %v1597_v23 = vadd.f32 %v1596_v28, %v1595_v30  ;;  %v2817_v9 = vsel %vm6563_vm13, %v2407_v21, %v2815_v55 }
 0x178   : > { %1381 = vperm.xlu1 %4098, %v1119_v51   ;;  %vm2429_vm15 = vweird.f32 %v5351_v46  ;;  %v2417_v48 = vand.u32 2147483647, %v5345_v0  ;;  %v2419_v58 = vand.u32 2147483648, %v5345_v0  ;;  %3978 = vmatmul.msk.f32.vlgmr.msra.gmra.mxu0 %vm1518_vm1, %v2817_v9  ;;  %v2028_v20 = vadd.f32 %v2027_v24, %v2026_v17 }
 0x179   : > { %1376 = vperm.xlu0 %4097, %v1118_v61   ;;  %v4119_v11 = vpop.eup %4118  ;;  %v1603_v44 = vrot.slane %v1602_v15, 4  ;;  %v2427_v2 = vadd.f32 %v5351_v46, %v2426_v63  ;;  %v2118_v40 = vmax.f32 %v2014_v36, 1.0  ;;  %v1598_v32 = vrot.slane %v1597_v23, 1  ;;  %vm5404_vm3 = vmor %vm2428_vm14, %vm2429_vm15 }
 0x17a   : > { %v2409_v25 = vmul.f32 %v4119_v11, %v5345_v0  ;;  %v1242_v18 = vpop.permute.xlu1 %1241  ;;  %vm2414_vm2 = vweird.f32 %v4119_v11  ;;  %4120 = vrcp.f32 %v5366_v53  ;;  %v2432_v54 = vand.u32 2147483647, %v5310_v10 }
 0x17b   : > { %v1237_v56 = vpop.permute.xlu0 %1236  ;;  %v1604_v26 = vadd.f32 %v1603_v44, %v1602_v15  ;;  %v5392_v49 = vpop.permute.xlu2 %2185  ;;  %v2435_v37 = vor.u32 1.1754944e-38, %v2434_v39  ;;  %v2029_v47 = vrot.slane %v2028_v20, 2  ;;  %2240 = vperm.xlu2 %4099, %v2118_v40   ;;  %vm2413_vm4 = vweird.f32 %v5345_v0  ;;  %v1122_v39 = vld [vmem:[%s4840_s27 + $0x1a0] sm:$0xff]  ;;  %v1031_v40 = vld [vmem:[%s4838_s25 + $0xc8] sm:$0xff] }
 0x17c   : > { %v2410_v35 = vsub.f32 1.0, %v2409_v25  ;;  %vm2418_vm6 = vcmp.eq.f32.partialorder %v2417_v48, 8.507059e+37  ;;  %v2420_v50 = vor.u32 1.1754944e-38, %v2419_v58  ;;  %v2431_v34 = vsel %vm5404_vm3, %v5351_v46, %v2427_v2  ;;  %vm2415_vm10 = vmor %vm2413_vm4, %vm2414_vm2  ;;  %v1124_v2 = vld [vmem:[%s4840_s27 + $0x1b0] sm:$0xff] }
 0x17d   : > { %v1605_v38 = vrot.slane %v1604_v26, 2  ;;  %v1475_v51 = vmul.f32 %v1242_v18, %v1027_v41  ;;  %v1474_v61 = vmul.f32 %v1237_v56, %v1026_v22  ;;  %v1599_v10 = vadd.f32 %v1598_v32, %v1597_v23 }
 0x17e   : > { %v2411_v31 = vmul.f32 %v4119_v11, %v2410_v35  ;;  %v2030_v30 = vadd.f32 %v2029_v47, %v2028_v20  ;;  %v2022_v45 = vrot.slane %v2021_v33, 1  ;;  %vm2433_vm14 = vcmp.eq.f32.partialorder %v2432_v54, 8.507059e+37 }
 0x17f   : > { %v1606_v59 = vadd.f32 %v1605_v38, %v1604_v26  ;;  %v2436_v46 = vsel %vm2433_vm14, %v2435_v37, %v2431_v34  ;;  %v1610_v14 = vsel %vm1518_vm1, %v1475_v51, 0.0  ;;  %v1609_v7 = vsel %vm1518_vm1, %v1474_v61, 0.0 }
 0x180   : > { %v2412_v19 = vadd.f32 %v4119_v11, %v2411_v31  ;;  %v5413_v12 = vpop.eup %4120  ;;  %v2031_v27 = vrot.slane %v2030_v30, 1  ;;  %v2023_v8 = vadd.f32 %v2022_v45, %v2021_v33  ;;  %v2034_v23 = vsel %vm6562_vm0, %v1121_v60, 0.0 }
 0x181   : > { %1391 = vperm.xlu0 %4097, %v1121_v60   ;;  %v1607_v62 = vrot.slane %v1606_v59, 1  ;;  %v2439_v16 = vmul.f32 %v5413_v12, %v5366_v53  ;;  %v2043_v25 = vsel %vm6562_vm0, %v1123_v57, 0.0  ;;  %v2042_v55 = vsel %vm6562_vm0, %v1122_v39, 0.0  ;;  %v1030_v60 = vld [vmem:[%s4838_s25 + $0xc0] sm:$0xff] }
 0x182   : > { %v2416_v3 = vsel %vm2415_vm10, %v4119_v11, %v2412_v19  ;;  %v1252_v4 = vpop.permute.xlu1 %1251  ;;  %v2032_v15 = vadd.f32 %v2031_v27, %v2030_v30  ;;  %v2119_v17 = vmax.f32 %v2023_v8, 1.0  ;;  %v1611_v11 = vadd.f32 %v1610_v14, %v1609_v7 }
 0x183   : > { %v1247_v0 = vpop.permute.xlu0 %1246  ;;  %v2421_v42 = vsel %vm2418_vm6, %v2420_v50, %v2416_v3  ;;  %v1608_v5 = vadd.f32 %v1607_v62, %v1606_v59  ;;  %v5417_v29 = vpop.permute.xlu2 %2190  ;;  %v1477_v44 = vmul.f32 %v1252_v4, %v1029_v6  ;;  %v2440_v56 = vsub.f32 1.0, %v2439_v16 }
 0x184   : > { %v5415_v43 = vmul.f32 %v2421_v42, %v1599_v10  ;;  %v2120_v63 = vmax.f32 %v2032_v15, 1.0  ;;  %2245 = vperm.xlu2 %4099, %v2119_v17   ;;  %v1476_v21 = vmul.f32 %v1247_v0, %v1028_v13  ;;  %4122 = vrcp.f32 %v5392_v49 }
 0x185   : > { %v5419_v28 = vmul.f32 %v2436_v46, %v1608_v5  ;;  %v1612_v26 = vrot.slane %v1611_v11, 4  ;;  %v2033_v9 = vsel %vm6562_vm0, %v1120_v1, 0.0  ;;  %v1619_v33 = vsel %vm1518_vm1, %v1477_v44, 0.0  ;;  %v1126_v5 = vld [vmem:[%s4840_s27 + $0x1c0] sm:$0xff] }
 0x186   : > { %2250 = vperm.xlu1 %4098, %v2120_v63   ;;  %v1618_v35 = vsel %vm1518_vm1, %v1476_v21, 0.0  ;;  %v2044_v48 = vadd.f32 %v2043_v25, %v2042_v55  ;;  %v2035_v58 = vadd.f32 %v2034_v23, %v2033_v9  ;;  %v2441_v38 = vmul.f32 %v5413_v12, %v2440_v56  ;;  %v1127_v21 = vld [vmem:[%s4840_s27 + $0x1c8] sm:$0xff]  ;;  %v1032_v9 = vld [vmem:[%s4838_s25 + $0xd0] sm:$0xff] }
 0x187   : > { %v1613_v32 = vadd.f32 %v1612_v26, %v1611_v11  ;;  %v1620_v31 = vadd.f32 %v1619_v33, %v1618_v35  ;;  %4124 = vrcp.f32 %v5417_v29  ;;  %v2447_v37 = vand.u32 2147483647, %v5366_v53  ;;  %v1033_v26 = vld [vmem:[%s4838_s25 + $0xd8] sm:$0xff] }
 0x188   : > { %v2036_v20 = vrot.slane %v2035_v58, 4  ;;  %v2045_v22 = vrot.slane %v2044_v48, 4  ;;  %v2442_v34 = vadd.f32 %v5413_v12, %v2441_v38  ;;  %vm2444_vm15 = vweird.f32 %v5413_v12  ;;  %v1034_v38 = vld [vmem:[%s4838_s25 + $0xe0] sm:$0xff] }
 0x189   : > { %1396 = vperm.xlu0 %4097, %v1122_v39   ;;  %v2449_v62 = vand.u32 2147483648, %v5366_v53  ;;  %vm2443_vm2 = vweird.f32 %v5366_v53  ;;  %v1614_v61 = vrot.slane %v1613_v32, 2  ;;  %v1621_v3 = vrot.slane %v1620_v31, 4 }
 0x18a   : > { %v1262_v24 = vpop.permute.xlu1 %1261  ;;  %v5443_v41 = vpop.eup %4122  ;;  %v2037_v54 = vadd.f32 %v2036_v20, %v2035_v58  ;;  %v2046_v45 = vadd.f32 %v2045_v22, %v2044_v48  ;;  %v2052_v4 = vsel %vm6562_vm0, %v1125_v52, 0.0  ;;  %v2051_v0 = vsel %vm6562_vm0, %v1124_v2, 0.0  ;;  %vm5459_vm3 = vmor %vm2443_vm2, %vm2444_vm15  ;;  %v1128_v22 = vld [vmem:[%s4840_s27 + $0x1d0] sm:$0xff] }
 0x18b   : > { %v1257_v18 = vpop.permute.xlu0 %1256  ;;  %v5435_v36 = vpop.permute.xlu2 %2195  ;;  %v1479_v59 = vmul.f32 %v1262_v24, %v1031_v40  ;;  %v2454_v10 = vmul.f32 %v5443_v41, %v5392_v49  ;;  %v2464_v53 = vand.u32 2147483648, %v5392_v49  ;;  %v2446_v8 = vsel %vm5459_vm3, %v5413_v12, %v2442_v34 }
 0x18c   : > { %1386 = vperm.xlu2 %4099, %v1120_v1   ;;  %v1478_v47 = vmul.f32 %v1257_v18, %v1030_v60  ;;  %v2038_v51 = vrot.slane %v2037_v54, 2  ;;  %vm5471_vm4 = vcmp.eq.f32.partialorder %v2447_v37, 8.507059e+37  ;;  %v2450_v15 = vor.u32 1.1754944e-38, %v2449_v62 }
 0x18d   : > { %v1628_v27 = vsel %vm1518_vm1, %v1479_v59, 0.0  ;;  %v5466_v7 = vpop.eup %4124  ;;  %v1615_v13 = vadd.f32 %v1614_v61, %v1613_v32  ;;  %v2455_v16 = vsub.f32 1.0, %v2454_v10  ;;  %v1622_v17 = vadd.f32 %v1621_v3, %v1620_v31 }
 0x18e   : > { %1401 = vperm.xlu1 %4098, %v1123_v57   ;;  %v2039_v42 = vadd.f32 %v2038_v51, %v2037_v54  ;;  %v1627_v14 = vsel %vm1518_vm1, %v1478_v47, 0.0  ;;  %v2053_v57 = vadd.f32 %v2052_v4, %v2051_v0  ;;  %v2047_v11 = vrot.slane %v2046_v45, 2 }
 0x18f   : > { %v1629_v63 = vadd.f32 %v1628_v27, %v1627_v14  ;;  %4126 = vrcp.f32 %v5435_v36  ;;  %vm2458_vm6 = vweird.f32 %v5392_v49  ;;  %v2462_v12 = vand.u32 2147483647, %v5392_v49 }
 0x190   : > { %v2040_v6 = vrot.slane %v2039_v42, 1  ;;  %v5479_v1 = vor.u32 1.1754944e-38, %v2464_v53  ;;  %v2469_v23 = vmul.f32 %v5466_v7, %v5417_v29  ;;  %v5485_v24 = vsel %vm5471_vm4, %v2450_v15, %v2446_v8  ;;  %v1129_v8 = vld [vmem:[%s4840_s27 + $0x1d8] sm:$0xff] }
 0x191   : > { %1406 = vperm.xlu0 %4097, %v1124_v2   ;;  %vm2459_vm10 = vweird.f32 %v5443_v41  ;;  %v2479_v18 = vand.u32 2147483648, %v5417_v29  ;;  %v1616_v33 = vrot.slane %v1615_v13, 1  ;;  %v2456_v35 = vmul.f32 %v5443_v41, %v2455_v16  ;;  %v1035_v2 = vld [vmem:[%s4838_s25 + $0xe8] sm:$0xff] }
 0x192   : > { %v1272_v19 = vpop.permute.xlu1 %1271  ;;  %v2041_v44 = vadd.f32 %v2040_v6, %v2039_v42  ;;  %v2054_v48 = vrot.slane %v2053_v57, 4  ;;  %v2061_v58 = vsel %vm6562_vm0, %v1127_v21, 0.0  ;;  %v1623_v40 = vrot.slane %v1622_v17, 2  ;;  %vm5520_vm2 = vmor %vm2458_vm6, %vm2459_vm10 }
 0x193   : > { %v1267_v50 = vpop.permute.xlu0 %1266  ;;  %v5454_v30 = vpop.permute.xlu2 %2200  ;;  %v1630_v60 = vrot.slane %v1629_v63, 4  ;;  %v2060_v32 = vsel %vm6562_vm0, %v1126_v5, 0.0  ;;  %v2048_v31 = vadd.f32 %v2047_v11, %v2046_v45  ;;  %v2470_v54 = vsub.f32 1.0, %v2469_v23 }
 0x194   : > { %v2121_v56 = vmax.f32 %v2041_v44, 1.0  ;;  %v1481_v37 = vmul.f32 %v1272_v19, %v1033_v26  ;;  %v1480_v59 = vmul.f32 %v1267_v50, %v1032_v9  ;;  %v2062_v47 = vadd.f32 %v2061_v58, %v2060_v32 }
 0x195   : > { %v2477_v34 = vand.u32 2147483647, %v5417_v29  ;;  %v2049_v62 = vrot.slane %v2048_v31, 1  ;;  %v2457_v10 = vadd.f32 %v5443_v41, %v2456_v35  ;;  %vm5503_vm14 = vcmp.eq.f32.partialorder %v2462_v12, 8.507059e+37 }
 0x196   : > { %1411 = vperm.xlu1 %4098, %v1125_v52   ;;  %2255 = vperm.xlu2 %4099, %v2121_v56   ;;  %v5499_v52 = vpop.eup %4126  ;;  %v5507_v45 = vor.u32 1.1754944e-38, %v2479_v18  ;;  %v2055_v4 = vadd.f32 %v2054_v48, %v2053_v57  ;;  %v2063_v19 = vrot.slane %v2062_v47, 4  ;;  %v1617_v50 = vadd.f32 %v1616_v33, %v1615_v13  ;;  %v1130_v18 = vld [vmem:[%s4840_s27 + $0x1e0] sm:$0xff] }
 0x197   : > { %v1624_v0 = vadd.f32 %v1623_v40, %v1622_v17  ;;  %vm2473_vm15 = vweird.f32 %v5417_v29  ;;  %v1631_v42 = vadd.f32 %v1630_v60, %v1629_v63  ;;  %v2471_v46 = vmul.f32 %v5466_v7, %v2470_v54 }
 0x198   : > { %v2484_v53 = vmul.f32 %v5499_v52, %v5435_v36  ;;  %v1637_v27 = vsel %vm1518_vm1, %v1481_v37, 0.0  ;;  %v1636_v14 = vsel %vm1518_vm1, %v1480_v59, 0.0  ;;  %v2064_v13 = vadd.f32 %v2063_v19, %v2062_v47 }
 0x199   : > { %1416 = vperm.xlu0 %4097, %v1126_v5   ;;  %v2050_v5 = vadd.f32 %v2049_v62, %v2048_v31  ;;  %v2461_v11 = vsel %vm5520_vm2, %v5443_v41, %v2457_v10  ;;  %vm2474_vm3 = vweird.f32 %v5466_v7  ;;  %v2056_v49 = vrot.slane %v2055_v4, 2 }
 0x19a   : > { %v1282_v25 = vpop.permute.xlu1 %1281  ;;  %4128 = vrcp.f32 %v5454_v30  ;;  %v1632_v44 = vrot.slane %v1631_v42, 2  ;;  %v2070_v12 = vsel %vm6562_vm0, %v1129_v8, 0.0  ;;  %v2069_v23 = vsel %vm6562_vm0, %v1128_v22, 0.0  ;;  %vm5557_vm6 = vmor %vm2473_vm15, %vm2474_vm3 }
 0x19b   : > { %v1277_v55 = vpop.permute.xlu0 %1276  ;;  %v5495_v20 = vpop.permute.xlu2 %2205  ;;  %v1483_v51 = vmul.f32 %v1282_v25, %v1035_v2  ;;  %v2122_v16 = vmax.f32 %v2050_v5, 1.0  ;;  %v1037_v25 = vld [vmem:[%s4838_s25 + $0xf8] sm:$0xff]  ;;  %v5539_v56 = vmul.f32 %v5485_v24, %v1617_v50  ;;  %v2071_v26 = vadd.f32 %v2070_v12, %v2069_v23  ;;  %v1131_v5 = vld [vmem:[%s4840_s27 + $0x1e8] sm:$0xff] }
 0x19c   : > { %v1482_v61 = vmul.f32 %v1277_v55, %v1034_v38  ;;  %v1036_v55 = vld [vmem:[%s4838_s25 + $0xf0] sm:$0xff]  ;;  %4130 = vrcp.f32 %v5495_v20  ;;  %v1625_v9 = vrot.slane %v1624_v0, 1  ;;  %v2472_v33 = vadd.f32 %v5466_v7, %v2471_v46 }
 0x19d   : > { %v1646_v17 = vsel %vm1518_vm1, %v1483_v51, 0.0  ;;  %v2485_v35 = vsub.f32 1.0, %v2484_v53  ;;  %v2065_v48 = vrot.slane %v2064_v13, 2  ;;  %vm5543_vm4 = vcmp.eq.f32.partialorder %v2477_v34, 8.507059e+37 }
 0x19e   : > { %1421 = vperm.xlu1 %4098, %v1127_v21   ;;  %v1645_v57 = vsel %vm1518_vm1, %v1482_v61, 0.0  ;;  %v1638_v21 = vadd.f32 %v1637_v27, %v1636_v14  ;;  %2260 = vperm.xlu2 %4099, %v2122_v16   ;;  %v2072_v2 = vrot.slane %v2071_v26, 4  ;;  %v2057_v38 = vadd.f32 %v2056_v49, %v2055_v4 }
 0x19f   : > { %v1647_v41 = vadd.f32 %v1646_v17, %v1645_v57  ;;  %v2466_v24 = vsel %vm5503_vm14, %v5479_v1, %v2461_v11  ;;  %v1633_v32 = vadd.f32 %v1632_v44, %v1631_v42  ;;  %v2492_v31 = vand.u32 2147483647, %v5435_v36 }
 0x1a0   : > { %v5551_v54 = vpop.eup %4128  ;;  %vm2488_vm10 = vweird.f32 %v5435_v36  ;;  %v2058_v1 = vrot.slane %v2057_v38, 1  ;;  %v1626_v29 = vadd.f32 %v1625_v9, %v1624_v0  ;;  %v2476_v61 = vsel %vm5557_vm6, %v5466_v7, %v2472_v33  ;;  %v1132_v7 = vld [vmem:[%s4840_s27 + $0x1f0] sm:$0xff]  ;;  %v1133_v33 = vld [vmem:[%s4840_s27 + $0x1f8] sm:$0xff] }
 0x1a1   : > { %1426 = vperm.xlu0 %4097, %v1128_v22   ;;  %v1639_v22 = vrot.slane %v1638_v21, 4  ;;  %v1648_v59 = vrot.slane %v1647_v41, 4  ;;  %v2494_v10 = vand.u32 2147483648, %v5435_v36  ;;  %v2486_v19 = vmul.f32 %v5499_v52, %v2485_v35 }
 0x1a2   : > { %v1292_v39 = vpop.permute.xlu1 %1291  ;;  %v5572_v4 = vpop.eup %4130  ;;  %v2073_v50 = vadd.f32 %v2072_v2, %v2071_v26  ;;  %v2059_v42 = vadd.f32 %v2058_v1, %v2057_v38  ;;  %v2066_v46 = vadd.f32 %v2065_v48, %v2064_v13  ;;  %v1634_v27 = vrot.slane %v1633_v32, 1 }
 0x1a3   : > { %v1287_v15 = vpop.permute.xlu0 %1286  ;;  %v5531_v63 = vpop.permute.xlu2 %1306  ;;  %v1485_v40 = vmul.f32 %v1292_v39, %v1037_v25  ;;  %v1640_v14 = vadd.f32 %v1639_v22, %v1638_v21  ;;  %v2499_v0 = vmul.f32 %v5551_v54, %v5454_v30  ;;  %v2509_v39 = vand.u32 2147483648, %v5454_v30  ;;  %v1039_v22 = vld [vmem:[%s4838_s25 + $0x108] sm:$0xff] }
 0x1a4   : > { %v1484_v60 = vmul.f32 %v1287_v15, %v1036_v55  ;;  %v1649_v15 = vadd.f32 %v1648_v59, %v1647_v41  ;;  %v2123_v6 = vmax.f32 %v2059_v42, 1.0  ;;  %v2067_v16 = vrot.slane %v2066_v46, 1  ;;  %v1041_v59 = vld [vmem:[%s4838_s25 + $0x118] sm:$0xff] }
 0x1a5   : > { %v1655_v47 = vsel %vm1518_vm1, %v1485_v40, 0.0  ;;  %v2514_v17 = vmul.f32 %v5572_v4, %v5495_v20  ;;  %v2079_v13 = vsel %vm6562_vm0, %v1131_v5, 0.0  ;;  %v2078_v11 = vsel %vm6562_vm0, %v1130_v18, 0.0 }
 0x1a6   : > { %1431 = vperm.xlu1 %4098, %v1129_v8   ;;  %v1654_v34 = vsel %vm1518_vm1, %v1484_v60, 0.0  ;;  %v5587_v49 = vadd.f32 %v5499_v52, %v2486_v19  ;;  %vm2489_vm14 = vweird.f32 %v5499_v52  ;;  %v2074_v44 = vrot.slane %v2073_v50, 2  ;;  %2265 = vperm.xlu2 %4099, %v2123_v6   ;;  %v1040_v60 = vld [vmem:[%s4838_s25 + $0x110] sm:$0xff] }
 0x1a7   : > { %v1656_v3 = vadd.f32 %v1655_v47, %v1654_v34  ;;  %v2068_v21 = vadd.f32 %v2067_v16, %v2066_v46  ;;  %v5593_v12 = vsel %vm5543_vm4, %v5507_v45, %v2476_v61  ;;  %v5595_v23 = vor.u32 1.1754944e-38, %v2494_v10  ;;  %vm5607_vm15 = vmor %vm2488_vm10, %vm2489_vm14 }
 0x1a8   : > { %v1641_v25 = vrot.slane %v1640_v14, 2  ;;  %v2500_v55 = vsub.f32 1.0, %v2499_v0  ;;  %v2507_v41 = vand.u32 2147483647, %v5454_v30  ;;  %v1650_v26 = vrot.slane %v1649_v15, 2 }
 0x1a9   : > { %1436 = vperm.xlu0 %4097, %v1130_v18   ;;  %v1657_v8 = vrot.slane %v1656_v3, 4  ;;  %v5597_v18 = vmul.f32 %v2466_v24, %v1626_v29  ;;  %v2080_v9 = vadd.f32 %v2079_v13, %v2078_v11  ;;  %v1635_v45 = vadd.f32 %v1634_v27, %v1633_v32  ;;  %v1038_v29 = vld [vmem:[%s4838_s25 + $0x100] sm:$0xff] }
 0x1aa   : > { %v5564_v62 = vpop.permute.xlu1 %1301  ;;  %v5611_v2 = vor.u32 1.1754944e-38, %v2509_v39  ;;  %v2515_v38 = vsub.f32 1.0, %v2514_v17  ;;  %v2491_v24 = vsel %vm5607_vm15, %v5499_v52, %v5587_v49  ;;  %vm5618_vm2 = vcmp.eq.f32.partialorder %v2492_v31, 8.507059e+37 }
 0x1ab   : > { %v5566_v51 = vpop.permute.xlu0 %1296  ;;  %v5576_v53 = vpop.permute.xlu2 %2215  ;;  %v1658_v57 = vadd.f32 %v1657_v8, %v1656_v3  ;;  %vm2503_vm3 = vweird.f32 %v5454_v30  ;;  %vm2504_vm4 = vweird.f32 %v5551_v54  ;;  %v2124_v36 = vmax.f32 %v2068_v21, 1.0 }
 0x1ac   : > { %v2075_v37 = vadd.f32 %v2074_v44, %v2073_v50  ;;  %v1642_v47 = vadd.f32 %v1641_v25, %v1640_v14  ;;  %v2501_v34 = vmul.f32 %v5551_v54, %v2500_v55  ;;  %v2088_v52 = vsel %vm6562_vm0, %v1133_v33, 0.0  ;;  %vm5661_vm14 = vmor %vm2503_vm3, %vm2504_vm4 }
 0x1ad   : > { %v1659_v40 = vrot.slane %v1658_v57, 2  ;;  %v2087_v31 = vsel %vm6562_vm0, %v1132_v7, 0.0  ;;  %v1651_v61 = vadd.f32 %v1650_v26, %v1649_v15  ;;  %v1488_v10 = vmul.f32 %v5531_v63, %v1040_v60 }
 0x1ae   : > { %1441 = vperm.xlu1 %4098, %v1131_v5   ;;  %v2081_v3 = vrot.slane %v2080_v9, 4  ;;  %v2076_v19 = vrot.slane %v2075_v37, 1  ;;  %v2516_v42 = vmul.f32 %v5572_v4, %v2515_v38  ;;  %v1487_v50 = vmul.f32 %v5564_v62, %v1039_v22  ;;  %2270 = vperm.xlu2 %4099, %v2124_v36   ;;  %v1043_v36 = vld [vmem:[%s4838_s25 + $0x128] sm:$0xff] }
 0x1af   : > { %v1660_v5 = vadd.f32 %v1659_v40, %v1658_v57  ;;  %vm5635_vm6 = vcmp.eq.f32.partialorder %v2507_v41, 8.507059e+37  ;;  %v1486_v14 = vmul.f32 %v5566_v51, %v1038_v29  ;;  %v2089_v0 = vadd.f32 %v2088_v52, %v2087_v31 }
 0x1b0   : > { %v2077_v8 = vadd.f32 %v2076_v19, %v2075_v37  ;;  %v1643_v63 = vrot.slane %v1642_v47, 1  ;;  %v2522_v39 = vand.u32 2147483647, %v5495_v20  ;;  %v2524_v15 = vand.u32 2147483648, %v5495_v20 }
 0x1b1   : > { %1446 = vperm.xlu0 %4097, %v1132_v7   ;;  %v2502_v7 = vadd.f32 %v5551_v54, %v2501_v34  ;;  %v1652_v62 = vrot.slane %v1651_v61, 1  ;;  %vm2519_vm10 = vweird.f32 %v5572_v4  ;;  %v2082_v6 = vadd.f32 %v2081_v3, %v2080_v9 }
 0x1b2   : > { %v5601_v35 = vpop.permute.xlu1 %2210  ;;  %v2517_v57 = vadd.f32 %v5572_v4, %v2516_v42  ;;  %v1661_v13 = vrot.slane %v1660_v5, 1  ;;  %v1672_v11 = vsel %vm1518_vm1, %v1488_v10, 0.0  ;;  %v1664_v49 = vsel %vm1518_vm1, %v1487_v50, 0.0  ;;  %v1042_v42 = vld [vmem:[%s4838_s25 + $0x120] sm:$0xff] }
 0x1b3   : > { %v1312_v48 = vpop.permute.xlu0 %1311  ;;  %v5626_v1 = vpop.permute.xlu2 %2220  ;;  %4132 = vrcp.f32 %v5601_v35  ;;  %v1663_v44 = vsel %vm1518_vm1, %v1486_v14, 0.0  ;;  %v2090_v21 = vrot.slane %v2089_v0, 4  ;;  %v2125_v25 = vmax.f32 %v2077_v8, 1.0 }
 0x1b4   : > { %v1489_v46 = vmul.f32 %v1312_v48, %v1041_v59  ;;  %4134 = vrcp.f32 %v5576_v53  ;;  %v2482_v41 = vmul.f32 %v5593_v12, %v1635_v45  ;;  %v2496_v26 = vsel %vm5618_vm2, %v5595_v23, %v2491_v24 }
 0x1b5   : > { %v1644_v9 = vadd.f32 %v1643_v63, %v1642_v47  ;;  %v1653_v38 = vadd.f32 %v1652_v62, %v1651_v61  ;;  %vm2518_vm15 = vweird.f32 %v5495_v20  ;;  %v2083_v12 = vrot.slane %v2082_v6, 2 }
 0x1b6   : > { %1451 = vperm.xlu1 %4098, %v1133_v33   ;;  %v1673_v16 = vsel %vm1518_vm1, %v1489_v46, 0.0  ;;  %v2506_v23 = vsel %vm5661_vm14, %v5551_v54, %v2502_v7  ;;  %vm5673_vm2 = vmor %vm2518_vm15, %vm2519_vm10  ;;  %vm5677_vm3 = vcmp.eq.f32.partialorder %v2522_v39, 8.507059e+37  ;;  %v1665_v40 = vadd.f32 %v1664_v49, %v1663_v44  ;;  %2275 = vperm.xlu2 %4099, %v2125_v25  }
 0x1b7   : > { %v1674_v48 = vadd.f32 %v1673_v16, %v1672_v11  ;;  %4136 = vrcp.f32 %v5626_v1  ;;  %v1662_v60 = vadd.f32 %v1661_v13, %v1660_v5  ;;  %v2525_v20 = vor.u32 1.1754944e-38, %v2524_v15  ;;  %v1045_v16 = vld [vmem:[%s4838_s25 + $0x138] sm:$0xff] }
 0x1b8   : > { %v2091_v24 = vadd.f32 %v2090_v21, %v2089_v0  ;;  %v2521_v54 = vsel %vm5673_vm2, %v5572_v4, %v2517_v57  ;;  %v2818_v32 = vsel %vm2804_vm12, %v5419_v28, %v5415_v43  ;;  %v2497_v47 = vmul.f32 %v2496_v26, %v1644_v9 }
 0x1b9   : > { %v5665_v58 = vpop.eup %4132  ;;  %v1675_v59 = vrot.slane %v1674_v48, 4  ;;  %v2511_v34 = vsel %vm5635_vm6, %v5611_v2, %v2506_v23  ;;  %v2526_v4 = vsel %vm5677_vm3, %v2525_v20, %v2521_v54  ;;  %v2819_v43 = vsel %vm2806_vm5, %v5539_v56, %v2818_v32 }
 0x1ba   : > { %v1322_v17 = vpop.permute.xlu1 %1321  ;;  %v5689_v22 = vpop.eup %4134  ;;  %v2529_v37 = vmul.f32 %v5665_v58, %v5601_v35  ;;  %v2512_v29 = vmul.f32 %v2511_v34, %v1653_v38  ;;  %v2084_v28 = vadd.f32 %v2083_v12, %v2082_v6  ;;  %v1666_v61 = vrot.slane %v1665_v40, 4  ;;  %v1047_v38 = vld [vmem:[%s4838_s25 + $0x148] sm:$0xff] }
 0x1bb   : > { %v1317_v51 = vpop.permute.xlu0 %1316  ;;  %v5651_v55 = vpop.permute.xlu2 %2225  ;;  %v2527_v10 = vmul.f32 %v2526_v4, %v1662_v60  ;;  %v2820_v3 = vsel %vm2808_vm7, %v5597_v18, %v2819_v43  ;;  %v1491_v19 = vmul.f32 %v1322_v17, %v1043_v36  ;;  %v2544_v2 = vmul.f32 %v5689_v22, %v5576_v53  ;;  %v1044_v17 = vld [vmem:[%s4838_s25 + $0x130] sm:$0xff] }
 0x1bc   : > { %v2821_v5 = vsel %vm2810_vm8, %v2482_v41, %v2820_v3  ;;  %v2085_v50 = vrot.slane %v2084_v28, 1  ;;  %v2554_v56 = vand.u32 2147483648, %v5576_v53  ;;  %v2092_v27 = vrot.slane %v2091_v24, 2  ;;  %v5825_v4 = vld [vmem:[#allocation10 + $0x70] sm:$0xff] }
 0x1bd   : > { %v5706_v46 = vpop.eup %4136  ;;  %v1676_v14 = vadd.f32 %v1675_v59, %v1674_v48  ;;  %v2822_v0 = vsel %vm2812_vm9, %v2497_v47, %v2821_v5  ;;  %v2530_v18 = vsub.f32 1.0, %v2529_v37  ;;  %v1490_v39 = vmul.f32 %v1317_v51, %v1042_v42  ;;  %v1046_v59 = vld [vmem:[%s4838_s25 + $0x140] sm:$0xff]  ;;  %v1049_v5 = vld [vmem:[%s4838_s25 + $0x158] sm:$0xff]  ;;  %2999 = vmatpush.msra.mxu3 %v5825_v4  ;;  %3136 = vmatpush.msrb.mxu0 %v5825_v4 }
 0x1be   : > { %v2823_v63 = vsel %vm2814_vm11, %v2512_v29, %v2822_v0  ;;  %v2086_v7 = vadd.f32 %v2085_v50, %v2084_v28  ;;  %v1667_v15 = vadd.f32 %v1666_v61, %v1665_v40  ;;  %v1682_v6 = vsel %vm1518_vm1, %v1491_v19, 0.0 }
 0x1bf   : > { %v2824_v62 = vsel %vm6563_vm13, %v2527_v10, %v2823_v63  ;;  %v2545_v57 = vsub.f32 1.0, %v2544_v2  ;;  %v2559_v13 = vmul.f32 %v5706_v46, %v5626_v1  ;;  %v1681_v49 = vsel %vm1518_vm1, %v1490_v39, 0.0 }
 0x1c0   : > { %3979 = vmatmul.msk.f32.gmra.mxu0 %vm1518_vm1, %v2824_v62  ;;  %v2126_v11 = vmax.f32 %v2086_v7, 1.0  ;;  %v2552_v44 = vand.u32 2147483647, %v5576_v53  ;;  %v5722_v51 = vor.u32 1.1754944e-38, %v2554_v56  ;;  %v1677_v21 = vrot.slane %v1676_v14, 2 }
 0x1c1   : > { %v2093_v25 = vadd.f32 %v2092_v27, %v2091_v24  ;;  %v2531_v41 = vmul.f32 %v5665_v58, %v2530_v18  ;;  %v1683_v26 = vadd.f32 %v1682_v6, %v1681_v49  ;;  %v1668_v23 = vrot.slane %v1667_v15, 2 }
 0x1c2   : > { %v1332_v52 = vpop.permute.xlu1 %1331  ;;  %2280 = vperm.xlu2 %4099, %v2126_v11   ;;  %vm2548_vm4 = vweird.f32 %v5576_v53  ;;  %v2537_v30 = vand.u32 2147483647, %v5601_v35  ;;  %v2539_v45 = vand.u32 2147483648, %v5601_v35  ;;  %v2546_v60 = vmul.f32 %v5689_v22, %v2545_v57 }
 0x1c3   : > { %v1327_v31 = vpop.permute.xlu0 %1326  ;;  %v5710_v8 = vpop.permute.xlu2 %2230  ;;  %v1493_v9 = vmul.f32 %v1332_v52, %v1045_v16  ;;  %v2094_v40 = vrot.slane %v2093_v25, 1  ;;  %v2560_v20 = vsub.f32 1.0, %v2559_v13  ;;  %v1678_v32 = vadd.f32 %v1677_v21, %v1676_v14 }
 0x1c4   : > { %v1492_v33 = vmul.f32 %v1327_v31, %v1044_v17  ;;  %4138 = vrcp.f32 %v5651_v55  ;;  %v2532_v47 = vadd.f32 %v5665_v58, %v2531_v41  ;;  %vm2534_vm6 = vweird.f32 %v5665_v58 }
 0x1c5   : > { %v1691_v24 = vsel %vm1518_vm1, %v1493_v9, 0.0  ;;  %v2095_v36 = vadd.f32 %v2094_v40, %v2093_v25  ;;  %v1684_v34 = vrot.slane %v1683_v26, 4  ;;  %4140 = vrcp.f32 %v5710_v8 }
 0x1c6   : > { %v1690_v54 = vsel %vm1518_vm1, %v1492_v33, 0.0  ;;  %v1669_v29 = vadd.f32 %v1668_v23, %v1667_v15  ;;  %vm5737_vm10 = vcmp.eq.f32.partialorder %v2552_v44, 8.507059e+37  ;;  %vm2533_vm14 = vweird.f32 %v5601_v35  ;;  %v1048_v15 = vld [vmem:[%s4838_s25 + $0x150] sm:$0xff] }
 0x1c7   : > { %v2127_v43 = vmax.f32 %v2095_v36, 1.0  ;;  %v1692_v28 = vadd.f32 %v1691_v24, %v1690_v54  ;;  %vm2549_vm15 = vweird.f32 %v5689_v22  ;;  %vm5745_vm2 = vcmp.eq.f32.partialorder %v2537_v30, 8.507059e+37  ;;  %vm5751_vm3 = vmor %vm2533_vm14, %vm2534_vm6 }
 0x1c8   : > { %v2561_v61 = vmul.f32 %v5706_v46, %v2560_v20  ;;  %v2547_v3 = vadd.f32 %v5689_v22, %v2546_v60  ;;  %v2540_v35 = vor.u32 1.1754944e-38, %v2539_v45  ;;  %v1679_v42 = vrot.slane %v1678_v32, 1  ;;  %vm5773_vm14 = vmor %vm2548_vm4, %vm2549_vm15  ;;  %v1051_v20 = vld [vmem:[%s4838_s25 + $0x168] sm:$0xff] }
 0x1c9   : > { %v2536_v50 = vsel %vm5751_vm3, %v5665_v58, %v2532_v47  ;;  %vm2563_vm0 = vweird.f32 %v5626_v1  ;;  %v1685_v56 = vadd.f32 %v1684_v34, %v1683_v26  ;;  %v1670_v63 = vrot.slane %v1669_v29, 1  ;;  %v1052_v58 = vld [vmem:[%s4838_s25 + $0x170] sm:$0xff] }
 0x1ca   : > { %v1342_v48 = vpop.permute.xlu1 %1341  ;;  %2285 = vperm.xlu2 %4099, %v2127_v43   ;;  %v5762_v18 = vpop.eup %4138  ;;  %vm2564_vm6 = vweird.f32 %v5706_v46  ;;  %v2567_v7 = vand.u32 2147483647, %v5626_v1  ;;  %v1693_v39 = vrot.slane %v1692_v28, 4  ;;  %v2562_v6 = vadd.f32 %v5706_v46, %v2561_v61 }
 0x1cb   : > { %v1337_v12 = vpop.permute.xlu0 %1336  ;;  %v1495_v37 = vmul.f32 %v1342_v48, %v1047_v38  ;;  %v5742_v52 = vpop.permute.xlu2 %2235  ;;  %v2551_v57 = vsel %vm5773_vm14, %v5689_v22, %v2547_v3  ;;  %v2541_v13 = vsel %vm5745_vm2, %v2540_v35, %v2536_v50  ;;  %v1680_v11 = vadd.f32 %v1679_v42, %v1678_v32  ;;  %vm5792_vm4 = vmor %vm2563_vm0, %vm2564_vm6 }
 0x1cc   : > { %v1494_v10 = vmul.f32 %v1337_v12, %v1046_v59  ;;  %v5767_v62 = vpop.eup %4140  ;;  %4142 = vrcp.f32 %v5742_v52  ;;  %v2569_v53 = vand.u32 2147483648, %v5626_v1  ;;  %v1686_v49 = vrot.slane %v1685_v56, 2 }
 0x1cd   : > { %v1700_v2 = vsel %vm1518_vm1, %v1495_v37, 0.0  ;;  %v2574_v44 = vmul.f32 %v5762_v18, %v5651_v55  ;;  %v1671_v41 = vadd.f32 %v1670_v63, %v1669_v29  ;;  %vm5796_vm15 = vcmp.eq.f32.partialorder %v2567_v7, 8.507059e+37  ;;  %v1050_v37 = vld [vmem:[%s4838_s25 + $0x160] sm:$0xff] }
 0x1ce   : > { %v1699_v27 = vsel %vm1518_vm1, %v1494_v10, 0.0  ;;  %v1694_v9 = vadd.f32 %v1693_v39, %v1692_v28  ;;  %v2589_v33 = vmul.f32 %v5767_v62, %v5710_v8  ;;  %v2556_v48 = vsel %vm5737_vm10, %v5722_v51, %v2551_v57 }
 0x1cf   : > { %v1701_v16 = vadd.f32 %v1700_v2, %v1699_v27  ;;  %v2566_v1 = vsel %vm5792_vm4, %v5706_v46, %v2562_v6  ;;  %v5809_v23 = vmul.f32 %v2541_v13, %v1671_v41  ;;  %v5811_v30 = vmul.f32 %v2556_v48, %v1680_v11 }
 0x1d0   : > { %v2570_v45 = vor.u32 1.1754944e-38, %v2569_v53  ;;  %v1687_v51 = vadd.f32 %v1686_v49, %v1685_v56  ;;  %v2575_v54 = vsub.f32 1.0, %v2574_v44  ;;  %v2584_v32 = vand.u32 2147483648, %v5651_v55 }
 0x1d1   : > { %v1702_v38 = vrot.slane %v1701_v16, 4  ;;  %v1695_v47 = vrot.slane %v1694_v9, 2  ;;  %v2590_v34 = vsub.f32 1.0, %v2589_v33  ;;  %vm2578_vm0 = vweird.f32 %v5651_v55 }
 0x1d2   : > { %v1352_v14 = vpop.permute.xlu1 %1351  ;;  %v5816_v24 = vpop.eup %4142  ;;  %v5823_v59 = vsel %vm5796_vm15, %v2570_v45, %v2566_v1  ;;  %v2582_v43 = vand.u32 2147483647, %v5651_v55  ;;  %v2599_v28 = vand.u32 2147483648, %v5710_v8  ;;  %vm2593_vm10 = vweird.f32 %v5710_v8 }
 0x1d3   : > { %v1347_v0 = vpop.permute.xlu0 %1346  ;;  %v1497_v17 = vmul.f32 %v1352_v14, %v1049_v5  ;;  %v1703_v31 = vadd.f32 %v1702_v38, %v1701_v16  ;;  %v2597_v10 = vand.u32 2147483647, %v5710_v8  ;;  %v2604_v3 = vmul.f32 %v5816_v24, %v5742_v52 }
 0x1d4   : > { %v1496_v25 = vmul.f32 %v1347_v0, %v1048_v15  ;;  %v1688_v42 = vrot.slane %v1687_v51, 1  ;;  %v2576_v2 = vmul.f32 %v5762_v18, %v2575_v54  ;;  %v5837_v5 = vor.u32 1.1754944e-38, %v2584_v32  ;;  %v1053_v15 = vld [vmem:[%s4838_s25 + $0x178] sm:$0xff] }
 0x1d5   : > { %v1709_v21 = vsel %vm1518_vm1, %v1497_v17, 0.0  ;;  %v5813_v60 = vpop.permute.xlu2 %2240  ;;  %vm2579_vm2 = vweird.f32 %v5762_v18  ;;  %v1696_v56 = vadd.f32 %v1695_v47, %v1694_v9  ;;  %v2591_v27 = vmul.f32 %v5767_v62, %v2590_v34 }
 0x1d6   : > { %v1708_v12 = vsel %vm1518_vm1, %v1496_v25, 0.0  ;;  %4144 = vrcp.f32 %v5813_v60  ;;  %vm2594_vm3 = vweird.f32 %v5767_v62  ;;  %v2600_v63 = vor.u32 1.1754944e-38, %v2599_v28  ;;  %vm5869_vm4 = vmor %vm2578_vm0, %vm2579_vm2 }
 0x1d7   : > { %v1710_v40 = vadd.f32 %v1709_v21, %v1708_v12  ;;  %v1704_v7 = vrot.slane %v1703_v31, 2  ;;  %vm5848_vm6 = vcmp.eq.f32.partialorder %v2582_v43, 8.507059e+37  ;;  %vm5852_vm14 = vcmp.eq.f32.partialorder %v2597_v10, 8.507059e+37  ;;  %vm5883_vm13 = vmor %vm2593_vm10, %vm2594_vm3 }
 0x1d8   : > { %v2605_v17 = vsub.f32 1.0, %v2604_v3  ;;  %v2612_v57 = vand.u32 2147483647, %v5742_v52  ;;  %v1689_v53 = vadd.f32 %v1688_v42, %v1687_v51  ;;  %v2577_v49 = vadd.f32 %v5762_v18, %v2576_v2 }
 0x1d9   : > { %v1711_v29 = vrot.slane %v1710_v40, 4  ;;  %v2614_v44 = vand.u32 2147483648, %v5742_v52  ;;  %v1697_v22 = vrot.slane %v1696_v56, 1  ;;  %v2592_v26 = vadd.f32 %v5767_v62, %v2591_v27  ;;  %v5918_v27 = vld [vmem:[#allocation10 + $0x40] sm:$0xff] }
 0x1da   : > { %v1362_v46 = vpop.permute.xlu1 %1361  ;;  %v1705_v1 = vadd.f32 %v1704_v7, %v1703_v31  ;;  %vm2608_vm15 = vweird.f32 %v5742_v52  ;;  %v2581_v54 = vsel %vm5869_vm4, %v5762_v18, %v2577_v49  ;;  %vm5894_vm0 = vcmp.eq.f32.partialorder %v2612_v57, 8.507059e+37 }
 0x1db   : > { %v1357_v36 = vpop.permute.xlu0 %1356  ;;  %v1499_v61 = vmul.f32 %v1362_v46, %v1051_v20  ;;  %v1712_v19 = vadd.f32 %v1711_v29, %v1710_v40  ;;  %v2606_v40 = vmul.f32 %v5816_v24, %v2605_v17  ;;  %v2615_v32 = vor.u32 1.1754944e-38, %v2614_v44  ;;  %v5948_v44 = vld [vmem:[#allocation10 + $0x30] sm:$0xff] }
 0x1dc   : > { %v1498_v35 = vmul.f32 %v1357_v36, %v1050_v37  ;;  %v5843_v0 = vpop.eup %4144  ;;  %v5889_v37 = vmul.f32 %v5823_v59, %v1689_v53  ;;  %v1698_v47 = vadd.f32 %v1697_v22, %v1696_v56  ;;  %v2596_v18 = vsel %vm5883_vm13, %v5767_v62, %v2592_v26  ;;  %v5902_v59 = vld [vmem:[#allocation10 + $0x50] sm:$0xff]  ;;  %v5966_v26 = vld [vmem:[#allocation10 + $0x20] sm:$0xff] }
 0x1dd   : > { %v1718_v50 = vsel %vm1518_vm1, %v1499_v61, 0.0  ;;  %v1713_v13 = vrot.slane %v1712_v19, 2  ;;  %v2619_v11 = vmul.f32 %v5843_v0, %v5813_v60  ;;  %v1706_v29 = vrot.slane %v1705_v1, 1  ;;  %v5900_v61 = vld [vmem:[#allocation10 + $0x60] sm:$0xff] }
 0x1de   : > { %v1717_v14 = vsel %vm1518_vm1, %v1498_v35, 0.0  ;;  %v5862_v9 = vpop.permute.xlu2 %2245  ;;  %v2627_v28 = vand.u32 2147483647, %v5813_v60  ;;  %v2607_v10 = vadd.f32 %v5816_v24, %v2606_v40  ;;  %vm2609_vm10 = vweird.f32 %v5816_v24  ;;  %3000 = vmatpush.msra.mxu3 %v5900_v61  ;;  %3137 = vmatpush.msrb.mxu0 %v5900_v61 }
 0x1df   : > { %v1719_v39 = vadd.f32 %v1718_v50, %v1717_v14  ;;  %v2620_v38 = vsub.f32 1.0, %v2619_v11  ;;  %4146 = vrcp.f32 %v5862_v9  ;;  %v1714_v20 = vadd.f32 %v1713_v13, %v1712_v19  ;;  %vm5929_vm2 = vmor %vm2608_vm15, %vm2609_vm10 }
 0x1e0   : > { %v2586_v35 = vsel %vm5848_vm6, %v5837_v5, %v2581_v54  ;;  %v2601_v42 = vsel %vm5852_vm14, %v2600_v63, %v2596_v18  ;;  %v2629_v2 = vand.u32 2147483648, %v5813_v60  ;;  %vm2623_vm13 = vweird.f32 %v5813_v60  ;;  %3001 = vmatpush.msra.mxu3 %v5902_v59  ;;  %3138 = vmatpush.msrb.mxu0 %v5902_v59  ;;  %v2881_v63 = vld [vmem:[%s6553_s4 + $0x8] sm:$0xff] }
 0x1e1   : > { %v1720_v21 = vrot.slane %v1719_v39, 4  ;;  %v2621_v43 = vmul.f32 %v5843_v0, %v2620_v38  ;;  %v1715_v62 = vrot.slane %v1714_v20, 1  ;;  %v2587_v14 = vmul.f32 %v2586_v35, %v1698_v47  ;;  %v6024_v35 = vld [vmem:[%s6557_s8] ss:$0 sm:$0xff] }
 0x1e2   : > { %v1372_v25 = vpop.permute.xlu1 %1371  ;;  %v1707_v5 = vadd.f32 %v1706_v29, %v1705_v1  ;;  %vm2624_vm3 = vweird.f32 %v5843_v0  ;;  %vm5935_vm6 = vcmp.eq.f32.partialorder %v2627_v28, 8.507059e+37  ;;  %v2611_v6 = vsel %vm5929_vm2, %v5816_v24, %v2607_v10  ;;  %3002 = vmatpush.msra.mxu3 %v5918_v27  ;;  %3139 = vmatpush.msrb.mxu0 %v5918_v27  ;;  %v1054_v28 = vld [vmem:[%s4838_s25 + $0x180] sm:$0xff] }
 0x1e3   : > { %v1367_v41 = vpop.permute.xlu0 %1366  ;;  %v1501_v33 = vmul.f32 %v1372_v25, %v1053_v15  ;;  %v1721_v12 = vadd.f32 %v1720_v21, %v1719_v39  ;;  %v2622_v15 = vadd.f32 %v5843_v0, %v2621_v43  ;;  %v1716_v16 = vadd.f32 %v1715_v62, %v1714_v20  ;;  %vm5952_vm14 = vmor %vm2623_vm13, %vm2624_vm3  ;;  %v2882_v62 = vld [vmem:[%s6553_s4 + $0x10] sm:$0xff] }
 0x1e4   : > { %v1500_v48 = vmul.f32 %v1367_v41, %v1052_v58  ;;  %v2630_v13 = vor.u32 1.1754944e-38, %v2629_v2  ;;  %v2642_v53 = vand.u32 2147483647, %v5862_v9  ;;  %v2644_v49 = vand.u32 2147483648, %v5862_v9  ;;  %3003 = vmatpush.msra.mxu3 %v5948_v44  ;;  %3140 = vmatpush.msrb.mxu0 %v5948_v44 }
 0x1e5   : > { %v1727_v51 = vsel %vm1518_vm1, %v1501_v33, 0.0  ;;  %v1722_v46 = vrot.slane %v1721_v12, 2  ;;  %v5908_v19 = vpop.eup %4146  ;;  %v2825_v41 = vsel %vm2804_vm12, %v5811_v30, %v5809_v23  ;;  %v2602_v22 = vmul.f32 %v2601_v42, %v1707_v5  ;;  %v2880_v5 = vld [vmem:[%s6553_s4] sm:$0xff] }
 0x1e6   : > { %v1726_v36 = vsel %vm1518_vm1, %v1500_v48, 0.0  ;;  %v2634_v7 = vmul.f32 %v5908_v19, %v5862_v9  ;;  %v5942_v52 = vpop.permute.xlu2 %1386  ;;  %vm2639_vm4 = vweird.f32 %v5908_v19  ;;  %v2616_v60 = vsel %vm5894_vm0, %v2615_v32, %v2611_v6  ;;  %v2886_v48 = vld [vmem:[%s6553_s4 + $0x30] sm:$0xff]  ;;  %3004 = vmatpush.msra.mxu3 %v5966_v26  ;;  %v2885_v32 = vld [vmem:[%s6553_s4 + $0x28] sm:$0xff]  ;;  %3141 = vmatpush.msrb.mxu0 %v5966_v26  ;;  %v1057_v6 = vld [vmem:[%s4838_s25 + $0x198] sm:$0xff] }
 0x1e7   : > { %v1728_v8 = vadd.f32 %v1727_v51, %v1726_v36  ;;  %v1723_v31 = vadd.f32 %v1722_v46, %v1721_v12  ;;  %vm2638_vm15 = vweird.f32 %v5862_v9  ;;  %v2626_v33 = vsel %vm5952_vm14, %v5843_v0, %v2622_v15  ;;  %2917 = vmatpush.msra.mxu1 %v2886_v48  ;;  %v2887_v9 = vld [vmem:[%s6553_s4 + $0x38] sm:$0xff]  ;;  %v5981_v12 = vld [vmem:[#allocation10 + $0x10] sm:$0xff]  ;;  %v2884_v0 = vld [vmem:[%s6553_s4 + $0x20] sm:$0xff] }
 0x1e8   : > { %v2635_v17 = vsub.f32 1.0, %v2634_v7  ;;  %v2617_v1 = vmul.f32 %v2616_v60, %v1716_v16  ;;  %v2631_v38 = vsel %vm5935_vm6, %v2630_v13, %v2626_v33  ;;  %vm5988_vm0 = vmor %vm2638_vm15, %vm2639_vm4  ;;  %vm2643_vm10 = vcmp.eq.f32.partialorder %v2642_v53, 8.507059e+37  ;;  %2946 = vmatpush.msra.mxu2 %v2887_v9  ;;  %v5997_v46 = vld [vmem:[#allocation10] sm:$0xff]  ;;  %3005 = vmatpush.msra.mxu3 %v5981_v12  ;;  %v1056_v16 = vld [vmem:[%s4838_s25 + $0x190] sm:$0xff] }
 0x1e9   : > { %v1729_v3 = vrot.slane %v1728_v8, 4  ;;  %v1724_v50 = vrot.slane %v1723_v31, 1  ;;  %v2645_v40 = vor.u32 1.1754944e-38, %v2644_v49  ;;  %v2826_v55 = vsel %vm2806_vm5, %v5889_v37, %v2825_v41  ;;  %2918 = vmatpush.msra.mxu1 %v2884_v0  ;;  %3142 = vmatpush.msrb.mxu0 %v5981_v12  ;;  %v1060_v60 = vld [vmem:[%s4838_s25 + $0x1b0] sm:$0xff] }
 0x1ea   : > { %v2636_v21 = vmul.f32 %v5908_v19, %v2635_v17  ;;  %v1382_v20 = vpop.permute.xlu1 %1381  ;;  %v2827_v18 = vsel %vm2808_vm7, %v2587_v14, %v2826_v55  ;;  %2947 = vmatpush.msra.mxu2 %v2885_v32  ;;  %3006 = vmatpush.msra.mxu3 %v5997_v46  ;;  %v4416_v10 = vmov 0.0   ;;  %vm6664_vm13 = vcmask 1047559  }
 0x1eb   : > { %v5916_v56 = vpop.permute.xlu0 %1376  ;;  %v1730_v39 = vadd.f32 %v1729_v3, %v1728_v8  ;;  %v1725_v11 = vadd.f32 %v1724_v50, %v1723_v31  ;;  %v2828_v34 = vsel %vm2810_vm8, %v2602_v22, %v2827_v18  ;;  %v1055_v8 = vld [vmem:[%s4838_s25 + $0x188] sm:$0xff]  ;;  %3007 = vmatmul.f32.vlgmr.msra.gmra.mxu3 %v4416_v10  ;;  %v2883_v3 = vld [vmem:[%s6553_s4 + $0x18] sm:$0xff]  ;;  %2919 = vmatpush.msra.mxu1 %v2882_v62 }
 0x1ec   : > { %v2637_v23 = vadd.f32 %v5908_v19, %v2636_v21  ;;  %v2829_v43 = vsel %vm2812_vm9, %v2617_v1, %v2828_v34  ;;  %2948 = vmatpush.msra.mxu2 %v2883_v3  ;;  %v1503_v2 = vmul.f32 %v1382_v20, %v1055_v8  ;;  %v1502_v50 = vmul.f32 %v5916_v56, %v1054_v28  ;;  %v1061_v22 = vld [vmem:[%s4838_s25 + $0x1b8] sm:$0xff]  ;;  %v1063_v8 = vld [vmem:[%s4838_s25 + $0x1c8] sm:$0xff] }
 0x1ed   : > { %v1731_v57 = vrot.slane %v1730_v39, 2  ;;  %v2632_v54 = vmul.f32 %v2631_v38, %v1725_v11  ;;  %3143 = vmatpush.msrb.mxu0 %v5997_v46  ;;  %2920 = vmatpush.msra.mxu1 %v2880_v5 }
 0x1ee   : > { %v2641_v47 = vsel %vm5988_vm0, %v5908_v19, %v2637_v23  ;;  %2949 = vmatpush.msra.mxu2 %v2881_v63  ;;  %v1736_v56 = vsel %vm1518_vm1, %v1503_v2, 0.0  ;;  %v1735_v58 = vsel %vm1518_vm1, %v1502_v50, 0.0 }
 0x1ef   : > { %v1732_v25 = vadd.f32 %v1731_v57, %v1730_v39  ;;  %v2646_v37 = vsel %vm2643_vm10, %v2645_v40, %v2641_v47  ;;  %v2830_v31 = vsel %vm2814_vm11, %v2632_v54, %v2829_v43  ;;  %3412 = vmatpush.msra.mxu0 %v5825_v4  ;;  %v1737_v17 = vadd.f32 %v1736_v56, %v1735_v58 }
 0x1f0   : > { %v6019_v19 = vpop.permute.xlu2 %2255  ;;  %3275 = vmatpush.msrb.mxu2 %v5825_v4  ;;  %v1504_v4 = vmul.f32 %v5942_v52, %v1056_v16 }
 0x1f1   : > { %v1733_v30 = vrot.slane %v1732_v25, 1  ;;  %3413 = vmatpush.msra.mxu0 %v5900_v61  ;;  %v2674_v18 = vand.u32 2147483648, %v6019_v19  ;;  %vm2668_vm2 = vweird.f32 %v6019_v19 }
 0x1f2   : > { %3276 = vmatpush.msrb.mxu2 %v5900_v61  ;;  %v1738_v61 = vrot.slane %v1737_v17, 4  ;;  %v1744_v52 = vsel %vm1518_vm1, %v1504_v4, 0.0 }
 0x1f3   : > { %v1392_v51 = vpop.permute.xlu0 %1391  ;;  %v1734_v36 = vadd.f32 %v1733_v30, %v1732_v25  ;;  %3414 = vmatpush.msra.mxu0 %v5902_v59  ;;  %v1058_v25 = vld [vmem:[%s4838_s25 + $0x1a0] sm:$0xff]  ;;  %v2675_v5 = vor.u32 1.1754944e-38, %v2674_v18 }
 0x1f4   : > { %v1505_v13 = vmul.f32 %v1392_v51, %v1057_v6  ;;  %3277 = vmatpush.msrb.mxu2 %v5902_v59  ;;  %v1739_v24 = vadd.f32 %v1738_v61, %v1737_v17 }
 0x1f5   : > { %v2647_v29 = vmul.f32 %v2646_v37, %v1734_v36  ;;  %v2864_v14 = vpop.f32.mrf.mxu0  ;;  %3415 = vmatpush.msra.mxu0 %v5918_v27 }
 0x1f6   : > { %v2865_v7 = vadd.f32 %v2864_v14, %v6024_v35  ;;  %3278 = vmatpush.msrb.mxu2 %v5918_v27  ;;  %v1745_v59 = vsel %vm1518_vm1, %v1505_v13, 0.0  ;;  %v1059_v27 = vld [vmem:[%s4838_s25 + $0x1a8] sm:$0xff]  ;;  %v1740_v23 = vrot.slane %v1739_v24, 2 }
 0x1f7   : > { %v2831_v42 = vsel %vm6664_vm13, %v2647_v29, %v2830_v31  ;;  %3416 = vmatpush.msra.mxu0 %v5948_v44  ;;  %v1746_v21 = vadd.f32 %v1745_v59, %v1744_v52  ;;  %v1062_v29 = vld [vmem:[%s4838_s25 + $0x1c0] sm:$0xff]  ;;  %v2672_v31 = vand.u32 2147483647, %v6019_v19 }
 0x1f8   : > { %3980 = vmatmul.msk.f32.gmra.mxu0 %vm1518_vm1, %v2831_v42  ;;  %v6038_v15 = vpop.permute.xlu1 %2250  ;;  %4148 = vtanh.f32 %v2865_v7  ;;  %v6048_v57 = vpop.permute.xlu2 %2260  ;;  %3279 = vmatpush.msrb.mxu2 %v5948_v44  ;;  %v1741_v40 = vadd.f32 %v1740_v23, %v1739_v24 }
 0x1f9   : > { %4150 = vrcp.f32 %v6019_v19  ;;  %3417 = vmatpush.msra.mxu0 %v5966_v26  ;;  %v1747_v30 = vrot.slane %v1746_v21, 4  ;;  %v2657_v56 = vand.u32 2147483647, %v6038_v15  ;;  %vm6105_vm3 = vcmp.eq.f32.partialorder %v2672_v31, 8.507059e+37 }
 0x1fa   : > { %4152 = vrcp.f32 %v6038_v15  ;;  %3280 = vmatpush.msrb.mxu2 %v5966_v26  ;;  %v1742_v28 = vrot.slane %v1741_v40, 1  ;;  %v2659_v17 = vand.u32 2147483648, %v6038_v15  ;;  %vm2653_vm14 = vweird.f32 %v6038_v15 }
 0x1fb   : > { %v1397_v39 = vpop.permute.xlu0 %1396  ;;  %3418 = vmatpush.msra.mxu0 %v5981_v12  ;;  %4154 = vrcp.f32 %v6048_v57  ;;  %v1748_v20 = vadd.f32 %v1747_v30, %v1746_v21  ;;  %v1065_v21 = vld [vmem:[%s4838_s25 + $0x1d8] sm:$0xff]  ;;  %vm6123_vm15 = vcmp.eq.f32.partialorder %v2657_v56, 8.507059e+37  ;;  %vm2683_vm13 = vweird.f32 %v6048_v57 }
 0x1fc   : > { %3281 = vmatpush.msrb.mxu2 %v5981_v12  ;;  %v1506_v1 = vmul.f32 %v1397_v39, %v1058_v25  ;;  %v1064_v39 = vld [vmem:[%s4838_s25 + $0x1d0] sm:$0xff]  ;;  %v6103_v6 = vadd.f32 %v1742_v28, %v1741_v40 }
 0x1fd   : > { %3419 = vmatpush.msra.mxu0 %v5997_v46  ;;  %v1749_v62 = vrot.slane %v1748_v20, 2 }
 0x1fe   : > { %v4149_v11 = vpop.eup %4148  ;;  %3282 = vmatpush.msrb.mxu2 %v5997_v46  ;;  %v1753_v54 = vsel %vm1518_vm1, %v1506_v1, 0.0 }
 0x1ff   : > { %3982 = vmatmul.msk.f32.vlgmr.msra.gmra.mxu1 %vm1518_vm1, %v4149_v11  ;;  %3986 = vmatmul.msk.f32.vlgmr.msra.gmra.mxu2 %vm1518_vm1, %v4149_v11  ;;  %v6073_v44 = vpop.eup %4150  ;;  %v1750_v13 = vadd.f32 %v1749_v62, %v1748_v20 }
 0x200   : > { %v1402_v49 = vpop.permute.xlu1 %1401  ;;  %v6067_v41 = vpop.permute.xlu2 %2265  ;;  %v2664_v12 = vmul.f32 %v6073_v44, %v6019_v19  ;;  %vm2669_vm6 = vweird.f32 %v6073_v44 }
 0x201   : > { %v6075_v48 = vpop.eup %4152  ;;  %v1507_v26 = vmul.f32 %v1402_v49, %v1059_v27  ;;  %4156 = vrcp.f32 %v6067_v41  ;;  %vm6133_vm0 = vmor %vm2668_vm2, %vm2669_vm6 }
 0x202   : > { %v2649_v45 = vmul.f32 %v6075_v48, %v6038_v15  ;;  %v2665_v46 = vsub.f32 1.0, %v2664_v12  ;;  %v6089_v47 = vpop.eup %4154  ;;  %vm2654_vm4 = vweird.f32 %v6075_v48 }
 0x203   : > { %v1407_v53 = vpop.permute.xlu0 %1406  ;;  %v1754_v51 = vsel %vm1518_vm1, %v1507_v26, 0.0  ;;  %v2679_v50 = vmul.f32 %v6089_v47, %v6048_v57  ;;  %vm6146_vm10 = vmor %vm2653_vm14, %vm2654_vm4  ;;  %vm2684_vm2 = vweird.f32 %v6089_v47  ;;  %vm2698_vm14 = vweird.f32 %v6067_v41 }
 0x204   : > { %v1508_v0 = vmul.f32 %v1407_v53, %v1060_v60  ;;  %v2650_v37 = vsub.f32 1.0, %v2649_v45  ;;  %v1755_v34 = vadd.f32 %v1754_v51, %v1753_v54  ;;  %v2666_v2 = vmul.f32 %v6073_v44, %v2665_v46 }
 0x205   : > { %v2680_v49 = vsub.f32 1.0, %v2679_v50  ;;  %v2660_v60 = vor.u32 1.1754944e-38, %v2659_v17  ;;  %v2689_v54 = vand.u32 2147483648, %v6048_v57 }
 0x206   : > { %v1762_v32 = vsel %vm1518_vm1, %v1508_v0, 0.0  ;;  %v2651_v63 = vmul.f32 %v6075_v48, %v2650_v37  ;;  %v1756_v58 = vrot.slane %v1755_v34, 4  ;;  %v2667_v61 = vadd.f32 %v6073_v44, %v2666_v2 }
 0x207   : > { %v6110_v53 = vpop.eup %4156  ;;  %v2681_v20 = vmul.f32 %v6089_v47, %v2680_v49  ;;  %v2704_v2 = vand.u32 2147483648, %v6067_v41 }
 0x208   : > { %v1412_v38 = vpop.permute.xlu1 %1411  ;;  %v6087_v36 = vpop.permute.xlu2 %2270  ;;  %v2652_v27 = vadd.f32 %v6075_v48, %v2651_v63  ;;  %v2694_v23 = vmul.f32 %v6110_v53, %v6067_v41  ;;  %v2671_v40 = vsel %vm6133_vm0, %v6073_v44, %v2667_v61 }
 0x209   : > { %v1509_v9 = vmul.f32 %v1412_v38, %v1061_v22  ;;  %4158 = vrcp.f32 %v6087_v36  ;;  %v1757_v22 = vadd.f32 %v1756_v58, %v1755_v34  ;;  %v2687_v38 = vand.u32 2147483647, %v6048_v57 }
 0x20a   : > { %v2656_v44 = vsel %vm6146_vm10, %v6075_v48, %v2652_v27  ;;  %v2695_v18 = vsub.f32 1.0, %v2694_v23  ;;  %v2682_v28 = vadd.f32 %v6089_v47, %v2681_v20  ;;  %vm2713_vm0 = vweird.f32 %v6087_v36 }
 0x20b   : > { %v1417_v33 = vpop.permute.xlu0 %1416  ;;  %v1763_v55 = vsel %vm1518_vm1, %v1509_v9, 0.0  ;;  %vm6164_vm6 = vcmp.eq.f32.partialorder %v2687_v38, 8.507059e+37 }
 0x20c   : > { %v1764_v3 = vadd.f32 %v1763_v55, %v1762_v32  ;;  %v1510_v7 = vmul.f32 %v1417_v33, %v1062_v29  ;;  %v1751_v33 = vrot.slane %v1750_v13, 1  ;;  %v1758_v55 = vrot.slane %v1757_v22, 2  ;;  %v1066_v32 = vld [vmem:[%s4838_s25 + $0x1e0] sm:$0xff] }
 0x20d   : > { %v2696_v63 = vmul.f32 %v6110_v53, %v2695_v18 }
 0x20e   : > { %v1765_v11 = vrot.slane %v1764_v3, 4  ;;  %v1771_v52 = vsel %vm1518_vm1, %v1510_v7, 0.0  ;;  %v1752_v46 = vadd.f32 %v1751_v33, %v1750_v13 }
 0x20f   : > { %v6153_v51 = vpop.eup %4158 }
 0x210   : > { %v1422_v42 = vpop.permute.xlu1 %1421  ;;  %v6118_v24 = vpop.permute.xlu2 %2275  ;;  %v1766_v30 = vadd.f32 %v1765_v11, %v1764_v3  ;;  %v2709_v31 = vmul.f32 %v6153_v51, %v6087_v36  ;;  %v1759_v3 = vadd.f32 %v1758_v55, %v1757_v22  ;;  %v1068_v22 = vld [vmem:[%s4838_s25 + $0x1f0] sm:$0xff] }
 0x211   : > { %v1511_v14 = vmul.f32 %v1422_v42, %v1063_v8  ;;  %4160 = vrcp.f32 %v6118_v24  ;;  %v2676_v8 = vsel %vm6105_vm3, %v2675_v5, %v2671_v40  ;;  %v2702_v42 = vand.u32 2147483647, %v6067_v41  ;;  %vm6190_vm3 = vmor %vm2683_vm13, %vm2684_vm2 }
 0x212   : > { %v1767_v37 = vrot.slane %v1766_v30, 2  ;;  %v2690_v5 = vor.u32 1.1754944e-38, %v2689_v54  ;;  %v2710_v61 = vsub.f32 1.0, %v2709_v31  ;;  %v1069_v54 = vld [vmem:[%s4838_s25 + $0x1f8] sm:$0xff]  ;;  %vm2714_vm13 = vweird.f32 %v6153_v51 }
 0x213   : > { %v1427_v43 = vpop.permute.xlu0 %1426  ;;  %v1772_v59 = vsel %vm1518_vm1, %v1511_v14, 0.0  ;;  %v1067_v14 = vld [vmem:[%s4838_s25 + $0x1e8] sm:$0xff]  ;;  %vm6200_vm4 = vcmp.eq.f32.partialorder %v2702_v42, 8.507059e+37 }
 0x214   : > { %v1512_v4 = vmul.f32 %v1427_v43, %v1064_v39  ;;  %v1773_v9 = vadd.f32 %v1772_v59, %v1771_v52  ;;  %v2661_v43 = vsel %vm6123_vm15, %v2660_v60, %v2656_v44  ;;  %v6178_v39 = vmul.f32 %v2676_v8, %v1752_v46 }
 0x215   : > { %v1768_v56 = vadd.f32 %v1767_v37, %v1766_v30  ;;  %v6184_v17 = vmul.f32 %v2661_v43, %v6103_v6  ;;  %v1760_v59 = vrot.slane %v1759_v3, 1  ;;  %v2705_v52 = vor.u32 1.1754944e-38, %v2704_v2 }
 0x216   : > { %v1780_v12 = vsel %vm1518_vm1, %v1512_v4, 0.0  ;;  %v1774_v48 = vrot.slane %v1773_v9, 4  ;;  %v2686_v4 = vsel %vm6190_vm3, %v6089_v47, %v2682_v28  ;;  %v2697_v60 = vadd.f32 %v6110_v53, %v2696_v63 }
 0x217   : > { %v6176_v7 = vpop.eup %4160  ;;  %vm2699_vm15 = vweird.f32 %v6110_v53  ;;  %v1769_v47 = vrot.slane %v1768_v56, 1  ;;  %v2691_v23 = vsel %vm6164_vm6, %v2690_v5, %v2686_v4  ;;  %v2717_v30 = vand.u32 2147483647, %v6087_v36  ;;  %vm6250_vm6 = vmor %vm2713_vm0, %vm2714_vm13 }
 0x218   : > { %v1432_v26 = vpop.permute.xlu1 %1431  ;;  %v1775_v11 = vadd.f32 %v1774_v48, %v1773_v9  ;;  %v2711_v38 = vmul.f32 %v6153_v51, %v2710_v61  ;;  %v2719_v9 = vand.u32 2147483648, %v6087_v36  ;;  %vm6220_vm10 = vmor %vm2698_vm14, %vm2699_vm15  ;;  %vm2728_vm3 = vweird.f32 %v6118_v24  ;;  %v2980_v61 = vld [vmem:[#allocation10 + $0x48] sm:$0xff] }
 0x219   : > { %v1513_v0 = vmul.f32 %v1432_v26, %v1065_v21  ;;  %v2724_v21 = vmul.f32 %v6176_v7, %v6118_v24  ;;  %v2701_v55 = vsel %vm6220_vm10, %v6110_v53, %v2697_v60  ;;  %vm6233_vm2 = vcmp.eq.f32.partialorder %v2717_v30, 8.507059e+37 }
 0x21a   : > { %v1776_v26 = vrot.slane %v1775_v11, 2  ;;  %v2712_v53 = vadd.f32 %v6153_v51, %v2711_v38  ;;  %v2720_v28 = vor.u32 1.1754944e-38, %v2719_v9  ;;  %v2706_v2 = vsel %vm6200_vm4, %v2705_v52, %v2701_v55 }
 0x21b   : > { %v1437_v45 = vpop.permute.xlu0 %1436  ;;  %v1781_v15 = vsel %vm1518_vm1, %v1513_v0, 0.0  ;;  %v2725_v19 = vsub.f32 1.0, %v2724_v21  ;;  %vm2729_vm4 = vweird.f32 %v6176_v7 }
 0x21c   : > { %v1782_v34 = vadd.f32 %v1781_v15, %v1780_v12  ;;  %v1514_v62 = vmul.f32 %v1437_v45, %v1066_v32  ;;  %v6181_v58 = vpop.permute.xlu2 %2280  ;;  %v1761_v45 = vadd.f32 %v1760_v59, %v1759_v3  ;;  %v1770_v15 = vadd.f32 %v1769_v47, %v1768_v56  ;;  %vm6273_vm0 = vmor %vm2728_vm3, %vm2729_vm4 }
 0x21d   : > { %4162 = vrcp.f32 %v6181_v58  ;;  %v1777_v37 = vadd.f32 %v1776_v26, %v1775_v11  ;;  %v2726_v31 = vmul.f32 %v6176_v7, %v2725_v19  ;;  %v2734_v56 = vand.u32 2147483648, %v6118_v24 }
 0x21e   : > { %v1783_v50 = vrot.slane %v1782_v34, 4  ;;  %v1789_v49 = vsel %vm1518_vm1, %v1514_v62, 0.0  ;;  %v2692_v42 = vmul.f32 %v2691_v23, %v1761_v45  ;;  %v2707_v11 = vmul.f32 %v2706_v2, %v1770_v15 }
 0x21f   : > { %v1778_v63 = vrot.slane %v1777_v37, 1  ;;  %v2716_v4 = vsel %vm6250_vm6, %v6153_v51, %v2712_v53  ;;  %vm2743_vm10 = vweird.f32 %v6181_v58 }
 0x220   : > { %v1442_v16 = vpop.permute.xlu1 %1441  ;;  %v1784_v27 = vadd.f32 %v1783_v50, %v1782_v34  ;;  %v2732_v34 = vand.u32 2147483647, %v6118_v24  ;;  %v2721_v60 = vsel %vm6233_vm2, %v2720_v28, %v2716_v4  ;;  %v2982_v4 = vld [vmem:[#allocation10 + $0x58] sm:$0xff] }
 0x221   : > { %v1515_v6 = vmul.f32 %v1442_v16, %v1067_v14  ;;  %v1779_v21 = vadd.f32 %v1778_v63, %v1777_v37 }
 0x222   : > { %v1785_v20 = vrot.slane %v1784_v27, 2  ;;  %vm6259_vm14 = vcmp.eq.f32.partialorder %v2732_v34, 8.507059e+37 }
 0x223   : > { %v1447_v25 = vpop.permute.xlu0 %1446  ;;  %v1790_v33 = vsel %vm1518_vm1, %v1515_v6, 0.0  ;;  %v6216_v12 = vpop.eup %4162  ;;  %v2727_v6 = vadd.f32 %v6176_v7, %v2726_v31  ;;  %v2722_v45 = vmul.f32 %v2721_v60, %v1779_v21 }
 0x224   : > { %v1791_v1 = vadd.f32 %v1790_v33, %v1789_v49  ;;  %v1516_v0 = vmul.f32 %v1447_v25, %v1068_v22  ;;  %v2739_v32 = vmul.f32 %v6216_v12, %v6181_v58  ;;  %v6231_v46 = vpop.permute.xlu2 %2285  ;;  %v1786_v62 = vadd.f32 %v1785_v20, %v1784_v27 }
 0x225   : > { %4164 = vrcp.f32 %v6231_v46  ;;  %vm2744_vm15 = vweird.f32 %v6216_v12  ;;  %v2735_v27 = vor.u32 1.1754944e-38, %v2734_v56  ;;  %v2749_v25 = vand.u32 2147483648, %v6181_v58 }
 0x226   : > { %v1792_v44 = vrot.slane %v1791_v1, 4  ;;  %v2740_v29 = vsub.f32 1.0, %v2739_v32  ;;  %v1798_v43 = vsel %vm1518_vm1, %v1516_v0, 0.0  ;;  %v1787_v49 = vrot.slane %v1786_v62, 1  ;;  %vm6282_vm13 = vmor %vm2743_vm10, %vm2744_vm15 }
 0x227   : > { %v2747_v33 = vand.u32 2147483647, %v6181_v58  ;;  %v2731_v30 = vsel %vm6273_vm0, %v6176_v7, %v2727_v6  ;;  %v2764_v24 = vand.u32 2147483648, %v6231_v46  ;;  %v2750_v40 = vor.u32 1.1754944e-38, %v2749_v25  ;;  %v2976_v6 = vld [vmem:[#allocation10 + $0x28] sm:$0xff] }
 0x228   : > { %v1452_v41 = vpop.permute.xlu1 %1451  ;;  %v1793_v8 = vadd.f32 %v1792_v44, %v1791_v1  ;;  %v2741_v50 = vmul.f32 %v6216_v12, %v2740_v29  ;;  %v1788_v26 = vadd.f32 %v1787_v49, %v1786_v62  ;;  %v2762_v19 = vand.u32 2147483647, %v6231_v46  ;;  %v2986_v62 = vld [vmem:[#allocation10 + $0x78] sm:$0xff] }
 0x229   : > { %v1517_v48 = vmul.f32 %v1452_v41, %v1069_v54  ;;  %v2736_v20 = vsel %vm6259_vm14, %v2735_v27, %v2731_v30  ;;  %vm2748_vm6 = vcmp.eq.f32.partialorder %v2747_v33, 8.507059e+37  ;;  %vm2758_vm3 = vweird.f32 %v6231_v46  ;;  %3019 = vmatpush.msrb.mxu3 %v2986_v62  ;;  %3156 = vmatpush.msrb.mxu1 %v2986_v62  ;;  %v2974_v49 = vld [vmem:[#allocation10 + $0x18] sm:$0xff] }
 0x22a   : > { %v1794_v3 = vrot.slane %v1793_v8, 2  ;;  %v2742_v57 = vadd.f32 %v6216_v12, %v2741_v50  ;;  %v2737_v55 = vmul.f32 %v2736_v20, %v1788_v26  ;;  %v2765_v32 = vor.u32 1.1754944e-38, %v2764_v24  ;;  %v6311_v50 = vld [vmem:[%s6557_s8 + $0x1] ss:$8 sm:$0x3] }
 0x22b   : > { %v1799_v14 = vsel %vm1518_vm1, %v1517_v48, 0.0  ;;  %v4165_v36 = vpop.eup %4164  ;;  %vm2763_vm15 = vcmp.eq.f32.partialorder %v2762_v19, 8.507059e+37  ;;  %vm6691_vm14 = vcmask 1047559  }
 0x22c   : > { %v1795_v16 = vadd.f32 %v1794_v3, %v1793_v8  ;;  %v1800_v13 = vadd.f32 %v1799_v14, %v1798_v43  ;;  %v2754_v51 = vmul.f32 %v4165_v36, %v6231_v46  ;;  %vm2759_vm2 = vweird.f32 %v4165_v36  ;;  %v2984_v3 = vld [vmem:[#allocation10 + $0x68] sm:$0xff] }
 0x22d   : > { %v2746_v58 = vsel %vm6282_vm13, %v6216_v12, %v2742_v57  ;;  %vm2760_vm4 = vmor %vm2758_vm3, %vm2759_vm2  ;;  %v2832_v12 = vsel %vm2804_vm12, %v6178_v39, %v6184_v17  ;;  %3020 = vmatpush.msrb.mxu3 %v2984_v3  ;;  %3157 = vmatpush.msrb.mxu1 %v2984_v3  ;;  %v6314_v14 = vperm.slane %v6311_v50, 0  ;;  %vm2987_vm13 = vcmask 523264  }
 0x22e   : > { %v1801_v59 = vrot.slane %v1800_v13, 4  ;;  %v1796_v52 = vrot.slane %v1795_v16, 1  ;;  %v2755_v23 = vsub.f32 1.0, %v2754_v51  ;;  %v2751_v15 = vsel %vm2748_vm6, %v2750_v40, %v2746_v58 }
 0x22f   : > { %v2833_v37 = vsel %vm2806_vm5, %v2692_v42, %v2832_v12  ;;  %3021 = vmatpush.msrb.mxu3 %v2982_v4  ;;  %3158 = vmatpush.msrb.mxu1 %v2982_v4 }
 0x230   : > { %v1802_v22 = vadd.f32 %v1801_v59, %v1800_v13  ;;  %v1797_v9 = vadd.f32 %v1796_v52, %v1795_v16  ;;  %v2756_v0 = vmul.f32 %v4165_v36, %v2755_v23  ;;  %v2834_v8 = vsel %vm2808_vm7, %v2707_v11, %v2833_v37  ;;  %v2972_v59 = vld [vmem:[#allocation10 + $0x8] sm:$0xff] }
 0x231   : > { %v2835_v46 = vsel %vm2810_vm8, %v2722_v45, %v2834_v8  ;;  %3022 = vmatpush.msrb.mxu3 %v2980_v61  ;;  %3159 = vmatpush.msrb.mxu1 %v2980_v61  ;;  %v6330_v45 = vperm.slane %v6311_v50, 1 }
 0x232   : > { %v1803_v38 = vrot.slane %v1802_v22, 2  ;;  %v2757_v44 = vadd.f32 %v4165_v36, %v2756_v0  ;;  %v2752_v41 = vmul.f32 %v2751_v15, %v1797_v9  ;;  %v2836_v48 = vsel %vm2812_vm9, %v2737_v55, %v2835_v46 }
 0x234   : > { %v1804_v7 = vadd.f32 %v1803_v38, %v1802_v22  ;;  %v2761_v18 = vsel %vm2760_vm4, %v4165_v36, %v2757_v44  ;;  %v2837_v43 = vsel %vm2814_vm11, %v2752_v41, %v2836_v48  ;;  %v2978_v36 = vld [vmem:[#allocation10 + $0x38] sm:$0xff] }
 0x235   : > { %v2766_v53 = vsel %vm2763_vm15, %v2765_v32, %v2761_v18  ;;  %3023 = vmatpush.msrb.mxu3 %v2978_v36  ;;  %3160 = vmatpush.msrb.mxu1 %v2978_v36 }
 0x236   : > { %v1805_v54 = vrot.slane %v1804_v7, 1 }
 0x237   : > { %3024 = vmatpush.msrb.mxu3 %v2976_v6  ;;  %3161 = vmatpush.msrb.mxu1 %v2976_v6 }
 0x238   : > { %v1806_v34 = vadd.f32 %v1805_v54, %v1804_v7 }
 0x239   : > { %3025 = vmatpush.msrb.mxu3 %v2974_v49  ;;  %3162 = vmatpush.msrb.mxu1 %v2974_v49 }
 0x23a   : > { %v2767_v29 = vmul.f32 %v2766_v53, %v1806_v34 }
 0x23b   : > { %3026 = vmatpush.msrb.mxu3 %v2972_v59  ;;  %3163 = vmatpush.msrb.mxu1 %v2972_v59 }
 0x23c   : > { %v2838_v28 = vsel %vm6691_vm14, %v2767_v29, %v2837_v43  ;;  %3027 = vmatmul.f32.vlgmr.msrb.gmra.mxu3 %v4416_v10 }
 0x23d   : > { %3981 = vmatmul.msk.f32.gmra.mxu0 %vm1518_vm1, %v2838_v28  ;;  %v2867_v39 = vpop.f32.mrf.mxu0  ;;  %3432 = vmatpush.msra.mxu1 %v2986_v62 }
 0x23e   : > { %v2868_v17 = vadd.f32 %v2867_v39, %v6024_v35  ;;  %3295 = vmatpush.msra.mxu3 %v2986_v62 }
 0x23f   : > { %3433 = vmatpush.msra.mxu1 %v2984_v3 }
 0x240   : > { %4166 = vtanh.f32 %v2868_v17  ;;  %3296 = vmatpush.msra.mxu3 %v2984_v3 }
 0x241   : > { %3434 = vmatpush.msra.mxu1 %v2982_v4 }
 0x242   : > { %3297 = vmatpush.msra.mxu3 %v2982_v4 }
 0x243   : > { %3435 = vmatpush.msra.mxu1 %v2980_v61 }
 0x244   : > { %3298 = vmatpush.msra.mxu3 %v2980_v61 }
 0x245   : > { %3436 = vmatpush.msra.mxu1 %v2978_v36 }
 0x246   : > { %v4167_v31 = vpop.eup %4166  ;;  %3299 = vmatpush.msra.mxu3 %v2978_v36 }
 0x247   : > { %3983 = vmatmul.msk.f32.gmra.mxu1 %vm1518_vm1, %v4167_v31  ;;  %3987 = vmatmul.msk.f32.gmra.mxu2 %vm1518_vm1, %v4167_v31 }
 0x248   : > { %3437 = vmatpush.msra.mxu1 %v2976_v6  ;;  %3300 = vmatpush.msra.mxu3 %v2976_v6 }
 0x24a   : > { %3438 = vmatpush.msra.mxu1 %v2974_v49  ;;  %3301 = vmatpush.msra.mxu3 %v2974_v49 }
 0x24c   : > { %3439 = vmatpush.msra.mxu1 %v2972_v59  ;;  %3302 = vmatpush.msra.mxu3 %v2972_v59 }
 0x26e   : > { %v3008_v56 = vpop.f32.mrf.mxu3 }
 0x275   : > { %v2870_v42 = vpop.f32.mrf.mxu0 }
 0x276   : > { %v2871_v2 = vadd.f32 %v2870_v42, %v6024_v35 }
 0x278   : > { %4168 = vtanh.f32 %v2871_v2 }
 0x27c   : > { %v2922_v63 = vpop.f32.mrf.mxu1 }
 0x27d   : > { %v2923_v16 = vadd.f32 %v2922_v63, %v6314_v14 }
 0x27e   : > { %v4169_v5 = vpop.eup %4168 }
 0x27f   : > { %3984 = vmatmul.msk.f32.gmra.mxu1 %vm1518_vm1, %v4169_v5  ;;  %3988 = vmatmul.msk.f32.gmra.mxu2 %vm1518_vm1, %v4169_v5  ;;  %v3032_v13 = vadd.f32 %v3008_v56, %v2923_v16 }
 0x281   : > { %4170 = vtanh.f32 %v3032_v13  ;;  %v3990_v51 = vmul.f32 -1.442695, %v3032_v13 }
 0x282   : > { %v6325_v9 = vpop.f32.mrf.mxu2 }
 0x287   : > { %v4171_v11 = vpop.eup %4170 }
 0x288   : > { %3055 = vrot.lane.b32.xlu0 %v4171_v11, %s4417_s17 }
 0x2ba   : > { %v2873_v57 = vpop.f32.mrf.mxu0 }
 0x2bb   : > { %v2874_v52 = vadd.f32 %v2873_v57, %v6024_v35 }
 0x2bd   : > { %4172 = vtanh.f32 %v2874_v52 }
 0x2be   : > { %4174 = vpow2.f32 %v3990_v51 }
 0x2bf   : > { %v3028_v19 = vpop.f32.mrf.mxu3 }
 0x2c3   : > { %v4173_v10 = vpop.eup %4172 }
 0x2c4   : > { %3985 = vmatmul.msk.f32.gmra.mxu1 %vm1518_vm1, %v4173_v10  ;;  %3989 = vmatmul.msk.f32.gmra.mxu2 %vm1518_vm1, %v4173_v10  ;;  %v4175_v21 = vpop.eup %4174  ;;  %v2925_v4 = vpop.f32.mrf.mxu1 }
 0x2c5   : > { %v3036_v27 = vadd.f32 1.0, %v4175_v21  ;;  %v2926_v6 = vadd.f32 %v2925_v4, %v6314_v14 }
 0x2c7   : > { %4176 = vrcp.f32 %v3036_v27  ;;  %v3048_v35 = vand.u32 2147483648, %v3036_v27  ;;  %vm3042_vm5 = vweird.f32 %v3036_v27  ;;  %v3046_v23 = vand.u32 2147483647, %v3036_v27 }
 0x2c9   : > { %v3049_v26 = vor.u32 1.1754944e-38, %v3048_v35  ;;  %vm3047_vm8 = vcmp.eq.f32.partialorder %v3046_v23, 8.507059e+37 }
 0x2ca   : > { %v6327_v0 = vpop.f32.mrf.mxu2 }
 0x2cd   : > { %v4177_v25 = vpop.eup %4176 }
 0x2ce   : > { %v3038_v22 = vmul.f32 %v4177_v25, %v3036_v27  ;;  %vm3043_vm12 = vweird.f32 %v4177_v25 }
 0x2cf   : > { %vm3044_vm7 = vmor %vm3042_vm5, %vm3043_vm12 }
 0x2d0   : > { %v3039_v60 = vsub.f32 1.0, %v3038_v22 }
 0x2d2   : > { %v3040_v47 = vmul.f32 %v4177_v25, %v3039_v60 }
 0x2d4   : > { %v3041_v33 = vadd.f32 %v4177_v25, %v3040_v47 }
 0x2d6   : > { %v3045_v30 = vsel %vm3044_vm7, %v4177_v25, %v3041_v33 }
 0x2d7   : > { %v3050_v24 = vsel %vm3047_vm8, %v3049_v26, %v3045_v30 }
 0x2d8   : > { %v3053_v54 = vmul.f32 0.0, %v3050_v24 }
 0x2fa   : > { %v3056_v1 = vpop.permute.xlu0 %3055 }
 0x2fb   : > { %v3058_v38 = vmul.f32 %v3056_v1, %v3050_v24 }
 0x2fc   : > { %v6352_v61 = vpop.f32.mrf.mxu1 }
 0x2fd   : > { %3060 = vrot.lane.b32.xlu2 %v3058_v38, %s4418_s3 }
 0x302   : > { %v2957_v58 = vpop.f32.mrf.mxu2 }
 0x303   : > { %v2958_v49 = vadd.f32 %v2957_v58, %v6330_v45 }
 0x341   : > { %v6354_v36 = vpop.f32.mrf.mxu1 }
 0x347   : > { %v2960_v40 = vpop.f32.mrf.mxu2 }
 0x348   : > { %v2961_v7 = vadd.f32 %v2960_v40, %v6330_v45 }
 0x34a   : > { %v3072_v20 = vadd.f32 %v3028_v19, %v2961_v7 }
 0x34c   : > { %4178 = vtanh.f32 %v3072_v20  ;;  %v3991_v32 = vmul.f32 -1.442695, %v3072_v20 }
 0x352   : > { %v4179_v44 = vpop.eup %4178 }
 0x353   : > { %3095 = vrot.lane.b32.xlu1 %v4179_v44, %s4417_s17 }
 0x357   : > { %v3061_v55 = vpop.permute.xlu2 %3060 }
 0x358   : > { %v6334_v15 = vadd.f32 %v3061_v55, %v3053_v54 }
 0x35a   : > { %4180 = vtanh.f32 %v6334_v15 }
 0x35b   : > { %4182 = vpow2.f32 %v3991_v32 }
 0x360   : > { %v4181_v12 = vpop.eup %4180 }
 0x361   : > { %3066 = vrot.lane.b32.xlu1 %v4181_v12, %s4417_s17  ;;  %v4183_v41 = vpop.eup %4182 }
 0x362   : > { %v3076_v18 = vadd.f32 1.0, %v4183_v41 }
 0x364   : > { %4184 = vrcp.f32 %v3076_v18  ;;  %v3088_v29 = vand.u32 2147483648, %v3076_v18  ;;  %vm3082_vm11 = vweird.f32 %v3076_v18  ;;  %v3086_v48 = vand.u32 2147483647, %v3076_v18 }
 0x366   : > { %v3089_v28 = vor.u32 1.1754944e-38, %v3088_v29  ;;  %vm3087_vm10 = vcmp.eq.f32.partialorder %v3086_v48, 8.507059e+37 }
 0x36a   : > { %v4185_v37 = vpop.eup %4184 }
 0x36b   : > { %v3078_v34 = vmul.f32 %v4185_v37, %v3076_v18  ;;  %vm3083_vm9 = vweird.f32 %v4185_v37 }
 0x36c   : > { %vm3084_vm0 = vmor %vm3082_vm11, %vm3083_vm9 }
 0x36d   : > { %v3079_v8 = vsub.f32 1.0, %v3078_v34 }
 0x36f   : > { %v3080_v53 = vmul.f32 %v4185_v37, %v3079_v8 }
 0x371   : > { %v3081_v46 = vadd.f32 %v4185_v37, %v3080_v53 }
 0x373   : > { %v3085_v43 = vsel %vm3084_vm0, %v4185_v37, %v3081_v46 }
 0x374   : > { %v3090_v17 = vsel %vm3087_vm10, %v3089_v28, %v3085_v43 }
 0x375   : > { %v3093_v42 = vmul.f32 0.0, %v3090_v17 }
 0x3c5   : > { %v3096_v39 = vpop.permute.xlu1 %3095 }
 0x3c6   : > { %v3098_v31 = vmul.f32 %v3096_v39, %v3090_v17 }
 0x3c8   : > { %3100 = vrot.lane.b32.xlu0 %v3098_v31, %s4418_s3 }
 0x3d3   : > { %v3067_v62 = vpop.permute.xlu1 %3066 }
 0x3d4   : > { %v3069_v3 = vmul.f32 %v3067_v62, %v3050_v24 }
 0x3d6   : > { %3111 = vrot.lane.b32.xlu0 %v3069_v3, %s4418_s3 }
 0x43a   : > { %v3101_v2 = vpop.permute.xlu0 %3100 }
 0x43b   : > { %v6340_v50 = vadd.f32 %v3101_v2, %v3093_v42 }
 0x43d   : > { %4186 = vtanh.f32 %v6340_v50 }
 0x443   : > { %v4187_v5 = vpop.eup %4186 }
 0x444   : > { %3106 = vrot.lane.b32.xlu2 %v4187_v5, %s4417_s17 }
 0x448   : > { %v3112_v63 = vpop.permute.xlu0 %3111 }
 0x449   : > { %3114 = vst.msk [vmem:[#allocation3] sm:$0xff] %vm1518_vm1, %v3112_v63 }
 0x49e   : > { %v3107_v56 = vpop.permute.xlu2 %3106 }
 0x49f   : > { %v6345_v16 = vmul.f32 %v3107_v56, %v3090_v17  ;;  %v2955_v56 = vadd.f32 %v6327_v0, %v6330_v45 }
 0x4a1   : > { %3121 = vrot.lane.b32.xlu1 %v6345_v16, %s4417_s17 }
 0x513   : > { %v3122_v13 = vpop.permute.xlu1 %3121 }
 0x514   : > { %v3124_v11 = vsel %vm1518_vm1, %v3112_v63, %v3122_v13  ;;  %v2929_v13 = vadd.f32 %v6352_v61, %v6314_v14 }
 0x515   : > { %3992 = vmatmul.msk.f32.vlgmr.msrb.gmra.mxu0 %vm2987_vm13, %v3124_v11  ;;  %3993 = vmatmul.msk.f32.vlgmr.msrb.gmra.mxu1 %vm2987_vm13, %v3124_v11 }
 0x592   : > { %v3145_v59 = vpop.f32.mrf.mxu0  ;;  %v3165_v57 = vpop.f32.mrf.mxu1 }
 0x593   : > { %v3170_v52 = vadd.f32 %v3145_v59, %v2926_v6  ;;  %v3210_v10 = vadd.f32 %v3165_v57, %v2958_v49 }
 0x595   : > { %4188 = vtanh.f32 %v3170_v52  ;;  %v3994_v27 = vmul.f32 -1.442695, %v3170_v52  ;;  %v3995_v47 = vmul.f32 -1.442695, %v3210_v10 }
 0x596   : > { %4190 = vtanh.f32 %v3210_v10 }
 0x597   : > { %4192 = vpow2.f32 %v3994_v27 }
 0x59b   : > { %v4189_v51 = vpop.eup %4188 }
 0x59c   : > { %v4191_v21 = vpop.eup %4190  ;;  %3193 = vrot.lane.b32.xlu2 %v4189_v51, %s4417_s17 }
 0x59d   : > { %3233 = vrot.lane.b32.xlu0 %v4191_v21, %s4417_s17  ;;  %v4193_v25 = vpop.eup %4192 }
 0x59e   : > { %v3174_v22 = vadd.f32 1.0, %v4193_v25 }
 0x5a0   : > { %4194 = vrcp.f32 %v3174_v22  ;;  %v3186_v24 = vand.u32 2147483648, %v3174_v22  ;;  %vm3180_vm6 = vweird.f32 %v3174_v22  ;;  %v3184_v38 = vand.u32 2147483647, %v3174_v22 }
 0x5a1   : > { %4196 = vpow2.f32 %v3995_v47 }
 0x5a2   : > { %v3187_v40 = vor.u32 1.1754944e-38, %v3186_v24  ;;  %vm3185_vm4 = vcmp.eq.f32.partialorder %v3184_v38, 8.507059e+37 }
 0x5a6   : > { %v4195_v60 = vpop.eup %4194 }
 0x5a7   : > { %v3176_v33 = vmul.f32 %v4195_v60, %v3174_v22  ;;  %v4197_v30 = vpop.eup %4196  ;;  %vm3181_vm2 = vweird.f32 %v4195_v60 }
 0x5a8   : > { %v3214_v26 = vadd.f32 1.0, %v4197_v30  ;;  %vm3182_vm3 = vmor %vm3180_vm6, %vm3181_vm2 }
 0x5a9   : > { %v3177_v35 = vsub.f32 1.0, %v3176_v33 }
 0x5aa   : > { %4198 = vrcp.f32 %v3214_v26  ;;  %v3226_v41 = vand.u32 2147483648, %v3214_v26  ;;  %vm3220_vm14 = vweird.f32 %v3214_v26  ;;  %v3224_v18 = vand.u32 2147483647, %v3214_v26 }
 0x5ab   : > { %v3178_v23 = vmul.f32 %v4195_v60, %v3177_v35 }
 0x5ac   : > { %v3227_v34 = vor.u32 1.1754944e-38, %v3226_v41  ;;  %vm3225_vm5 = vcmp.eq.f32.partialorder %v3224_v18, 8.507059e+37 }
 0x5ad   : > { %v3179_v1 = vadd.f32 %v4195_v60, %v3178_v23 }
 0x5af   : > { %v3183_v58 = vsel %vm3182_vm3, %v4195_v60, %v3179_v1 }
 0x5b0   : > { %v3188_v7 = vsel %vm3185_vm4, %v3187_v40, %v3183_v58  ;;  %v4199_v44 = vpop.eup %4198 }
 0x5b1   : > { %v3216_v54 = vmul.f32 %v4199_v44, %v3214_v26  ;;  %vm3221_vm15 = vweird.f32 %v4199_v44  ;;  %v3191_v29 = vmul.f32 %v3188_v7, %v6334_v15 }
 0x5b2   : > { %vm3222_vm12 = vmor %vm3220_vm14, %vm3221_vm15 }
 0x5b3   : > { %v3217_v55 = vsub.f32 1.0, %v3216_v54 }
 0x5b5   : > { %v3218_v12 = vmul.f32 %v4199_v44, %v3217_v55 }
 0x5b7   : > { %v3219_v32 = vadd.f32 %v4199_v44, %v3218_v12 }
 0x5b9   : > { %v3223_v37 = vsel %vm3222_vm12, %v4199_v44, %v3219_v32 }
 0x5ba   : > { %v3228_v53 = vsel %vm3225_vm5, %v3227_v34, %v3223_v37 }
 0x5bb   : > { %v3231_v48 = vmul.f32 %v3228_v53, %v6340_v50 }
 0x5f6   : > { %v3194_v19 = vpop.permute.xlu2 %3193 }
 0x5f7   : > { %v3196_v20 = vmul.f32 %v3194_v19, %v3188_v7 }
 0x5f9   : > { %3198 = vrot.lane.b32.xlu1 %v3196_v20, %s4418_s3 }
 0x60f   : > { %v3234_v8 = vpop.permute.xlu0 %3233 }
 0x610   : > { %v3236_v46 = vmul.f32 %v3234_v8, %v3228_v53 }
 0x612   : > { %3238 = vrot.lane.b32.xlu2 %v3236_v46, %s4418_s3 }
 0x66b   : > { %v3199_v43 = vpop.permute.xlu1 %3198 }
 0x66c   : > { %v3239_v28 = vpop.permute.xlu2 %3238  ;;  %v6364_v39 = vadd.f32 %v3199_v43, %v3191_v29 }
 0x66d   : > { %v6366_v17 = vadd.f32 %v3239_v28, %v3231_v48 }
 0x66e   : > { %4200 = vtanh.f32 %v6364_v39 }
 0x66f   : > { %4202 = vtanh.f32 %v6366_v17 }
 0x674   : > { %v4201_v31 = vpop.eup %4200 }
 0x675   : > { %v4203_v62 = vpop.eup %4202  ;;  %3204 = vrot.lane.b32.xlu0 %v4201_v31, %s4417_s17 }
 0x676   : > { %3244 = vrot.lane.b32.xlu1 %v4203_v62, %s4417_s17 }
 0x6e7   : > { %v3205_v3 = vpop.permute.xlu0 %3204 }
 0x6e8   : > { %v3245_v15 = vpop.permute.xlu1 %3244  ;;  %v3207_v42 = vmul.f32 %v3205_v3, %v3188_v7 }
 0x6e9   : > { %v6372_v2 = vmul.f32 %v3245_v15, %v3228_v53  ;;  %v2952_v15 = vadd.f32 %v6325_v9, %v6330_v45 }
 0x6ea   : > { %3249 = vrot.lane.b32.xlu2 %v3207_v42, %s4418_s3  ;;  %v2932_v42 = vadd.f32 %v6354_v36, %v6314_v14 }
 0x6eb   : > { %3260 = vrot.lane.b32.xlu0 %v6372_v2, %s4417_s17 }
 0x744   : > { %v3250_v50 = vpop.permute.xlu2 %3249 }
 0x745   : > { %3253 = vst.msk [vmem:[#allocation3 + $0x8] sm:$0xff] %vm1518_vm1, %v3250_v50 }
 0x75d   : > { %v3261_v5 = vpop.permute.xlu0 %3260 }
 0x75e   : > { %v3263_v63 = vsel %vm1518_vm1, %v3250_v50, %v3261_v5 }
 0x75f   : > { %3996 = vmatmul.msk.f32.vlgmr.msrb.gmra.mxu2 %vm2987_vm13, %v3263_v63  ;;  %3997 = vmatmul.msk.f32.vlgmr.msra.gmra.mxu3 %vm2987_vm13, %v3263_v63 }
 0x7e2   : > { %v3284_v11 = vpop.f32.mrf.mxu2  ;;  %v3304_v4 = vpop.f32.mrf.mxu3 }
 0x7e3   : > { %v3308_v6 = vadd.f32 %v3284_v11, %v2929_v13  ;;  %v3347_v49 = vadd.f32 %v3304_v4, %v2955_v56 }
 0x7e5   : > { %4204 = vtanh.f32 %v3308_v6  ;;  %v3999_v52 = vmul.f32 -1.442695, %v3347_v49  ;;  %v3998_v21 = vmul.f32 -1.442695, %v3308_v6 }
 0x7e6   : > { %4206 = vtanh.f32 %v3347_v49 }
 0x7e7   : > { %4208 = vpow2.f32 %v3999_v52 }
 0x7eb   : > { %v4205_v59 = vpop.eup %4204 }
 0x7ec   : > { %v4207_v57 = vpop.eup %4206  ;;  %3331 = vrot.lane.b32.xlu1 %v4205_v59, %s4417_s17 }
 0x7ed   : > { %3370 = vrot.lane.b32.xlu2 %v4207_v57, %s4417_s17  ;;  %v4209_v10 = vpop.eup %4208 }
 0x7ee   : > { %v3351_v51 = vadd.f32 1.0, %v4209_v10 }
 0x7f0   : > { %4210 = vrcp.f32 %v3351_v51  ;;  %v3363_v33 = vand.u32 2147483648, %v3351_v51  ;;  %vm3357_vm8 = vweird.f32 %v3351_v51  ;;  %v3361_v35 = vand.u32 2147483647, %v3351_v51 }
 0x7f1   : > { %4212 = vpow2.f32 %v3998_v21 }
 0x7f2   : > { %v3364_v30 = vor.u32 1.1754944e-38, %v3363_v33  ;;  %vm3362_vm11 = vcmp.eq.f32.partialorder %v3361_v35, 8.507059e+37 }
 0x7f6   : > { %v4211_v0 = vpop.eup %4210 }
 0x7f7   : > { %v3353_v61 = vmul.f32 %v4211_v0, %v3351_v51  ;;  %v4213_v25 = vpop.eup %4212  ;;  %vm3358_vm7 = vweird.f32 %v4211_v0 }
 0x7f8   : > { %v3312_v60 = vadd.f32 1.0, %v4213_v25  ;;  %vm3359_vm9 = vmor %vm3357_vm8, %vm3358_vm7  ;;  %vm3677_vm8 = vcmask 1041408  }
 0x7f9   : > { %v3354_v27 = vsub.f32 1.0, %v3353_v61 }
 0x7fa   : > { %4214 = vrcp.f32 %v3312_v60  ;;  %v3324_v20 = vand.u32 2147483648, %v3312_v60  ;;  %vm3318_vm10 = vweird.f32 %v3312_v60  ;;  %v3322_v44 = vand.u32 2147483647, %v3312_v60 }
 0x7fb   : > { %v3355_v22 = vmul.f32 %v4211_v0, %v3354_v27 }
 0x7fc   : > { %v3325_v55 = vor.u32 1.1754944e-38, %v3324_v20  ;;  %vm3323_vm6 = vcmp.eq.f32.partialorder %v3322_v44, 8.507059e+37 }
 0x7fd   : > { %v3356_v47 = vadd.f32 %v4211_v0, %v3355_v22 }
 0x7ff   : > { %v3360_v23 = vsel %vm3359_vm9, %v4211_v0, %v3356_v47  ;;  %vm3673_vm9 = vcmask 15360  }
 0x800   : > { %v3365_v1 = vsel %vm3362_vm11, %v3364_v30, %v3360_v23  ;;  %v4215_v24 = vpop.eup %4214  ;;  %vm6692_vm11 = vcmask 7168  }
 0x801   : > { %v3314_v58 = vmul.f32 %v4215_v24, %v3312_v60  ;;  %vm3319_vm0 = vweird.f32 %v4215_v24  ;;  %v3368_v18 = vmul.f32 %v3365_v1, %v6366_v17 }
 0x802   : > { %vm3320_vm2 = vmor %vm3318_vm10, %vm3319_vm0 }
 0x803   : > { %v3315_v40 = vsub.f32 1.0, %v3314_v58  ;;  %vm6693_vm0 = vmmov %vm6692_vm11 }
 0x804   : > { %vm6694_vm10 = vmmov %vm6693_vm0 }
 0x805   : > { %v3316_v19 = vmul.f32 %v4215_v24, %v3315_v40 }
 0x807   : > { %v3317_v7 = vadd.f32 %v4215_v24, %v3316_v19 }
 0x809   : > { %v3321_v54 = vsel %vm3320_vm2, %v4215_v24, %v3317_v7  ;;  %vm6695_vm2 = vmmov %vm6693_vm0 }
 0x80a   : > { %v3326_v32 = vsel %vm3323_vm6, %v3325_v55, %v3321_v54  ;;  %vm6696_vm6 = vmmov %vm6693_vm0 }
 0x80b   : > { %v3329_v53 = vmul.f32 %v3326_v32, %v6364_v39 }
 0x847   : > { %v3371_v26 = vpop.permute.xlu2 %3370 }
 0x848   : > { %v3373_v38 = vmul.f32 %v3371_v26, %v3365_v1 }
 0x84a   : > { %3375 = vrot.lane.b32.xlu1 %v3373_v38, %s4418_s3 }
 0x85e   : > { %v3332_v12 = vpop.permute.xlu1 %3331 }
 0x85f   : > { %v3334_v41 = vmul.f32 %v3332_v12, %v3326_v32 }
 0x861   : > { %3336 = vrot.lane.b32.xlu0 %v3334_v41, %s4418_s3 }
 0x8bc   : > { %v3376_v37 = vpop.permute.xlu1 %3375 }
 0x8bd   : > { %v6390_v34 = vadd.f32 %v3376_v37, %v3368_v18 }
 0x8bf   : > { %4216 = vtanh.f32 %v6390_v34 }
 0x8c5   : > { %v4217_v8 = vpop.eup %4216 }
 0x8c6   : > { %3381 = vrot.lane.b32.xlu0 %v4217_v8, %s4417_s17 }
 0x8d3   : > { %v3337_v46 = vpop.permute.xlu0 %3336 }
 0x8d4   : > { %v6395_v29 = vadd.f32 %v3337_v46, %v3329_v53 }
 0x8d6   : > { %4218 = vtanh.f32 %v6395_v29 }
 0x8dc   : > { %v4219_v48 = vpop.eup %4218 }
 0x8dd   : > { %3342 = vrot.lane.b32.xlu2 %v4219_v48, %s4417_s17 }
 0x937   : > { %v3343_v43 = vpop.permute.xlu2 %3342 }
 0x938   : > { %v3382_v28 = vpop.permute.xlu0 %3381  ;;  %v3345_v17 = vmul.f32 %v3343_v43, %v3326_v32  ;;  %v6438_v43 = vld [vmem:[#allocation3] sm:$0xff] }
 0x939   : > { %v6399_v31 = vmul.f32 %v3382_v28, %v3365_v1  ;;  %v6440_v28 = vld [vmem:[#allocation3 + $0x8] sm:$0xff] }
 0x93a   : > { %3386 = vrot.lane.b32.xlu1 %v3345_v17, %s4418_s3 }
 0x93b   : > { %3397 = vrot.lane.b32.xlu2 %v6399_v31, %s4417_s17 }
 0x995   : > { %v3398_v62 = vpop.permute.xlu2 %3397 }
 0x9ac   : > { %v3387_v39 = vpop.permute.xlu1 %3386 }
 0x9ad   : > { %3390 = vst.msk [vmem:[#allocation3 + $0x10] sm:$0xff] %vm1518_vm1, %v3387_v39  ;;  %v3400_v3 = vsel %vm1518_vm1, %v3387_v39, %v3398_v62 }
 0x9ae   : > { %4000 = vmatmul.msk.f32.vlgmr.msra.gmra.mxu0 %vm2987_vm13, %v3400_v3  ;;  %4001 = vmatmul.msk.f32.vlgmr.msra.gmra.mxu1 %vm2987_vm13, %v3400_v3 }
 0xa2b   : > { %v3421_v50 = vpop.f32.mrf.mxu0  ;;  %v3441_v5 = vpop.f32.mrf.mxu1 }
 0xa2c   : > { %v3445_v63 = vadd.f32 %v3421_v50, %v2932_v42  ;;  %v3484_v56 = vadd.f32 %v3441_v5, %v2952_v15 }
 0xa2e   : > { %4220 = vtanh.f32 %v3445_v63  ;;  %v4002_v4 = vmul.f32 -1.442695, %v3445_v63  ;;  %v4003_v6 = vmul.f32 -1.442695, %v3484_v56 }
 0xa2f   : > { %4222 = vtanh.f32 %v3484_v56 }
 0xa30   : > { %4224 = vpow2.f32 %v4002_v4 }
 0xa31   : > { %4226 = vpow2.f32 %v4003_v6 }
 0xa34   : > { %v4221_v13 = vpop.eup %4220 }
 0xa35   : > { %v4223_v11 = vpop.eup %4222  ;;  %3468 = vrot.lane.b32.xlu0 %v4221_v13, %s4417_s17 }
 0xa36   : > { %3507 = vrot.lane.b32.xlu1 %v4223_v11, %s4417_s17  ;;  %v4225_v9 = vpop.eup %4224 }
 0xa37   : > { %v4227_v45 = vpop.eup %4226  ;;  %v3449_v49 = vadd.f32 1.0, %v4225_v9 }
 0xa38   : > { %v3488_v14 = vadd.f32 1.0, %v4227_v45 }
 0xa39   : > { %4228 = vrcp.f32 %v3449_v49  ;;  %v3461_v25 = vand.u32 2147483648, %v3449_v49  ;;  %vm3455_vm4 = vweird.f32 %v3449_v49  ;;  %v3459_v60 = vand.u32 2147483647, %v3449_v49 }
 0xa3a   : > { %4230 = vrcp.f32 %v3488_v14  ;;  %v3500_v22 = vand.u32 2147483648, %v3488_v14  ;;  %vm3494_vm15 = vweird.f32 %v3488_v14  ;;  %v3498_v47 = vand.u32 2147483647, %v3488_v14 }
 0xa3b   : > { %v3462_v23 = vor.u32 1.1754944e-38, %v3461_v25  ;;  %vm3460_vm5 = vcmp.eq.f32.partialorder %v3459_v60, 8.507059e+37 }
 0xa3c   : > { %v3501_v30 = vor.u32 1.1754944e-38, %v3500_v22  ;;  %vm3499_vm7 = vcmp.eq.f32.partialorder %v3498_v47, 8.507059e+37  ;;  %v1002_v47 = vld [vmem:[%s6557_s8 + $0x3] ss:$0 sm:$0xff] }
 0xa3f   : > { %v4229_v36 = vpop.eup %4228 }
 0xa40   : > { %v4231_v59 = vpop.eup %4230  ;;  %v3451_v57 = vmul.f32 %v4229_v36, %v3449_v49  ;;  %vm3456_vm13 = vweird.f32 %v4229_v36 }
 0xa41   : > { %v3490_v52 = vmul.f32 %v4231_v59, %v3488_v14  ;;  %vm3495_vm3 = vweird.f32 %v4231_v59  ;;  %vm3457_vm14 = vmor %vm3455_vm4, %vm3456_vm13 }
 0xa42   : > { %v3452_v10 = vsub.f32 1.0, %v3451_v57  ;;  %vm3496_vm12 = vmor %vm3494_vm15, %vm3495_vm3 }
 0xa43   : > { %v3491_v51 = vsub.f32 1.0, %v3490_v52  ;;  %vm6697_vm13 = vmmov %vm6693_vm0 }
 0xa44   : > { %v3453_v0 = vmul.f32 %v4229_v36, %v3452_v10  ;;  %vm6698_vm3 = vmmov %vm6693_vm0 }
 0xa45   : > { %v3492_v21 = vmul.f32 %v4231_v59, %v3491_v51  ;;  %vm6699_vm4 = vmmov %vm6693_vm0 }
 0xa46   : > { %v3454_v61 = vadd.f32 %v4229_v36, %v3453_v0 }
 0xa47   : > { %v3493_v27 = vadd.f32 %v4231_v59, %v3492_v21  ;;  %v3672_v21 = vld [vmem:[%s6556_s7] sm:$0x3] }
 0xa48   : > { %v3458_v33 = vsel %vm3457_vm14, %v4229_v36, %v3454_v61  ;;  %v3671_v61 = vld [vmem:[%s997_s14] sm:$0xff]  ;;  %4004 = vmatpush.msk.msra.mxu2 %vm3677_vm8, %v3672_v21  ;;  %v3705_v21 = vld [vmem:[#allocation12 + $0x18] sm:$0xff]  ;;  %s991_s14 = scalar_lea.vmem [#allocation13], %s3975_s5 }
 0xa49   : > { %v3497_v35 = vsel %vm3496_vm12, %v4231_v59, %v3493_v27  ;;  %v3463_v1 = vsel %vm3460_vm5, %v3462_v23, %v3458_v33  ;;  %4005 = vmatmul.msk.f32.vlgmr.msra.gmra.mxu2 %vm3673_vm9, %v3671_v61  ;;  %v3708_v61 = vld [vmem:[#allocation12 + $0x30] sm:$0xff]  ;;  %3748 = vmatpush.msrb.mxu3 %v3705_v21  ;;  %s3826_s27 = sshll.u32 %s991_s14, 4  ;;  %s3827_s27 = int_to_ptr.vmem [resolvable:$true] %s3826_s27 }
 0xa4a   : > { %v3502_v38 = vsel %vm3499_vm7, %v3501_v30, %v3497_v35  ;;  %v3466_v19 = vmul.f32 %v3463_v1, %v6395_v29  ;;  %vm3758_vm7 = vcmask 130048  }
 0xa4b   : > { %v3505_v54 = vmul.f32 %v3502_v38, %v6390_v34 }
 0xaa7   : > { %v3469_v26 = vpop.permute.xlu0 %3468 }
 0xaa8   : > { %v3508_v24 = vpop.permute.xlu1 %3507  ;;  %v3471_v58 = vmul.f32 %v3469_v26, %v3463_v1 }
 0xaa9   : > { %v3510_v40 = vmul.f32 %v3508_v24, %v3502_v38 }
 0xaaa   : > { %3473 = vrot.lane.b32.xlu2 %v3471_v58, %s4418_s3 }
 0xaab   : > { %3512 = vrot.lane.b32.xlu0 %v3510_v40, %s4418_s3 }
 0xab3   : > { %3116 = vrot.lane.b32.xlu0 %v6345_v16, %s4418_s3  ;;  %v1001_v16 = vld [vmem:[%s6557_s8 + $0x2] ss:$0 sm:$0xff] }
 0xab4   : > { %v3541_v17 = vmul.f32 %v6438_v43, %v1001_v16 }
 0xab6   : > { %v3545_v62 = vsel %vm1518_vm1, %v3541_v17, 0.0 }
 0xb04   : > { %v3474_v7 = vpop.permute.xlu2 %3473 }
 0xb05   : > { %v3476_v20 = vadd.f32 %v3474_v7, %v3466_v19 }
 0xb07   : > { %4232 = vtanh.f32 %v3476_v20 }
 0xb0d   : > { %v4233_v44 = vpop.eup %4232 }
 0xb0e   : > { %3479 = vrot.lane.b32.xlu1 %v4233_v44, %s4417_s17 }
 0xb16   : > { %3255 = vrot.lane.b32.xlu1 %v6372_v2, %s4418_s3  ;;  %v6430_v2 = vld [vmem:[#allocation3 + $0x10] sm:$0xff] }
 0xb17   : > { %v3543_v18 = vmul.f32 %v6430_v2, %v1001_v16 }
 0xb19   : > { %v3551_v37 = vsel %vm1518_vm1, %v3543_v18, 0.0 }
 0xb1d   : > { %v3513_v55 = vpop.permute.xlu0 %3512 }
 0xb1e   : > { %v3515_v12 = vadd.f32 %v3513_v55, %v3505_v54 }
 0xb20   : > { %4234 = vtanh.f32 %v3515_v12 }
 0xb25   : > { %v3117_v32 = vpop.permute.xlu0 %3116 }
 0xb26   : > { %v4235_v41 = vpop.eup %4234  ;;  %3120 = vst.msk [vmem:[#allocation4 + $0x18] sm:$0xff] %vm1518_vm1, %v3117_v32 }
 0xb27   : > { %3518 = vrot.lane.b32.xlu2 %v4235_v41, %s4417_s17  ;;  %s4356_s17 = scalar_lea.hbm %s6558_s9, 16 }
 0xb28   : > { %p4358_p8 = scmp.lt.s32.totalorder %s4356_s17, %s4352_s13 }
 0xb2a   : > { %p4359_p9 = por %p4358_p8, %p4357_p7 }
 0xb2c   : > { %p4360_p11 = pnand %p4359_p9, %p4355_p5 }
 0xb2d   : > { %v6463_v14 = vld [vmem:[#allocation4 + $0x18] sm:$0xff] }
 0xb2f   : > { %3392 = vrot.lane.b32.xlu2 %v6399_v31, %s4418_s3  ;;  %v3542_v31 = vmul.f32 %v6440_v28, %v1001_v16 }
 0xb31   : > { %v3548_v39 = vsel %vm1518_vm1, %v3542_v31, 0.0 }
 0xb37   : > { %3558 = vrot.lane.b32.xlu2 %v1001_v16, %s4419_s28 }
 0xb60   : > { %3552 = vadd.xlane.f32.xlu2 %v3551_v37 }
 0xb80   : > { %v3480_v34 = vpop.permute.xlu1 %3479 }
 0xb81   : > { %v3519_v8 = vpop.permute.xlu2 %3518  ;;  %v3482_v53 = vmul.f32 %v3480_v34, %v3463_v1 }
 0xb82   : > { %v3521_v46 = vmul.f32 %v3519_v8, %v3502_v38 }
 0xb83   : > { %3523 = vrot.lane.b32.xlu0 %v3482_v53, %s4418_s3 }
 0xb84   : > { %3529 = vrot.lane.b32.xlu1 %v3521_v46, %s4418_s3 }
 0xb88   : > { %v3256_v29 = vpop.permute.xlu1 %3255 }
 0xb89   : > { %v3393_v48 = vpop.permute.xlu2 %3392  ;;  %3259 = vst.msk [vmem:[#allocation4 + $0x10] sm:$0xff] %vm1518_vm1, %v3256_v29 }
 0xb8a   : > { %3396 = vst.msk [vmem:[#allocation4 + $0x8] sm:$0xff] %vm1518_vm1, %v3393_v48 }
 0xb90   : > { %v6460_v45 = vld [vmem:[#allocation4 + $0x10] sm:$0xff] }
 0xb91   : > { %v3559_v3 = vpop.permute.xlu2 %3558  ;;  %v6446_v15 = vld [vmem:[#allocation4 + $0x8] sm:$0xff] }
 0xb92   : > { %v3562_v42 = vmul.f32 %v3559_v3, %v6446_v15  ;;  %v3563_v49 = vmul.f32 %v3559_v3, %v6460_v45  ;;  %v3564_v36 = vmul.f32 %v3559_v3, %v6463_v14 }
 0xb94   : > { %v3568_v50 = vsel %vm1518_vm1, %v3562_v42, 0.0  ;;  %v3571_v59 = vsel %vm1518_vm1, %v3563_v49, 0.0  ;;  %v3574_v57 = vsel %vm1518_vm1, %v3564_v36, 0.0 }
 0xbad   : > { %3546 = vadd.xlane.f32.xlu0 %v3545_v62 }
 0xbae   : > { %3549 = vadd.xlane.f32.xlu1 %v3548_v39 }
 0xbb6   : > { %3569 = vadd.xlane.f32.xlu1 %v3568_v50 }
 0xbd3   : > { %v3553_v52 = vpop.xlane.xlu2 %3552 }
 0xbf5   : > { %v3524_v5 = vpop.permute.xlu0 %3523 }
 0xbf6   : > { %3527 = vst.msk [vmem:[#allocation3 + $0x18] sm:$0xff] %vm1518_vm1, %v3524_v5  ;;  %v3530_v63 = vpop.permute.xlu1 %3529 }
 0xbf7   : > { %3532 = vst.msk [vmem:[#allocation4] sm:$0xff] %vm1518_vm1, %v3530_v63 }
 0xbfd   : > { %v6452_v56 = vld [vmem:[#allocation3 + $0x18] sm:$0xff] }
 0xbfe   : > { %v3544_v13 = vmul.f32 %v6452_v56, %v1001_v16  ;;  %v6455_v11 = vld [vmem:[#allocation4] sm:$0xff] }
 0xbff   : > { %v3561_v4 = vmul.f32 %v3559_v3, %v6455_v11 }
 0xc00   : > { %v3554_v6 = vsel %vm1518_vm1, %v3544_v13, 0.0 }
 0xc01   : > { %3555 = vadd.xlane.f32.xlu2 %v3554_v6  ;;  %v3565_v9 = vsel %vm1518_vm1, %v3561_v4, 0.0 }
 0xc02   : > { %3566 = vadd.xlane.f32.xlu0 %v3565_v9 }
 0xc09   : > { %3572 = vadd.xlane.f32.xlu2 %v3571_v59 }
 0xc0a   : > { %3575 = vadd.xlane.f32.xlu0 %v3574_v57 }
 0xc20   : > { %v3547_v10 = vpop.xlane.xlu0 %3546 }
 0xc21   : > { %v3550_v51 = vpop.xlane.xlu1 %3549 }
 0xc29   : > { %v3570_v25 = vpop.xlane.xlu1 %3569 }
 0xc2a   : > { %v3578_v60 = vadd.f32 %v3570_v25, %v3550_v51  ;;  %v3707_v25 = vld [vmem:[#allocation12 + $0x28] sm:$0xff] }
 0xc2c   : > { %v3582_v26 = vadd.f32 %v3578_v60, %v1002_v47  ;;  %v3706_v60 = vld [vmem:[#allocation12 + $0x20] sm:$0xff] }
 0xc2e   : > { %v3586_v19 = vsel %vm6694_vm10, %v3582_v26, -inf }
 0xc74   : > { %v3556_v0 = vpop.xlane.xlu2 %3555 }
 0xc75   : > { %v3567_v27 = vpop.xlane.xlu0 %3566 }
 0xc76   : > { %v3577_v22 = vadd.f32 %v3567_v27, %v3547_v10  ;;  %v3704_v27 = vld [vmem:[#allocation12 + $0x10] sm:$0xff] }
 0xc77   : > { %3749 = vmatpush.msrb.mxu3 %v3704_v27 }
 0xc78   : > { %v3581_v33 = vadd.f32 %v3577_v22, %v1002_v47  ;;  %v3703_v22 = vld [vmem:[#allocation12 + $0x8] sm:$0xff] }
 0xc79   : > { %3750 = vmatpush.msrb.mxu3 %v3703_v22 }
 0xc7a   : > { %v3585_v38 = vsel %vm6692_vm11, %v3581_v33, -inf }
 0xc7b   : > { %v3589_v20 = vmax.f32 %v3585_v38, %v3586_v19 }
 0xc7c   : > { %v3573_v35 = vpop.xlane.xlu2 %3572 }
 0xc7d   : > { %v3579_v23 = vadd.f32 %v3573_v35, %v3553_v52  ;;  %v3576_v30 = vpop.xlane.xlu0 %3575  ;;  %v1003_v35 = vld [vmem:[%s6557_s8 + $0x4] ss:$0 sm:$0xff] }
 0xc7e   : > { %v3580_v1 = vadd.f32 %v3576_v30, %v3556_v0  ;;  %v3709_v0 = vld [vmem:[#allocation12 + $0x38] sm:$0xff] }
 0xc7f   : > { %v3583_v24 = vadd.f32 %v3579_v23, %v1002_v47  ;;  %3725 = vmatpush.msrb.mxu2 %v3709_v0  ;;  %v3698_v23 = vpop.f32.mrf.mxu2 }
 0xc80   : > { %v3584_v58 = vadd.f32 %v3580_v1, %v1002_v47  ;;  %v3702_v47 = vld [vmem:[#allocation12] sm:$0xff]  ;;  %v3699_v30 = vadd.f32 %v3698_v23, %v1003_v35 }
 0xc81   : > { %v3587_v40 = vsel %vm6693_vm0, %v3583_v24, -inf  ;;  %3726 = vmatpush.msrb.mxu2 %v3708_v61  ;;  %3751 = vmatpush.msrb.mxu3 %v3702_v47 }
 0xc82   : > { %v3588_v7 = vsel %vm6695_vm2, %v3584_v58, -inf  ;;  %v3701_v1 = vmax.f32 %v3699_v30, 0.0 }
 0xc83   : > { %v3590_v44 = vmax.f32 %v3587_v40, %v3588_v7  ;;  %3727 = vmatpush.msrb.mxu2 %v3707_v25 }
 0xc85   : > { %v3591_v54 = vmax.f32 %v3589_v20, %v3590_v44  ;;  %3728 = vmatpush.msrb.mxu2 %v3706_v60 }
 0xc87   : > { %v3592_v55 = vsub.f32 %v3581_v33, %v3591_v54  ;;  %v3593_v12 = vsub.f32 %v3582_v26, %v3591_v54  ;;  %v3595_v32 = vsub.f32 %v3584_v58, %v3591_v54  ;;  %v3594_v41 = vsub.f32 %v3583_v24, %v3591_v54  ;;  %v3757_v33 = vld [vmem:[#allocation12 + $0x48] sm:$0xff]  ;;  %v3756_v26 = vld [vmem:[#allocation12 + $0x40] sm:$0xff] }
 0xc88   : > { %3776 = vmatpush.msrb.mxu0 %v3757_v33 }
 0xc89   : > { %v3596_v16 = vmul.f32 1.442695, %v3592_v55  ;;  %v3598_v18 = vmul.f32 1.442695, %v3593_v12  ;;  %v3602_v37 = vmul.f32 1.442695, %v3595_v32 }
 0xc8a   : > { %v3600_v34 = vmul.f32 1.442695, %v3594_v41  ;;  %3777 = vmatpush.msrb.mxu0 %v3756_v26 }
 0xc8b   : > { %4236 = vpow2.f32 %v3596_v16  ;;  %4008 = vmatmul.msk.f32.vlgmr.msrb.gmra.mxu0 %vm3758_vm7, %v3701_v1 }
 0xc8c   : > { %4238 = vpow2.f32 %v3598_v18 }
 0xc8d   : > { %4240 = vpow2.f32 %v3602_v37 }
 0xc8e   : > { %4242 = vpow2.f32 %v3600_v34 }
 0xc91   : > { %v4237_v8 = vpop.eup %4236 }
 0xc92   : > { %v4239_v53 = vpop.eup %4238  ;;  %v3604_v46 = vsel %vm6696_vm6, %v4237_v8, 0.0 }
 0xc93   : > { %v4241_v29 = vpop.eup %4240  ;;  %v3605_v48 = vsel %vm6697_vm13, %v4239_v53, 0.0 }
 0xc94   : > { %v4243_v17 = vpop.eup %4242  ;;  %v3606_v31 = vadd.f32 %v3605_v48, %v3604_v46  ;;  %v3609_v3 = vsel %vm6699_vm4, %v4241_v29, 0.0  ;;  %v3787_v48 = vld [vmem:[#allocation12 + $0x60] sm:$0xff] }
 0xc95   : > { %v3607_v62 = vsel %vm6698_vm3, %v4243_v17, 0.0 }
 0xc96   : > { %v3608_v39 = vadd.f32 %v3607_v62, %v3606_v31 }
 0xc98   : > { %v3610_v42 = vadd.f32 %v3609_v3, %v3608_v39  ;;  %v1004_v3 = vld [vmem:[%s6557_s8 + $0x5] ss:$0 sm:$0xff] }
 0xc9a   : > { %4244 = vrcp.f32 %v3610_v42  ;;  %v3622_v13 = vand.u32 2147483648, %v3610_v42  ;;  %v3620_v6 = vand.u32 2147483647, %v3610_v42  ;;  %vm3616_vm14 = vweird.f32 %v3610_v42 }
 0xc9c   : > { %v3623_v49 = vor.u32 1.1754944e-38, %v3622_v13  ;;  %vm3621_vm5 = vcmp.eq.f32.partialorder %v3620_v6, 8.507059e+37 }
 0xca0   : > { %v4245_v50 = vpop.eup %4244 }
 0xca1   : > { %v3612_v5 = vmul.f32 %v4245_v50, %v3610_v42  ;;  %vm3617_vm15 = vweird.f32 %v4245_v50 }
 0xca2   : > { %vm3618_vm12 = vmor %vm3616_vm14, %vm3617_vm15 }
 0xca3   : > { %v3613_v63 = vsub.f32 1.0, %v3612_v5 }
 0xca5   : > { %v3614_v4 = vmul.f32 %v4245_v50, %v3613_v63  ;;  %v1005_v63 = vld [vmem:[%s6557_s8 + $0x6] ss:$0 sm:$0xff] }
 0xca7   : > { %v3615_v9 = vadd.f32 %v4245_v50, %v3614_v4 }
 0xca9   : > { %v3619_v36 = vsel %vm3618_vm12, %v4245_v50, %v3615_v9 }
 0xcaa   : > { %v3624_v59 = vsel %vm3621_vm5, %v3623_v49, %v3619_v36 }
 0xcab   : > { %v3627_v57 = vmul.f32 %v4243_v17, %v3624_v59  ;;  %v3626_v52 = vmul.f32 %v4239_v53, %v3624_v59  ;;  %v3625_v10 = vmul.f32 %v4237_v8, %v3624_v59  ;;  %v3628_v51 = vmul.f32 %v4241_v29, %v3624_v59 }
 0xcad   : > { %3641 = vperm.xlu0 %4097, %v3627_v57   ;;  %3636 = vperm.xlu2 %4099, %v3626_v52  }
 0xcae   : > { %3631 = vperm.xlu1 %4098, %v3625_v10  }
 0xcb6   : > { %3646 = vperm.xlu1 %4098, %v3628_v51  }
 0xd07   : > { %v3637_v24 = vpop.permute.xlu2 %3636 }
 0xd08   : > { %v3650_v58 = vmul.f32 %v3637_v24, %v6440_v28  ;;  %v3661_v40 = vmul.f32 %v3637_v24, %v6446_v15  ;;  %v3779_v17 = vpop.f32.mrf.mxu0 }
 0xd0a   : > { %v3654_v55 = vsel %vm1518_vm1, %v3650_v58, 0.0  ;;  %v3665_v12 = vsel %vm1518_vm1, %v3661_v40, 0.0 }
 0xd1f   : > { %v3642_v20 = vpop.permute.xlu0 %3641 }
 0xd20   : > { %v3632_v38 = vpop.permute.xlu1 %3631  ;;  %v3651_v32 = vmul.f32 %v3642_v20, %v6430_v2  ;;  %v3662_v41 = vmul.f32 %v3642_v20, %v6460_v45  ;;  %v3788_v45 = vld [vmem:[#allocation12 + $0x68] sm:$0xff] }
 0xd21   : > { %v3649_v19 = vmul.f32 %v3632_v38, %v6438_v43  ;;  %v3660_v7 = vmul.f32 %v3632_v38, %v6455_v11  ;;  %3804 = vmatpush.msrb.mxu1 %v3788_v45 }
 0xd22   : > { %v3656_v43 = vsel %vm1518_vm1, %v3651_v32, 0.0  ;;  %v3667_v11 = vsel %vm1518_vm1, %v3662_v41, 0.0 }
 0xd23   : > { %v3653_v44 = vsel %vm1518_vm1, %v3649_v19, 0.0  ;;  %v3664_v54 = vsel %vm1518_vm1, %v3660_v7, 0.0  ;;  %3805 = vmatpush.msrb.mxu1 %v3787_v48 }
 0xd24   : > { %v3655_v28 = vadd.f32 %v3654_v55, %v3653_v44  ;;  %v3666_v16 = vadd.f32 %v3665_v12, %v3664_v54 }
 0xd26   : > { %v3657_v34 = vadd.f32 %v3656_v43, %v3655_v28  ;;  %v3668_v8 = vadd.f32 %v3667_v11, %v3666_v16 }
 0xd28   : > { %v3647_v15 = vpop.permute.xlu1 %3646 }
 0xd29   : > { %v3652_v18 = vmul.f32 %v3647_v15, %v6452_v56  ;;  %v3663_v37 = vmul.f32 %v3647_v15, %v6463_v14  ;;  %v3786_v56 = vld [vmem:[#allocation12 + $0x58] sm:$0xff]  ;;  %v3785_v14 = vld [vmem:[#allocation12 + $0x50] sm:$0xff] }
 0xd2a   : > { %3806 = vmatpush.msrb.mxu1 %v3786_v56 }
 0xd2b   : > { %v3658_v53 = vsel %vm1518_vm1, %v3652_v18, 0.0  ;;  %v3669_v46 = vsel %vm1518_vm1, %v3663_v37, 0.0 }
 0xd2c   : > { %v3659_v2 = vadd.f32 %v3658_v53, %v3657_v34  ;;  %v3670_v29 = vadd.f32 %v3669_v46, %v3668_v8  ;;  %3807 = vmatpush.msrb.mxu1 %v3785_v14 }
 0xd2e   : > { %4006 = vmatmul.msk.f32.vlgmr.msrb.gmra.mxu2 %vm1518_vm1, %v3670_v29  ;;  %4007 = vmatmul.msk.f32.vlgmr.msrb.gmra.mxu3 %vm1518_vm1, %v3659_v2 }
 0xdb1   : > { %v3730_v31 = vpop.f32.mrf.mxu2  ;;  %v3753_v62 = vpop.f32.mrf.mxu3 }
 0xdb2   : > { %v3754_v39 = vadd.f32 %v3753_v62, %v3730_v31 }
 0xdb4   : > { %v3782_v42 = vadd.f32 %v3779_v17, %v3754_v39 }
 0xdb6   : > { %v3783_v50 = vadd.f32 %v3782_v42, %v1004_v3 }
 0xdb8   : > { %v3784_v5 = vmax.f32 %v3783_v50, 0.0 }
 0xdba   : > { %4009 = vmatmul.msk.f32.vlgmr.msrb.gmra.mxu1 %vm1518_vm1, %v3784_v5 }
 0xe37   : > { %v3809_v13 = vpop.f32.mrf.mxu1 }
 0xe38   : > { %v3810_v4 = vadd.f32 %v3809_v13, %v1005_v63 }
 0xe3a   : > { %3812 = vst [vmem:[%s991_s14] sm:$0xff] %v3810_v4 }
 0xe3b   : > { %4363 = shalt.err (!%p4360_p11)
}
 0xe3c   : > { %4030 = dma.vmem_to_hbm [thread:$0]  (%p4513_p6), %s3827_s27, 128, %s3829_s22, %s3814_s15  }
 0xe3d PF: > { %s3840_s18 = sand.u32 1, %s4394_s30   ;;  %p4043_p12 = pnand %p3960_p1, %p4519_p10 }
 0xe3e   : > { %s3841_s28 = scalar_lea.sflag [#allocation9], %s3840_s18 }
 0xe3f   : > { %p4044_p13 = pneg %p4043_p12 }
 0xe41   : > { %4389 = dma.done.wait (%p4044_p13), %s3841_s28, 128  }
 0xe42   : > { %4391 = vsyncadd (%p4044_p13), %s3841_s28, 4294967168  ;;  %s6701_s12 = sld [smem:[#allocation17_spill]]  ;;  %s6703_s30 = smov %s4398_s10 }
 0xe43   : > { %s6702_s23 = sld [smem:[#allocation18_spill]]  ;;  %s6704_s10 = smov %s4402_s11 }
 0xe48   : > { %p21_p0 = scmp.ge.s32.totalorder %s6701_s12, 4  }
 0xe49   : > { %s6705_s11 = smov %s6702_s23 }
 0xe4a   :  { %23 = sbr.rel (!%p21_p0) target bundleno = 8 (0x8), region = 206 }
 0xe4f   :  { %3847 = vsyncpa [#allocation8], 1 }
 0xe50   :  { %3849 = vsyncpa [#allocation8 + $0x1], 1 }
 0xe51   :  { %3850 = vsyncpa [#allocation11], 1 }
 0xe52   :  { %3851 = vsyncpa [#allocation9], 1 }
 0xe53   :  { %3853 = vsyncpa [#allocation9 + $0x1], 1 }

</bundles_post_ra>
